<compile_context>
chip_gen: v7x
topology: tpu7x:2x2x1
jax: 0.10.0
libtpu: 0.0.40
codegen_flags: <defaults>
</compile_context>

<pallas_src>
import math

import jax
import jax.numpy as jnp
import numpy as np
from jax.experimental import pallas as pl
from jax.experimental.pallas import tpu as pltpu


def gcnbig_kernel(
    x_ref,             # (Bblk, T*J, C1)   channels-last, row-flattened input
    g_ref,             # (Bblk, T*J, T*J)  block-diagonal per-frame adjacency
    w1_ref, b1_ref,    # gcn1: (C1, 2*C1), (1, C1)   [Wg | Wx] stacked, BN folded
    w2_ref, b2_ref,    # gcn2: (C1, 2*C2), (1, C2)
    w3_ref, b3_ref,    # gcn3: (C2, 2*C2), (1, C2)
    out_ref,           # (Bblk, T*J, C2)   lane-dense output rows
):
    bblk, tj, _ = x_ref.shape
    g = g_ref[...]                                               # (Bblk, TJ, TJ)

    def gcn_layer(h, w_ref, b_ref):
        """relu( g @ (h @ Wg) + h @ Wx + b )  with Wg|Wx stacked along the output dim."""
        cin = h.shape[-1]
        cout = w_ref.shape[1] // 2
        # one fused 1x1-conv matmul per layer: (Bblk*TJ, Cin) @ (Cin, 2*Cout)
        hw = jnp.dot(h.reshape(bblk * tj, cin).astype(w_ref.dtype), w_ref[...],
                     preferred_element_type=jnp.float32
                     ).reshape(bblk, tj, 2 * cout)
        # graph matmul on the Wg path: one (TJ,TJ)@(TJ,Cout) MXU matmul per batch element
        gh = jnp.einsum("bmn,bnc->bmc", g, hw[:, :, :cout],
                        preferred_element_type=jnp.float32)
        y = gh + hw[:, :, cout:] + b_ref[...]                    # BN-folded bias
        return jnp.maximum(y, 0.0)                               # (Bblk, TJ, Cout)

    h = gcn_layer(x_ref[...], w1_ref, b1_ref)                    # (Bblk, TJ, C1)
    h = gcn_layer(h, w2_ref, b2_ref)                             # (Bblk, TJ, C2)
    out_ref[...] = gcn_layer(h, w3_ref, b3_ref)                  # (Bblk, TJ, C2)


def _pick_bblk(batch):
    """Largest divisor of `batch` that keeps grid >= 2 (both v7x TensorCores fed) and the
    per-step working set small (<= 8 elements ~ a few MiB, comfortably inside v7x VMEM)."""
    if batch <= 1:
        return 1
    cap = min(8, batch // 2)
    bblk = 1
    for d in range(1, cap + 1):
        if batch % d == 0:
            bblk = d
    return bblk


def gcnbig_forward(x_nchw, g, raw_params, eps=1e-5, use_bf16=False):
    """x_nchw: (B, dim//2, J, T) float32 (PyTorch layout), g: (B, T, J, J).
    Returns PyTorch-layout output (B, dim, J, T)."""
    B, C1, J, T = x_nchw.shape
    C2 = raw_params[-1][0].shape[0]
    TJ = T * J

    # layout plumbing: NCHW -> channels-last rows (B, T*J, C1)
    x = jnp.transpose(x_nchw, (0, 3, 2, 1)).reshape(B, TJ, C1).astype(jnp.float32)

    # block-diagonal adjacency: g_block[b, t*J+i, s*J+j] = g[b,t,i,j] * (t==s)
    eye_t = jnp.eye(T, dtype=jnp.float32)
    g_block = jnp.einsum("btij,ts->btisj", g.astype(jnp.float32), eye_t).reshape(B, TJ, TJ)

    # Fold eval-mode BatchNorm2d (fresh running stats) into the conv weights and stack
    # [Wg | Wx] along the output dim so the kernel runs ONE matmul per layer.
    w_dtype = jnp.bfloat16 if use_bf16 else jnp.float32
    bn_scale = 1.0 / math.sqrt(1.0 + eps)                        # mean=0, var=1, gamma=1, beta=0
    folded = []
    for (w_w, w1_w, w1_b) in raw_params:
        co = w_w.shape[0]
        wg = (w_w.T * bn_scale).astype(jnp.float32)              # (Cin, Cout), graph path
        wx = (w1_w.T * bn_scale).astype(jnp.float32)             # (Cin, Cout), skip path
        wcat = jnp.concatenate([wg, wx], axis=1).astype(w_dtype)  # (Cin, 2*Cout)
        b = (w1_b if w1_b is not None else jnp.zeros((co,), jnp.float32)) * bn_scale
        folded.extend([wcat, b.reshape(1, co).astype(jnp.float32)])

    bblk = _pick_bblk(B)
    assert B % bblk == 0, (B, bblk)

    # Constant (grid-invariant) weight/bias blocks; index_map is constant so they are not
    # re-DMA'd per step.  (Total ~0.5 MiB, so default double-buffering is harmless.)
    def const_spec(a):
        return pl.BlockSpec(a.shape, lambda bb, n=a.ndim: (0,) * n)

    out = pl.pallas_call(
        gcnbig_kernel,
        out_shape=jax.ShapeDtypeStruct((B, TJ, C2), jnp.float32),
        grid_spec=pltpu.PrefetchScalarGridSpec(
            num_scalar_prefetch=0,
            grid=(B // bblk,),
            in_specs=[
                pl.BlockSpec((bblk, TJ, C1), lambda bb: (bb, 0, 0)),
                pl.BlockSpec((bblk, TJ, TJ), lambda bb: (bb, 0, 0)),
            ] + [const_spec(p) for p in folded],
            out_specs=pl.BlockSpec((bblk, TJ, C2), lambda bb: (bb, 0, 0)),
        ),
        compiler_params=pltpu.CompilerParams(dimension_semantics=("parallel",)),
    )(x, g_block, *folded)

    # (B, T*J, C2) -> (B, T, J, C2) -> NCHW (B, C2, J, T)
    return jnp.transpose(out.reshape(B, T, J, C2), (0, 3, 2, 1))


def make_params(key, dim, bias=True):
    """Deterministic synthetic params mirroring GCNBig(dim, bias) shapes/init (PyTorch layout)."""
    c1, c2 = dim // 2, dim
    layer_dims = [(c1, c1), (c1, c2), (c2, c2)]      # gcn1, gcn2, gcn3 (in, out)
    keys = jax.random.split(key, 3 * len(layer_dims))
    raw = []
    for i, (ci, co) in enumerate(layer_dims):
        kw, kw1, kb = keys[3 * i:3 * i + 3]
        bound = 1.0 / math.sqrt(ci)                  # conv1x1 fan_in = ci
        w_w = jax.random.uniform(kw, (co, ci), jnp.float32, -bound, bound)    # gcn.w   (bias=False)
        w1_w = jax.random.uniform(kw1, (co, ci), jnp.float32, -bound, bound)  # gcn.w1
        w1_b = jax.random.uniform(kb, (co,), jnp.float32, -bound, bound) if bias else None
        raw.append((w_w, w1_w, w1_b))
    return raw


def reference_forward(x, g, raw_params, eps=1e-5):
    """Pure-JAX reference of GCNBig eval-mode forward, PyTorch layouts."""
    h = x                                                         # (B, Cin, J, T)
    for (w_w, w1_w, w1_b) in raw_params:
        ht = jnp.transpose(h, (0, 3, 2, 1))                       # (B, T, J, Cin)
        hg = jnp.einsum("btij,btjc->btic", g, ht)                 # g.matmul(x)
        hg = jnp.transpose(hg, (0, 3, 2, 1))                      # (B, Cin, J, T)
        y = (jnp.einsum("oc,bcjt->bojt", w_w, hg)                 # self.w(gx)
             + jnp.einsum("oc,bcjt->bojt", w1_w, h))              # self.w1(x1)
        if w1_b is not None:
            y = y + w1_b[None, :, None, None]
        y = y / jnp.sqrt(1.0 + eps)                               # BatchNorm2d eval, fresh stats
        h = jnp.maximum(y, 0.0)
    return h                                                      # (B, dim, J, T)


if __name__ == "__main__":
    # Small shapes consistent with GCNBig: dim=128 channels, J=8 joints, T=16 frames
    # (T*J = 128 lane-dense rows), batch=8 so the multi-batch-per-step path (Bblk=4, grid=2)
    # is exercised and both v7x TensorCores get work.
    B, dim, J, T = 8, 128, 8, 16
    bias = True

    key = jax.random.PRNGKey(0)
    kp, kx, kg = jax.random.split(key, 3)
    raw_params = make_params(kp, dim, bias=bias)

    x = jax.random.normal(kx, (B, dim // 2, J, T), jnp.float32)                    # PyTorch NCHW
    g = jax.nn.softmax(jax.random.normal(kg, (B, T, J, J), jnp.float32), axis=-1)  # per-frame adjacency

    out = jax.block_until_ready(gcnbig_forward(x, g, raw_params))
    ref = jax.block_until_ready(reference_forward(x, g, raw_params))

    assert out.shape == (B, dim, J, T), out.shape
    np.testing.assert_allclose(np.asarray(out), np.asarray(ref), rtol=1e-4, atol=1e-4)

    print("KERNEL_OK")
</pallas_src>

<mosaic_0001>
module attributes {stable_mosaic.version = 11 : i64} {
  func.func @gcnbig_kernel(%arg0: i32, %arg1: memref<4x128x64xf32, #tpu.memory_space<vmem>>, %arg2: memref<4x128x128xf32, #tpu.memory_space<vmem>>, %arg3: memref<64x128xf32, #tpu.memory_space<vmem>>, %arg4: memref<1x64xf32, #tpu.memory_space<vmem>>, %arg5: memref<64x256xf32, #tpu.memory_space<vmem>>, %arg6: memref<1x128xf32, #tpu.memory_space<vmem>>, %arg7: memref<128x256xf32, #tpu.memory_space<vmem>>, %arg8: memref<1x128xf32, #tpu.memory_space<vmem>>, %arg9: memref<4x128x128xf32, #tpu.memory_space<vmem>>) attributes {dimension_semantics = [#tpu.dimension_semantics<parallel>], iteration_bounds = array<i64: 2>, scalar_prefetch = 0 : i64, scratch_operands = 0 : i64, tpu.core_type = #tpu.core_type<tc>, window_params = [{transform_indices = @transform_0, window_bounds = array<i64: 4, 128, 64>}, {transform_indices = @transform_1, window_bounds = array<i64: 4, 128, 128>}, {pipeline_mode = #tpu.pipeline_mode<synchronous>, transform_indices = @transform_2, window_bounds = array<i64: 64, 128>}, {pipeline_mode = #tpu.pipeline_mode<synchronous>, transform_indices = @transform_3, window_bounds = array<i64: 1, 64>}, {pipeline_mode = #tpu.pipeline_mode<synchronous>, transform_indices = @transform_4, window_bounds = array<i64: 64, 256>}, {pipeline_mode = #tpu.pipeline_mode<synchronous>, transform_indices = @transform_5, window_bounds = array<i64: 1, 128>}, {pipeline_mode = #tpu.pipeline_mode<synchronous>, transform_indices = @transform_6, window_bounds = array<i64: 128, 256>}, {pipeline_mode = #tpu.pipeline_mode<synchronous>, transform_indices = @transform_7, window_bounds = array<i64: 1, 128>}, {transform_indices = @transform_8, window_bounds = array<i64: 4, 128, 128>}]} {
    %c0 = arith.constant 0 : index
    %c0_0 = arith.constant 0 : index
    %c0_1 = arith.constant 0 : index
    %0 = vector.load %arg2[%c0, %c0_0, %c0_1] : memref<4x128x128xf32, #tpu.memory_space<vmem>>, vector<4x128x128xf32>
    %c0_2 = arith.constant 0 : index
    %c0_3 = arith.constant 0 : index
    %c0_4 = arith.constant 0 : index
    %1 = vector.load %arg1[%c0_2, %c0_3, %c0_4] : memref<4x128x64xf32, #tpu.memory_space<vmem>>, vector<4x128x64xf32>
    %2 = vector.shape_cast %1 : vector<4x128x64xf32> to vector<512x64xf32>
    %c0_5 = arith.constant 0 : index
    %c0_6 = arith.constant 0 : index
    %3 = vector.load %arg3[%c0_5, %c0_6] : memref<64x128xf32, #tpu.memory_space<vmem>>, vector<64x128xf32>
    %cst = arith.constant dense<0.000000e+00> : vector<512x128xf32>
    %4 = tpu.matmul %2, %3, %cst {dimension_numbers = #tpu.dot_dimension_numbers<[1], [0], [0], [1], [0, 0, 1, 1], [], []>} : vector<512x64xf32>, vector<64x128xf32>, vector<512x128xf32> -> vector<512x128xf32>
    %5 = vector.shape_cast %4 : vector<512x128xf32> to vector<4x128x128xf32>
    %6 = vector.extract_strided_slice %5 {offsets = [0, 0, 0], sizes = [4, 128, 64], strides = [1, 1, 1]} : vector<4x128x128xf32> to vector<4x128x64xf32>
    "tpu.trace_start"() <{level = 10 : i32, message = "bmn,bnc->bmc"}> : () -> ()
    %cst_7 = arith.constant dense<0.000000e+00> : vector<4x128x64xf32>
    %7 = tpu.matmul %0, %6, %cst_7 {dimension_numbers = #tpu.dot_dimension_numbers<[2], [1], [1], [2], [0, 0, 0, 1, 1, 2], [0], [0]>} : vector<4x128x128xf32>, vector<4x128x64xf32>, vector<4x128x64xf32> -> vector<4x128x64xf32>
    "tpu.trace_stop"() : () -> ()
    %8 = vector.extract_strided_slice %5 {offsets = [0, 0, 64], sizes = [4, 128, 64], strides = [1, 1, 1]} : vector<4x128x128xf32> to vector<4x128x64xf32>
    %9 = arith.addf %7, %8 : vector<4x128x64xf32>
    %c0_8 = arith.constant 0 : index
    %c0_9 = arith.constant 0 : index
    %10 = vector.load %arg4[%c0_8, %c0_9] : memref<1x64xf32, #tpu.memory_space<vmem>>, vector<1x64xf32>
    %11 = vector.shape_cast %10 : vector<1x64xf32> to vector<1x1x64xf32>
    %12 = vector.broadcast %11 : vector<1x1x64xf32> to vector<4x128x64xf32>
    %13 = arith.addf %9, %12 : vector<4x128x64xf32>
    %cst_10 = arith.constant 0.000000e+00 : f32
    %14 = vector.broadcast %cst_10 : f32 to vector<4x128x64xf32>
    %15 = arith.maximumf %13, %14 : vector<4x128x64xf32>
    %16 = vector.shape_cast %15 : vector<4x128x64xf32> to vector<512x64xf32>
    %c0_11 = arith.constant 0 : index
    %c0_12 = arith.constant 0 : index
    %17 = vector.load %arg5[%c0_11, %c0_12] : memref<64x256xf32, #tpu.memory_space<vmem>>, vector<64x256xf32>
    %cst_13 = arith.constant dense<0.000000e+00> : vector<512x256xf32>
    %18 = tpu.matmul %16, %17, %cst_13 {dimension_numbers = #tpu.dot_dimension_numbers<[1], [0], [0], [1], [0, 0, 1, 1], [], []>} : vector<512x64xf32>, vector<64x256xf32>, vector<512x256xf32> -> vector<512x256xf32>
    %19 = vector.shape_cast %18 : vector<512x256xf32> to vector<4x128x256xf32>
    %20 = vector.extract_strided_slice %19 {offsets = [0, 0, 0], sizes = [4, 128, 128], strides = [1, 1, 1]} : vector<4x128x256xf32> to vector<4x128x128xf32>
    "tpu.trace_start"() <{level = 10 : i32, message = "bmn,bnc->bmc"}> : () -> ()
    %cst_14 = arith.constant dense<0.000000e+00> : vector<4x128x128xf32>
    %21 = tpu.matmul %0, %20, %cst_14 {dimension_numbers = #tpu.dot_dimension_numbers<[2], [1], [1], [2], [0, 0, 0, 1, 1, 2], [0], [0]>} : vector<4x128x128xf32>, vector<4x128x128xf32>, vector<4x128x128xf32> -> vector<4x128x128xf32>
    "tpu.trace_stop"() : () -> ()
    %22 = vector.extract_strided_slice %19 {offsets = [0, 0, 128], sizes = [4, 128, 128], strides = [1, 1, 1]} : vector<4x128x256xf32> to vector<4x128x128xf32>
    %23 = arith.addf %21, %22 : vector<4x128x128xf32>
    %c0_15 = arith.constant 0 : index
    %c0_16 = arith.constant 0 : index
    %24 = vector.load %arg6[%c0_15, %c0_16] : memref<1x128xf32, #tpu.memory_space<vmem>>, vector<1x128xf32>
    %25 = vector.shape_cast %24 : vector<1x128xf32> to vector<1x1x128xf32>
    %26 = vector.broadcast %25 : vector<1x1x128xf32> to vector<4x128x128xf32>
    %27 = arith.addf %23, %26 : vector<4x128x128xf32>
    %cst_17 = arith.constant 0.000000e+00 : f32
    %28 = vector.broadcast %cst_17 : f32 to vector<4x128x128xf32>
    %29 = arith.maximumf %27, %28 : vector<4x128x128xf32>
    %30 = vector.shape_cast %29 : vector<4x128x128xf32> to vector<512x128xf32>
    %c0_18 = arith.constant 0 : index
    %c0_19 = arith.constant 0 : index
    %31 = vector.load %arg7[%c0_18, %c0_19] : memref<128x256xf32, #tpu.memory_space<vmem>>, vector<128x256xf32>
    %cst_20 = arith.constant dense<0.000000e+00> : vector<512x256xf32>
    %32 = tpu.matmul %30, %31, %cst_20 {dimension_numbers = #tpu.dot_dimension_numbers<[1], [0], [0], [1], [0, 0, 1, 1], [], []>} : vector<512x128xf32>, vector<128x256xf32>, vector<512x256xf32> -> vector<512x256xf32>
    %33 = vector.shape_cast %32 : vector<512x256xf32> to vector<4x128x256xf32>
    %34 = vector.extract_strided_slice %33 {offsets = [0, 0, 0], sizes = [4, 128, 128], strides = [1, 1, 1]} : vector<4x128x256xf32> to vector<4x128x128xf32>
    "tpu.trace_start"() <{level = 10 : i32, message = "bmn,bnc->bmc"}> : () -> ()
    %cst_21 = arith.constant dense<0.000000e+00> : vector<4x128x128xf32>
    %35 = tpu.matmul %0, %34, %cst_21 {dimension_numbers = #tpu.dot_dimension_numbers<[2], [1], [1], [2], [0, 0, 0, 1, 1, 2], [0], [0]>} : vector<4x128x128xf32>, vector<4x128x128xf32>, vector<4x128x128xf32> -> vector<4x128x128xf32>
    "tpu.trace_stop"() : () -> ()
    %36 = vector.extract_strided_slice %33 {offsets = [0, 0, 128], sizes = [4, 128, 128], strides = [1, 1, 1]} : vector<4x128x256xf32> to vector<4x128x128xf32>
    %37 = arith.addf %35, %36 : vector<4x128x128xf32>
    %c0_22 = arith.constant 0 : index
    %c0_23 = arith.constant 0 : index
    %38 = vector.load %arg8[%c0_22, %c0_23] : memref<1x128xf32, #tpu.memory_space<vmem>>, vector<1x128xf32>
    %39 = vector.shape_cast %38 : vector<1x128xf32> to vector<1x1x128xf32>
    %40 = vector.broadcast %39 : vector<1x1x128xf32> to vector<4x128x128xf32>
    %41 = arith.addf %37, %40 : vector<4x128x128xf32>
    %cst_24 = arith.constant 0.000000e+00 : f32
    %42 = vector.broadcast %cst_24 : f32 to vector<4x128x128xf32>
    %43 = arith.maximumf %41, %42 : vector<4x128x128xf32>
    %c0_25 = arith.constant 0 : index
    %c0_26 = arith.constant 0 : index
    %c0_27 = arith.constant 0 : index
    %44 = vector.load %arg9[%c0_25, %c0_26, %c0_27] : memref<4x128x128xf32, #tpu.memory_space<vmem>>, vector<4x128x128xf32>
    tpu.vector_store %arg9[%c0_25, %c0_26, %c0_27], %43 {strides = array<i32>} : memref<4x128x128xf32, #tpu.memory_space<vmem>>, vector<4x128x128xf32>,
    return
  }
  func.func @transform_0(%arg0: i32) -> (i32, i32, i32) {
    %c0_i32 = arith.constant 0 : i32
    %c0_i32_0 = arith.constant 0 : i32
    %c0_i32_1 = arith.constant 0 : i32
    return %arg0, %c0_i32, %c0_i32_0 : i32, i32, i32
  }
  func.func @transform_1(%arg0: i32) -> (i32, i32, i32) {
    %c0_i32 = arith.constant 0 : i32
    %c0_i32_0 = arith.constant 0 : i32
    %c0_i32_1 = arith.constant 0 : i32
    return %arg0, %c0_i32, %c0_i32_0 : i32, i32, i32
  }
  func.func @transform_2(%arg0: i32) -> (i32, i32) {
    %c0_i32 = arith.constant 0 : i32
    %c0_i32_0 = arith.constant 0 : i32
    %c0_i32_1 = arith.constant 0 : i32
    return %c0_i32, %c0_i32_0 : i32, i32
  }
  func.func @transform_3(%arg0: i32) -> (i32, i32) {
    %c0_i32 = arith.constant 0 : i32
    %c0_i32_0 = arith.constant 0 : i32
    %c0_i32_1 = arith.constant 0 : i32
    return %c0_i32, %c0_i32_0 : i32, i32
  }
  func.func @transform_4(%arg0: i32) -> (i32, i32) {
    %c0_i32 = arith.constant 0 : i32
    %c0_i32_0 = arith.constant 0 : i32
    %c0_i32_1 = arith.constant 0 : i32
    return %c0_i32, %c0_i32_0 : i32, i32
  }
  func.func @transform_5(%arg0: i32) -> (i32, i32) {
    %c0_i32 = arith.constant 0 : i32
    %c0_i32_0 = arith.constant 0 : i32
    %c0_i32_1 = arith.constant 0 : i32
    return %c0_i32, %c0_i32_0 : i32, i32
  }
  func.func @transform_6(%arg0: i32) -> (i32, i32) {
    %c0_i32 = arith.constant 0 : i32
    %c0_i32_0 = arith.constant 0 : i32
    %c0_i32_1 = arith.constant 0 : i32
    return %c0_i32, %c0_i32_0 : i32, i32
  }
  func.func @transform_7(%arg0: i32) -> (i32, i32) {
    %c0_i32 = arith.constant 0 : i32
    %c0_i32_0 = arith.constant 0 : i32
    %c0_i32_1 = arith.constant 0 : i32
    return %c0_i32, %c0_i32_0 : i32, i32
  }
  func.func @transform_8(%arg0: i32) -> (i32, i32, i32) {
    %c0_i32 = arith.constant 0 : i32
    %c0_i32_0 = arith.constant 0 : i32
    %c0_i32_1 = arith.constant 0 : i32
    return %arg0, %c0_i32, %c0_i32_0 : i32, i32, i32
  }
}

</mosaic_0001>

<bundles_post_ra>
// kernel: tpu_custom_call.1
= control target key start
LH: loop header
LB: loop body
LE: loop exit
PB: predicated region body
PF: predicated region fallthrough
CT: control target
= control target key end

     0   :  { %13 = vsyncpa [#allocation3], 0  ;;  %s8537_s0 = inlined_call_operand.vmem [shape: f32[8,128,64], index: 0, kind: input, shape index: {}]   ;;  %s8538_s1 = inlined_call_operand.vmem [shape: f32[8,128,128], index: 1, kind: input, shape index: {}]   ;;  %s8539_s2 = inlined_call_operand.vmem [shape: f32[64,128], index: 2, kind: input, shape index: {}]   ;;  %s8540_s3 = inlined_call_operand.vmem [shape: f32[1,64], index: 3, kind: input, shape index: {}]   ;;  %s8541_s4 = inlined_call_operand.vmem [shape: f32[64,256], index: 4, kind: input, shape index: {}]   ;;  %s8542_s5 = inlined_call_operand.vmem [shape: f32[1,128], index: 5, kind: input, shape index: {}]   ;;  %s8543_s6 = inlined_call_operand.vmem [shape: f32[128,256], index: 6, kind: input, shape index: {}]   ;;  %s8544_s7 = inlined_call_operand.vmem [shape: f32[1,128], index: 7, kind: input, shape index: {}]   ;;  %s8545_s8 = inlined_call_operand.hbm [shape: f32[8,128,128], index: 8, kind: output, shape index: {}]  }
   0x1   :  { %15 = vsyncpa [#allocation3 + $0x1], 0  ;;  %s6865_s27 = smov 0   ;;  %s6867_s28 = smov 0  }
   0x2   :  { %s6869_s29 = smov 0   ;;  %s6871_s30 = smov 0  }
   0x3 LB: > { %s6886_s9 = sadd.s32 4294967295, %s6813_s30   ;;  %s4741_s10 = sadd.s32 4294967294, %s6813_s30   ;;  %s6813_s30 = sphi %s6871_s30, %s8616_s30   ;;  %s6809_s29 = sphi %s6869_s29, %s8615_s29   ;;  %s6805_s28 = sphi %s6867_s28, %s8614_s28   ;;  %s6801_s27 = sphi %s6865_s27, %s8613_s27  }
   0x4   : > { %s6890_s11 = sadd.s32 1, %s6813_s30   ;;  %s206_s12 = sadd.s32 1, %s6809_s29 }
   0x5   : > { %s203_s13 = ssub.s32 %s6813_s30, %s6890_s11  ;;  %p216_p0 = scmp.ne.s32.totalorder %s6809_s29, %s6805_s28 }
   0x6   : > { %p204_p1 = scmp.eq.s32.totalorder %s203_s13, 0  ;;  %p217_p2 = scmp.eq.s32.totalorder %s6886_s9, 1 }
   0x7   : > { %p222_p3 = scmp.ne.s32.totalorder %s6805_s28, %s6801_s27  ;;  %p223_p4 = scmp.eq.s32.totalorder %s4741_s10, 1 }
   0x8   : > { %s6901_s14 = scalar_select %p204_p1, %s6809_s29, %s206_s12  }
   0x9   : > { %p6903_p5 = por %p217_p2, %p216_p0  ;;  %p6907_p6 = por %p223_p4, %p222_p3 }
   0xa   : > { %p4744_p7 = scmp.ge.s32.totalorder %s6813_s30, 1  ;;  %p279_p8 = scmp.lt.s32.totalorder %s6813_s30, 3 }
   0xc   : > { %p280_p9 = pnand %p4744_p7, %p279_p8 }
   0xe   : > { %283 = sbr.rel (%p280_p9) target bundleno = 1740 (0x6cc), region = 52 }
  0x15   : > { %v463_v0 = vld [vmem:[%s8539_s2] sm:$0xff]  ;;  %v464_v1 = vld [vmem:[%s8539_s2 + $0x8] sm:$0xff]  ;;  %v465_v2 = vld [vmem:[%s8539_s2 + $0x10] sm:$0xff]  ;;  %s4746_s23 = sshll.u32 %s6886_s9, 2  ;;  %vm471_vm0 = vcmask 523264   ;;  %s317_s22 = sand.u32 1, %s6805_s28  }
  0x16   : > { %v6133_v3 = vpack.c.bf16 %v464_v1, %v463_v0  ;;  %v466_v4 = vld [vmem:[%s8539_s2 + $0x18] sm:$0xff]  ;;  %p321_p10 = scmp.lt.s32.totalorder %s4746_s23, 7  ;;  %v467_v6 = vld [vmem:[%s8539_s2 + $0x20] sm:$0xff]  ;;  %v468_v7 = vld [vmem:[%s8539_s2 + $0x28] sm:$0xff]  ;;  %s4745_s26 = sshll.u32 %s317_s22, 9 }
  0x17   : > { %v6137_v5 = vpack.c.bf16 %v466_v4, %v465_v2  ;;  %v6141_v8 = vpack.c.bf16 %v468_v7, %v467_v6  ;;  %v469_v9 = vld [vmem:[%s8539_s2 + $0x30] sm:$0xff]  ;;  %v470_v10 = vld [vmem:[%s8539_s2 + $0x38] sm:$0xff]  ;;  %s6817_s20 = smov [#allocation2]  }
  0x18   : > { %6134 = vmatprep.subr.bf16.mxu0 %v6133_v3  ;;  %s8618_s23 = smov (!%p321_p10, %s4746_s23), 7  ;;  %v6145_v12 = vpack.c.bf16 %v470_v10, %v469_v9  ;;  %s6755_s21 = sshll.u32 %s6817_s20, 4  ;;  %s6756_s21 = int_to_ptr.vmem [resolvable:$false] %s6755_s21 }
  0x19   : > { %6136 = vmatpush3.bf16.msra.mxu0 %v6133_v3  ;;  %s4889_s17 = sshll.u32 %s8618_s23, 7  ;;  %s6815_s23 = smov 64  }
  0x1a   : > { %6138 = vmatprep.subr.bf16.mxu0 %v6137_v5  ;;  %s6946_s25 = scalar_lea.vmem %s8537_s0, %s4889_s17  ;;  %s7074_s12 = scalar_lea.vmem %s8538_s1, %s4889_s17 }
  0x1b   : > { %v399_v11 = vld [vmem:[%s6946_s25] sm:$0xff]  ;;  %v400_v13 = vld [vmem:[%s6946_s25 + $0x8] sm:$0xff]  ;;  %v401_v14 = vld [vmem:[%s6946_s25 + $0x10] sm:$0xff]  ;;  %s6757_s24 = scalar_lea.vmem %s6756_s21, 16384 }
  0x1c   : > { %5365 = vmatprep.mubr.msk.f32.mxu0 %vm471_vm0, %v399_v11  ;;  %v402_v15 = vld [vmem:[%s6946_s25 + $0x18] sm:$0xff]  ;;  %v403_v16 = vld [vmem:[%s6946_s25 + $0x20] sm:$0xff]  ;;  %v404_v17 = vld [vmem:[%s6946_s25 + $0x28] sm:$0xff] }
  0x1d   : > { %6140 = vmatpush3.bf16.msra.mxu0 %v6137_v5  ;;  %v405_v18 = vld [vmem:[%s6946_s25 + $0x30] sm:$0xff]  ;;  %v406_v19 = vld [vmem:[%s6946_s25 + $0x38] sm:$0xff]  ;;  %v407_v20 = vld [vmem:[%s6946_s25 + $0x40] sm:$0xff] }
  0x1e   : > { %6142 = vmatprep.subr.bf16.mxu0 %v6141_v8  ;;  %v408_v21 = vld [vmem:[%s6946_s25 + $0x48] sm:$0xff]  ;;  %v409_v22 = vld [vmem:[%s6946_s25 + $0x50] sm:$0xff]  ;;  %v410_v23 = vld [vmem:[%s6946_s25 + $0x58] sm:$0xff] }
  0x1f   : > { %v411_v24 = vld [vmem:[%s6946_s25 + $0x60] sm:$0xff]  ;;  %v412_v25 = vld [vmem:[%s6946_s25 + $0x68] sm:$0xff]  ;;  %v413_v26 = vld [vmem:[%s6946_s25 + $0x70] sm:$0xff] }
  0x20   : > { %v414_v27 = vld [vmem:[%s6946_s25 + $0x78] sm:$0xff]  ;;  %v415_v28 = vld [vmem:[%s6946_s25 + $0x80] sm:$0xff]  ;;  %v416_v29 = vld [vmem:[%s6946_s25 + $0x88] sm:$0xff] }
  0x21   : > { %6144 = vmatpush3.bf16.msra.mxu0 %v6141_v8  ;;  %v417_v30 = vld [vmem:[%s6946_s25 + $0x90] sm:$0xff]  ;;  %v418_v31 = vld [vmem:[%s6946_s25 + $0x98] sm:$0xff]  ;;  %v419_v32 = vld [vmem:[%s6946_s25 + $0xa0] sm:$0xff] }
  0x22   : > { %6146 = vmatprep.subr.bf16.mxu0 %v6145_v12  ;;  %v420_v33 = vld [vmem:[%s6946_s25 + $0xa8] sm:$0xff]  ;;  %v421_v34 = vld [vmem:[%s6946_s25 + $0xb0] sm:$0xff]  ;;  %v422_v35 = vld [vmem:[%s6946_s25 + $0xb8] sm:$0xff] }
  0x23   : > { %v423_v36 = vld [vmem:[%s6946_s25 + $0xc0] sm:$0xff]  ;;  %v424_v37 = vld [vmem:[%s6946_s25 + $0xc8] sm:$0xff]  ;;  %v425_v38 = vld [vmem:[%s6946_s25 + $0xd0] sm:$0xff] }
  0x24   : > { %v426_v39 = vld [vmem:[%s6946_s25 + $0xd8] sm:$0xff]  ;;  %v427_v40 = vld [vmem:[%s6946_s25 + $0xe0] sm:$0xff]  ;;  %v428_v41 = vld [vmem:[%s6946_s25 + $0xe8] sm:$0xff] }
  0x25   : > { %6148 = vmatpush3.bf16.msra.mxu0 %v6145_v12  ;;  %v429_v42 = vld [vmem:[%s6946_s25 + $0xf0] sm:$0xff]  ;;  %v430_v43 = vld [vmem:[%s6946_s25 + $0xf8] sm:$0xff]  ;;  %v431_v44 = vld [vmem:[%s6946_s25 + $0x100] sm:$0xff] }
  0x26   : > { %v432_v45 = vld [vmem:[%s6946_s25 + $0x108] sm:$0xff]  ;;  %v433_v46 = vld [vmem:[%s6946_s25 + $0x110] sm:$0xff]  ;;  %v434_v47 = vld [vmem:[%s6946_s25 + $0x118] sm:$0xff] }
  0x27   : > { %v435_v48 = vld [vmem:[%s6946_s25 + $0x120] sm:$0xff]  ;;  %v436_v49 = vld [vmem:[%s6946_s25 + $0x128] sm:$0xff]  ;;  %v437_v50 = vld [vmem:[%s6946_s25 + $0x130] sm:$0xff] }
  0x28   : > { %5366 = vmatmul.mubr.msk.f32.vlgmr.msra.gmra.mrb[0].mxu0 %vm471_vm0, %v400_v13  ;;  %v438_v51 = vld [vmem:[%s6946_s25 + $0x138] sm:$0xff]  ;;  %v439_v52 = vld [vmem:[%s6946_s25 + $0x140] sm:$0xff]  ;;  %v440_v53 = vld [vmem:[%s6946_s25 + $0x148] sm:$0xff] }
  0x29   : > { %5368 = vmatprep.mubr.msk.f32.mxu0 %vm471_vm0, %v401_v14  ;;  %v441_v54 = vld [vmem:[%s6946_s25 + $0x150] sm:$0xff]  ;;  %v442_v55 = vld [vmem:[%s6946_s25 + $0x158] sm:$0xff]  ;;  %v443_v56 = vld [vmem:[%s6946_s25 + $0x160] sm:$0xff] }
  0x2a   : > { %v444_v57 = vld [vmem:[%s6946_s25 + $0x168] sm:$0xff]  ;;  %v445_v58 = vld [vmem:[%s6946_s25 + $0x170] sm:$0xff]  ;;  %v446_v59 = vld [vmem:[%s6946_s25 + $0x178] sm:$0xff] }
  0x2b   : > { %v447_v60 = vld [vmem:[%s6946_s25 + $0x180] sm:$0xff]  ;;  %v448_v61 = vld [vmem:[%s6946_s25 + $0x188] sm:$0xff]  ;;  %v449_v62 = vld [vmem:[%s6946_s25 + $0x190] sm:$0xff] }
  0x2c   : > { %5369 = vmatmul.mubr.msk.f32.gmra.mrb[2].mxu0 %vm471_vm0, %v402_v15  ;;  %v450_v63 = vld [vmem:[%s6946_s25 + $0x198] sm:$0xff]  ;;  %v451_v0 = vld [vmem:[%s6946_s25 + $0x1a0] sm:$0xff]  ;;  %v452_v1 = vld [vmem:[%s6946_s25 + $0x1a8] sm:$0xff] }
  0x2d   : > { %5371 = vmatprep.mubr.msk.f32.mxu0 %vm471_vm0, %v403_v16  ;;  %v453_v2 = vld [vmem:[%s6946_s25 + $0x1b0] sm:$0xff]  ;;  %v454_v3 = vld [vmem:[%s6946_s25 + $0x1b8] sm:$0xff]  ;;  %v455_v4 = vld [vmem:[%s6946_s25 + $0x1c0] sm:$0xff] }
  0x2e   : > { %v456_v5 = vld [vmem:[%s6946_s25 + $0x1c8] sm:$0xff]  ;;  %v457_v6 = vld [vmem:[%s6946_s25 + $0x1d0] sm:$0xff]  ;;  %v458_v7 = vld [vmem:[%s6946_s25 + $0x1d8] sm:$0xff] }
  0x2f   : > { %v459_v8 = vld [vmem:[%s6946_s25 + $0x1e0] sm:$0xff]  ;;  %v460_v9 = vld [vmem:[%s6946_s25 + $0x1e8] sm:$0xff]  ;;  %v461_v11 = vld [vmem:[%s6946_s25 + $0x1f0] sm:$0xff] }
  0x30   : > { %5372 = vmatmul.mubr.msk.f32.gmra.mrb[4].mxu0 %vm471_vm0, %v404_v17  ;;  %v7079_v10 = vld [vmem:[%s7074_s12] sm:$0xff]  ;;  %v462_v12 = vld [vmem:[%s6946_s25 + $0x1f8] sm:$0xff] }
  0x31   : > { %5374 = vmatprep.mubr.msk.f32.mxu0 %vm471_vm0, %v405_v18  ;;  %5493 = vmatprep.mubr.f32.mxu1 %v7079_v10 }
  0x34   : > { %5375 = vmatmul.mubr.msk.f32.gmra.mrb[6].mxu0 %vm471_vm0, %v406_v19 }
  0x35   : > { %5377 = vmatprep.mubr.msk.f32.mxu0 %vm471_vm0, %v407_v20 }
  0x38   : > { %5378 = vmatmul.mubr.msk.f32.gmra.mrb[8].mxu0 %vm471_vm0, %v408_v21 }
  0x39   : > { %5380 = vmatprep.mubr.msk.f32.mxu0 %vm471_vm0, %v409_v22 }
  0x3c   : > { %5381 = vmatmul.mubr.msk.f32.gmra.mrb[10].mxu0 %vm471_vm0, %v410_v23 }
  0x3d   : > { %5383 = vmatprep.mubr.msk.f32.mxu0 %vm471_vm0, %v411_v24 }
  0x40   : > { %5384 = vmatmul.mubr.msk.f32.gmra.mrb[12].mxu0 %vm471_vm0, %v412_v25 }
  0x41   : > { %5386 = vmatprep.mubr.msk.f32.mxu0 %vm471_vm0, %v413_v26 }
  0x44   : > { %5387 = vmatmul.mubr.msk.f32.gmra.mrb[14].mxu0 %vm471_vm0, %v414_v27 }
  0x45   : > { %5389 = vmatprep.mubr.msk.f32.mxu0 %vm471_vm0, %v415_v28 }
  0x48   : > { %5390 = vmatmul.mubr.msk.f32.gmra.mrb[16].mxu0 %vm471_vm0, %v416_v29 }
  0x49   : > { %5392 = vmatprep.mubr.msk.f32.mxu0 %vm471_vm0, %v417_v30 }
  0x4c   : > { %5393 = vmatmul.mubr.msk.f32.gmra.mrb[18].mxu0 %vm471_vm0, %v418_v31 }
  0x4d   : > { %5395 = vmatprep.mubr.msk.f32.mxu0 %vm471_vm0, %v419_v32 }
  0x50   : > { %5396 = vmatmul.mubr.msk.f32.gmra.mrb[20].mxu0 %vm471_vm0, %v420_v33 }
  0x51   : > { %5398 = vmatprep.mubr.msk.f32.mxu0 %vm471_vm0, %v421_v34 }
  0x54   : > { %5399 = vmatmul.mubr.msk.f32.gmra.mrb[22].mxu0 %vm471_vm0, %v422_v35 }
  0x55   : > { %5401 = vmatprep.mubr.msk.f32.mxu0 %vm471_vm0, %v423_v36 }
  0x58   : > { %5402 = vmatmul.mubr.msk.f32.gmra.mrb[24].mxu0 %vm471_vm0, %v424_v37 }
  0x59   : > { %5404 = vmatprep.mubr.msk.f32.mxu0 %vm471_vm0, %v425_v38 }
  0x5c   : > { %5405 = vmatmul.mubr.msk.f32.gmra.mrb[26].mxu0 %vm471_vm0, %v426_v39  ;;  %v336_v39 = vld [vmem:[%s7074_s12 + $0x8] sm:$0xff] }
  0x5d   : > { %5407 = vmatprep.mubr.msk.f32.mxu0 %vm471_vm0, %v427_v40 }
  0x60   : > { %5408 = vmatmul.mubr.msk.f32.gmra.mrb[28].mxu0 %vm471_vm0, %v428_v41  ;;  %v337_v41 = vld [vmem:[%s7074_s12 + $0x10] sm:$0xff] }
  0x61   : > { %5410 = vmatprep.mubr.msk.f32.mxu0 %vm471_vm0, %v429_v42 }
  0x64   : > { %5411 = vmatmul.mubr.msk.f32.gmra.mrb[30].mxu0 %vm471_vm0, %v430_v43 }
  0x65   : > { %5413 = vmatprep.mubr.msk.f32.mxu0 %vm471_vm0, %v431_v44  ;;  %v338_v44 = vld [vmem:[%s7074_s12 + $0x18] sm:$0xff] }
  0x68   : > { %5414 = vmatmul.mubr.msk.f32.gmra.mrb[32].mxu0 %vm471_vm0, %v432_v45 }
  0x69   : > { %5416 = vmatprep.mubr.msk.f32.mxu0 %vm471_vm0, %v433_v46  ;;  %v339_v46 = vld [vmem:[%s7074_s12 + $0x20] sm:$0xff] }
  0x6c   : > { %5417 = vmatmul.mubr.msk.f32.gmra.mrb[34].mxu0 %vm471_vm0, %v434_v47 }
  0x6d   : > { %5419 = vmatprep.mubr.msk.f32.mxu0 %vm471_vm0, %v435_v48 }
  0x70   : > { %5420 = vmatmul.mubr.msk.f32.gmra.mrb[36].mxu0 %vm471_vm0, %v436_v49  ;;  %v340_v49 = vld [vmem:[%s7074_s12 + $0x28] sm:$0xff] }
  0x71   : > { %5422 = vmatprep.mubr.msk.f32.mxu0 %vm471_vm0, %v437_v50 }
  0x74   : > { %5423 = vmatmul.mubr.msk.f32.gmra.mrb[38].mxu0 %vm471_vm0, %v438_v51  ;;  %v341_v51 = vld [vmem:[%s7074_s12 + $0x30] sm:$0xff] }
  0x75   : > { %5425 = vmatprep.mubr.msk.f32.mxu0 %vm471_vm0, %v439_v52 }
  0x78   : > { %5426 = vmatmul.mubr.msk.f32.gmra.mrb[40].mxu0 %vm471_vm0, %v440_v53 }
  0x79   : > { %5428 = vmatprep.mubr.msk.f32.mxu0 %vm471_vm0, %v441_v54  ;;  %v342_v54 = vld [vmem:[%s7074_s12 + $0x38] sm:$0xff] }
  0x7c   : > { %5429 = vmatmul.mubr.msk.f32.gmra.mrb[42].mxu0 %vm471_vm0, %v442_v55 }
  0x7d   : > { %5431 = vmatprep.mubr.msk.f32.mxu0 %vm471_vm0, %v443_v56  ;;  %v343_v56 = vld [vmem:[%s7074_s12 + $0x40] sm:$0xff] }
  0x80   : > { %5432 = vmatmul.mubr.msk.f32.gmra.mrb[44].mxu0 %vm471_vm0, %v444_v57 }
  0x81   : > { %5434 = vmatprep.mubr.msk.f32.mxu0 %vm471_vm0, %v445_v58 }
  0x84   : > { %5435 = vmatmul.mubr.msk.f32.gmra.mrb[46].mxu0 %vm471_vm0, %v446_v59  ;;  %v344_v59 = vld [vmem:[%s7074_s12 + $0x48] sm:$0xff] }
  0x85   : > { %5437 = vmatprep.mubr.msk.f32.mxu0 %vm471_vm0, %v447_v60 }
  0x88   : > { %5438 = vmatmul.mubr.msk.f32.gmra.mrb[48].mxu0 %vm471_vm0, %v448_v61  ;;  %v345_v61 = vld [vmem:[%s7074_s12 + $0x50] sm:$0xff] }
  0x89   : > { %5440 = vmatprep.mubr.msk.f32.mxu0 %vm471_vm0, %v449_v62 }
  0x8c   : > { %5441 = vmatmul.mubr.msk.f32.gmra.mrb[50].mxu0 %vm471_vm0, %v450_v63  ;;  %v2021_v63 = vld [vmem:[%s8541_s4 + $0x8] sm:$0xff] }
  0x8d   : > { %5443 = vmatprep.mubr.msk.f32.mxu0 %vm471_vm0, %v451_v0  ;;  %v2023_v0 = vld [vmem:[%s8541_s4 + $0x18] sm:$0xff] }
  0x90   : > { %5444 = vmatmul.mubr.msk.f32.gmra.mrb[52].mxu0 %vm471_vm0, %v452_v1  ;;  %v2020_v1 = vld [vmem:[%s8541_s4] sm:$0xff] }
  0x91   : > { %5446 = vmatprep.mubr.msk.f32.mxu0 %vm471_vm0, %v453_v2 }
  0x94   : > { %5447 = vmatmul.mubr.msk.f32.gmra.mrb[54].mxu0 %vm471_vm0, %v454_v3  ;;  %v346_v3 = vld [vmem:[%s7074_s12 + $0x58] sm:$0xff] }
  0x95   : > { %5449 = vmatprep.mubr.msk.f32.mxu0 %vm471_vm0, %v455_v4  ;;  %v6277_v4 = vpack.c.bf16 %v2023_v0, %v2021_v63  ;;  %v366_v63 = vld [vmem:[%s7074_s12 + $0xf8] sm:$0xff] }
  0x97   : > { %6278 = vmatprep.subr.bf16.mxu0 %v6277_v4  ;;  %v368_v4 = vld [vmem:[%s7074_s12 + $0x108] sm:$0xff] }
  0x98   : > { %5450 = vmatmul.mubr.msk.f32.gmra.mrb[56].mxu0 %vm471_vm0, %v456_v5  ;;  %v2022_v5 = vld [vmem:[%s8541_s4 + $0x10] sm:$0xff] }
  0x99   : > { %5452 = vmatprep.mubr.msk.f32.mxu0 %vm471_vm0, %v457_v6 }
  0x9c   : > { %5453 = vmatmul.mubr.msk.f32.gmra.mrb[58].mxu0 %vm471_vm0, %v458_v7  ;;  %v347_v7 = vld [vmem:[%s7074_s12 + $0x60] sm:$0xff] }
  0x9d   : > { %5455 = vmatprep.mubr.msk.f32.mxu0 %vm471_vm0, %v459_v8  ;;  %v6279_v8 = vpack.c.bf16 %v2022_v5, %v2020_v1  ;;  %v367_v1 = vld [vmem:[%s7074_s12 + $0x100] sm:$0xff] }
  0x9f   : > { %6280 = vmatpush1.bf16.msra.mxu0 %v6279_v8 }
  0xa0   : > { %5456 = vmatmul.mubr.msk.f32.gmra.mrb[60].mxu0 %vm471_vm0, %v460_v9 }
  0xa1   : > { %5458 = vmatprep.mubr.msk.f32.mxu0 %vm471_vm0, %v461_v11  ;;  %v2025_v11 = vld [vmem:[%s8541_s4 + $0x28] sm:$0xff] }
  0xa4   : > { %5459 = vmatmul.mubr.msk.f32.gmra.mrb[62].mxu0 %vm471_vm0, %v462_v12  ;;  %v2027_v12 = vld [vmem:[%s8541_s4 + $0x38] sm:$0xff] }
  0xfb   : > { %v5367_v13 = vpop.f32.mrb[0].mxu0 }
  0xfc   : > { %v730_v14 = vpop.f32.mrb[1].mxu0 }
  0xfd   : > { %1065 = vrot.lane.b32.xlu0 %v730_v14, %s6815_s23  ;;  %v6149_v15 = vpack.c.bf16 %v5367_v13, %v730_v14  ;;  %v348_v14 = vld [vmem:[%s7074_s12 + $0x68] sm:$0xff] }
  0xff   : > { %v5370_v16 = vpop.f32.mrb[2].mxu0  ;;  %6150 = vmatprep.subr.bf16.mxu1 %v6149_v15 }
 0x100   : > { %v740_v17 = vpop.f32.mrb[3].mxu0  ;;  %6152 = vmatpush3.bf16.msra.mxu1 %v6149_v15 }
 0x101   : > { %v6153_v18 = vpack.c.bf16 %v5370_v16, %v740_v17  ;;  %1067 = vrot.lane.b32.xlu0 %v5367_v13, %s6815_s23  ;;  %1069 = vrot.lane.b32.xlu1 %v740_v17, %s6815_s23  ;;  %v6281_v17 = vpack.c.bf16 %v2027_v12, %v2025_v11  ;;  %v371_v12 = vld [vmem:[%s7074_s12 + $0x120] sm:$0xff] }
 0x103   : > { %v5373_v19 = vpop.f32.mrb[4].mxu0  ;;  %6154 = vmatprep.subr.bf16.mxu1 %v6153_v18  ;;  %6282 = vmatprep.subr.bf16.mxu0 %v6281_v17  ;;  %v373_v17 = vld [vmem:[%s7074_s12 + $0x130] sm:$0xff] }
 0x104   : > { %v750_v20 = vpop.f32.mrb[5].mxu0  ;;  %6156 = vmatpush3.bf16.msra.mxu1 %v6153_v18 }
 0x105   : > { %v6157_v21 = vpack.c.bf16 %v5373_v19, %v750_v20  ;;  %1071 = vrot.lane.b32.xlu1 %v5370_v16, %s6815_s23  ;;  %1073 = vrot.lane.b32.xlu0 %v750_v20, %s6815_s23  ;;  %v349_v16 = vld [vmem:[%s7074_s12 + $0x70] sm:$0xff] }
 0x106   : > { %v2026_v20 = vld [vmem:[%s8541_s4 + $0x30] sm:$0xff] }
 0x107   : > { %v5376_v22 = vpop.f32.mrb[6].mxu0  ;;  %6158 = vmatprep.subr.bf16.mxu1 %v6157_v21 }
 0x108   : > { %v760_v23 = vpop.f32.mrb[7].mxu0  ;;  %6160 = vmatpush3.bf16.msra.mxu1 %v6157_v21 }
 0x109   : > { %v6161_v24 = vpack.c.bf16 %v5376_v22, %v760_v23  ;;  %1075 = vrot.lane.b32.xlu1 %v5373_v19, %s6815_s23  ;;  %1077 = vrot.lane.b32.xlu0 %v760_v23, %s6815_s23  ;;  %v2024_v19 = vld [vmem:[%s8541_s4 + $0x20] sm:$0xff] }
 0x10b   : > { %v5379_v25 = vpop.f32.mrb[8].mxu0  ;;  %6162 = vmatprep.subr.bf16.mxu1 %v6161_v24 }
 0x10c   : > { %v770_v26 = vpop.f32.mrb[9].mxu0  ;;  %6164 = vmatpush3.bf16.msra.mxu1 %v6161_v24  ;;  %v351_v24 = vld [vmem:[%s7074_s12 + $0x80] sm:$0xff] }
 0x10d   : > { %v6165_v27 = vpack.c.bf16 %v5379_v25, %v770_v26  ;;  %1079 = vrot.lane.b32.xlu1 %v5376_v22, %s6815_s23  ;;  %1081 = vrot.lane.b32.xlu0 %v770_v26, %s6815_s23  ;;  %v350_v22 = vld [vmem:[%s7074_s12 + $0x78] sm:$0xff] }
 0x10f   : > { %v5382_v28 = vpop.f32.mrb[10].mxu0  ;;  %6166 = vmatprep.subr.bf16.mxu1 %v6165_v27 }
 0x110   : > { %v780_v29 = vpop.f32.mrb[11].mxu0  ;;  %6168 = vmatpush3.bf16.msra.mxu1 %v6165_v27 }
 0x111   : > { %v6169_v30 = vpack.c.bf16 %v5382_v28, %v780_v29  ;;  %1083 = vrot.lane.b32.xlu1 %v5379_v25, %s6815_s23  ;;  %1085 = vrot.lane.b32.xlu0 %v780_v29, %s6815_s23  ;;  %v6283_v25 = vpack.c.bf16 %v2026_v20, %v2024_v19  ;;  %v374_v20 = vld [vmem:[%s7074_s12 + $0x138] sm:$0xff] }
 0x113   : > { %v5385_v31 = vpop.f32.mrb[12].mxu0  ;;  %6170 = vmatprep.subr.bf16.mxu1 %v6169_v30  ;;  %6284 = vmatpush1.bf16.msra.mxu0 %v6283_v25  ;;  %v376_v25 = vld [vmem:[%s7074_s12 + $0x148] sm:$0xff] }
 0x114   : > { %v790_v32 = vpop.f32.mrb[13].mxu0  ;;  %6172 = vmatpush3.bf16.msra.mxu1 %v6169_v30  ;;  %v353_v30 = vld [vmem:[%s7074_s12 + $0x90] sm:$0xff] }
 0x115   : > { %v6173_v33 = vpack.c.bf16 %v5385_v31, %v790_v32  ;;  %1087 = vrot.lane.b32.xlu1 %v5382_v28, %s6815_s23  ;;  %1089 = vrot.lane.b32.xlu0 %v790_v32, %s6815_s23  ;;  %v352_v28 = vld [vmem:[%s7074_s12 + $0x88] sm:$0xff] }
 0x117   : > { %v5388_v34 = vpop.f32.mrb[14].mxu0  ;;  %6174 = vmatprep.subr.bf16.mxu1 %v6173_v33 }
 0x118   : > { %v800_v35 = vpop.f32.mrb[15].mxu0  ;;  %6176 = vmatpush3.bf16.msra.mxu1 %v6173_v33  ;;  %v354_v33 = vld [vmem:[%s7074_s12 + $0x98] sm:$0xff] }
 0x119   : > { %v6177_v36 = vpack.c.bf16 %v5388_v34, %v800_v35  ;;  %1091 = vrot.lane.b32.xlu1 %v5385_v31, %s6815_s23  ;;  %1093 = vrot.lane.b32.xlu0 %v800_v35, %s6815_s23  ;;  %v355_v35 = vld [vmem:[%s7074_s12 + $0xa0] sm:$0xff] }
 0x11b   : > { %v5391_v37 = vpop.f32.mrb[16].mxu0  ;;  %6178 = vmatprep.subr.bf16.mxu1 %v6177_v36 }
 0x11c   : > { %v810_v38 = vpop.f32.mrb[17].mxu0  ;;  %6180 = vmatpush3.bf16.msra.mxu1 %v6177_v36 }
 0x11d   : > { %v6181_v40 = vpack.c.bf16 %v5391_v37, %v810_v38  ;;  %1095 = vrot.lane.b32.xlu1 %v5388_v34, %s6815_s23  ;;  %1274 = vrot.lane.b32.xlu0 %v810_v38, %s6815_s23  ;;  %v356_v38 = vld [vmem:[%s7074_s12 + $0xa8] sm:$0xff] }
 0x11f   : > { %v5394_v42 = vpop.f32.mrb[18].mxu0  ;;  %5494 = vmatmul.mubr.f32.vlgmr.msra.gmra.mrb[0].mxu1 %v336_v39  ;;  %6182 = vmatprep.subr.bf16.mxu1 %v6181_v40 }
 0x120   : > { %v820_v43 = vpop.f32.mrb[19].mxu0  ;;  %6184 = vmatpush3.bf16.msra.mxu1 %v6181_v40  ;;  %5496 = vmatprep.mubr.f32.mxu1 %v337_v41  ;;  %v357_v40 = vld [vmem:[%s7074_s12 + $0xb0] sm:$0xff] }
 0x121   : > { %v6185_v45 = vpack.c.bf16 %v5394_v42, %v820_v43  ;;  %1276 = vrot.lane.b32.xlu1 %v5391_v37, %s6815_s23  ;;  %1278 = vrot.lane.b32.xlu0 %v820_v43, %s6815_s23  ;;  %v358_v43 = vld [vmem:[%s7074_s12 + $0xb8] sm:$0xff] }
 0x123   : > { %v5397_v47 = vpop.f32.mrb[20].mxu0  ;;  %5497 = vmatmul.mubr.f32.gmra.mrb[2].mxu1 %v338_v44  ;;  %6186 = vmatprep.subr.bf16.mxu1 %v6185_v45 }
 0x124   : > { %v830_v48 = vpop.f32.mrb[21].mxu0  ;;  %6188 = vmatpush3.bf16.msra.mxu1 %v6185_v45  ;;  %5499 = vmatprep.mubr.f32.mxu1 %v339_v46  ;;  %v359_v45 = vld [vmem:[%s7074_s12 + $0xc0] sm:$0xff] }
 0x125   : > { %v6189_v50 = vpack.c.bf16 %v5397_v47, %v830_v48  ;;  %1280 = vrot.lane.b32.xlu1 %v5394_v42, %s6815_s23  ;;  %1282 = vrot.lane.b32.xlu0 %v830_v48, %s6815_s23  ;;  %v360_v48 = vld [vmem:[%s7074_s12 + $0xc8] sm:$0xff] }
 0x127   : > { %v5400_v52 = vpop.f32.mrb[22].mxu0  ;;  %5500 = vmatmul.mubr.f32.gmra.mrb[4].mxu1 %v340_v49  ;;  %6190 = vmatprep.subr.bf16.mxu1 %v6189_v50 }
 0x128   : > { %v840_v53 = vpop.f32.mrb[23].mxu0  ;;  %6192 = vmatpush3.bf16.msra.mxu1 %v6189_v50  ;;  %5502 = vmatprep.mubr.f32.mxu1 %v341_v51  ;;  %v361_v50 = vld [vmem:[%s7074_s12 + $0xd0] sm:$0xff] }
 0x129   : > { %v6193_v55 = vpack.c.bf16 %v5400_v52, %v840_v53  ;;  %1284 = vrot.lane.b32.xlu1 %v5397_v47, %s6815_s23  ;;  %1286 = vrot.lane.b32.xlu0 %v840_v53, %s6815_s23  ;;  %v362_v53 = vld [vmem:[%s7074_s12 + $0xd8] sm:$0xff] }
 0x12b   : > { %v5403_v57 = vpop.f32.mrb[24].mxu0  ;;  %5503 = vmatmul.mubr.f32.gmra.mrb[6].mxu1 %v342_v54  ;;  %6194 = vmatprep.subr.bf16.mxu1 %v6193_v55 }
 0x12c   : > { %v850_v58 = vpop.f32.mrb[25].mxu0  ;;  %6196 = vmatpush3.bf16.msra.mxu1 %v6193_v55  ;;  %5505 = vmatprep.mubr.f32.mxu1 %v343_v56  ;;  %v363_v55 = vld [vmem:[%s7074_s12 + $0xe0] sm:$0xff] }
 0x12d   : > { %v6197_v60 = vpack.c.bf16 %v5403_v57, %v850_v58  ;;  %1288 = vrot.lane.b32.xlu1 %v5400_v52, %s6815_s23  ;;  %1290 = vrot.lane.b32.xlu0 %v850_v58, %s6815_s23  ;;  %v364_v58 = vld [vmem:[%s7074_s12 + $0xe8] sm:$0xff] }
 0x12f   : > { %v5406_v62 = vpop.f32.mrb[26].mxu0  ;;  %5506 = vmatmul.mubr.f32.gmra.mrb[8].mxu1 %v344_v59  ;;  %6198 = vmatprep.subr.bf16.mxu1 %v6197_v60 }
 0x130   : > { %v860_v2 = vpop.f32.mrb[27].mxu0  ;;  %6200 = vmatpush3.bf16.msra.mxu1 %v6197_v60  ;;  %5508 = vmatprep.mubr.f32.mxu1 %v345_v61  ;;  %v365_v60 = vld [vmem:[%s7074_s12 + $0xf0] sm:$0xff] }
 0x131   : > { %v6201_v6 = vpack.c.bf16 %v5406_v62, %v860_v2  ;;  %1292 = vrot.lane.b32.xlu1 %v5403_v57, %s6815_s23  ;;  %1294 = vrot.lane.b32.xlu0 %v860_v2, %s6815_s23 }
 0x133   : > { %v5409_v9 = vpop.f32.mrb[28].mxu0  ;;  %5509 = vmatmul.mubr.f32.gmra.mrb[10].mxu1 %v346_v3  ;;  %6202 = vmatprep.subr.bf16.mxu1 %v6201_v6 }
 0x134   : > { %v870_v13 = vpop.f32.mrb[29].mxu0  ;;  %6204 = vmatpush3.bf16.msra.mxu1 %v6201_v6  ;;  %5511 = vmatprep.mubr.f32.mxu1 %v347_v7  ;;  %v369_v6 = vld [vmem:[%s7074_s12 + $0x110] sm:$0xff] }
 0x135   : > { %v6205_v15 = vpack.c.bf16 %v5409_v9, %v870_v13  ;;  %1296 = vrot.lane.b32.xlu1 %v5406_v62, %s6815_s23  ;;  %1298 = vrot.lane.b32.xlu0 %v870_v13, %s6815_s23 }
 0x137   : > { %v5412_v18 = vpop.f32.mrb[30].mxu0  ;;  %5512 = vmatmul.mubr.f32.gmra.mrb[12].mxu1 %v348_v14  ;;  %6206 = vmatprep.subr.bf16.mxu1 %v6205_v15 }
 0x138   : > { %v880_v21 = vpop.f32.mrb[31].mxu0  ;;  %6208 = vmatpush3.bf16.msra.mxu1 %v6205_v15  ;;  %5514 = vmatprep.mubr.f32.mxu1 %v349_v16  ;;  %v372_v15 = vld [vmem:[%s7074_s12 + $0x128] sm:$0xff] }
 0x139   : > { %v6209_v23 = vpack.c.bf16 %v5412_v18, %v880_v21  ;;  %1300 = vrot.lane.b32.xlu1 %v5409_v9, %s6815_s23  ;;  %1302 = vrot.lane.b32.xlu0 %v880_v21, %s6815_s23  ;;  %v370_v9 = vld [vmem:[%s7074_s12 + $0x118] sm:$0xff] }
 0x13b   : > { %v5415_v26 = vpop.f32.mrb[32].mxu0  ;;  %5515 = vmatmul.mubr.f32.gmra.mrb[14].mxu1 %v350_v22  ;;  %6210 = vmatprep.subr.bf16.mxu1 %v6209_v23  ;;  %v375_v22 = vld [vmem:[%s7074_s12 + $0x140] sm:$0xff] }
 0x13c   : > { %v890_v27 = vpop.f32.mrb[33].mxu0  ;;  %6212 = vmatpush3.bf16.msra.mxu1 %v6209_v23  ;;  %5549 = vmatprep.mubr.f32.mxu1 %v351_v24 }
 0x13d   : > { %v6213_v29 = vpack.c.bf16 %v5415_v26, %v890_v27  ;;  %1304 = vrot.lane.b32.xlu1 %v5412_v18, %s6815_s23  ;;  %1483 = vrot.lane.b32.xlu0 %v890_v27, %s6815_s23  ;;  %v377_v27 = vld [vmem:[%s7074_s12 + $0x150] sm:$0xff] }
 0x13f   : > { %v5418_v31 = vpop.f32.mrb[34].mxu0  ;;  %5550 = vmatmul.mubr.f32.vlgmr.msra.gmra.mrb[16].mxu1 %v352_v28  ;;  %6214 = vmatprep.subr.bf16.mxu1 %v6213_v29 }
 0x140   : > { %v900_v32 = vpop.f32.mrb[35].mxu0  ;;  %6216 = vmatpush3.bf16.msra.mxu1 %v6213_v29  ;;  %5552 = vmatprep.mubr.f32.mxu1 %v353_v30  ;;  %v378_v29 = vld [vmem:[%s7074_s12 + $0x158] sm:$0xff] }
 0x141   : > { %v6217_v34 = vpack.c.bf16 %v5418_v31, %v900_v32  ;;  %1485 = vrot.lane.b32.xlu1 %v5415_v26, %s6815_s23  ;;  %1487 = vrot.lane.b32.xlu0 %v900_v32, %s6815_s23  ;;  %v2029_v32 = vld [vmem:[%s8541_s4 + $0x48] sm:$0xff] }
 0x143   : > { %v5421_v36 = vpop.f32.mrb[36].mxu0  ;;  %5553 = vmatmul.mubr.f32.gmra.mrb[18].mxu1 %v354_v33  ;;  %6218 = vmatprep.subr.bf16.mxu1 %v6217_v34  ;;  %v2031_v33 = vld [vmem:[%s8541_s4 + $0x58] sm:$0xff] }
 0x144   : > { %v910_v37 = vpop.f32.mrb[37].mxu0  ;;  %6220 = vmatpush3.bf16.msra.mxu1 %v6217_v34  ;;  %5555 = vmatprep.mubr.f32.mxu1 %v355_v35  ;;  %v6285_v35 = vpack.c.bf16 %v2031_v33, %v2029_v32 }
 0x145   : > { %v6221_v39 = vpack.c.bf16 %v5421_v36, %v910_v37  ;;  %1489 = vrot.lane.b32.xlu1 %v5418_v31, %s6815_s23  ;;  %1491 = vrot.lane.b32.xlu0 %v910_v37, %s6815_s23  ;;  %v379_v31 = vld [vmem:[%s7074_s12 + $0x160] sm:$0xff]  ;;  %v2030_v37 = vld [vmem:[%s8541_s4 + $0x50] sm:$0xff] }
 0x146   : > { %6286 = vmatprep.subr.bf16.mxu0 %v6285_v35 }
 0x147   : > { %v5424_v41 = vpop.f32.mrb[38].mxu0  ;;  %5556 = vmatmul.mubr.f32.gmra.mrb[20].mxu1 %v356_v38  ;;  %6222 = vmatprep.subr.bf16.mxu1 %v6221_v39 }
 0x148   : > { %v920_v42 = vpop.f32.mrb[39].mxu0  ;;  %6224 = vmatpush3.bf16.msra.mxu1 %v6221_v39  ;;  %5558 = vmatprep.mubr.f32.mxu1 %v357_v40  ;;  %v380_v40 = vld [vmem:[%s7074_s12 + $0x168] sm:$0xff] }
 0x149   : > { %v6225_v44 = vpack.c.bf16 %v5424_v41, %v920_v42  ;;  %1493 = vrot.lane.b32.xlu1 %v5421_v36, %s6815_s23  ;;  %1495 = vrot.lane.b32.xlu0 %v920_v42, %s6815_s23  ;;  %v2028_v36 = vld [vmem:[%s8541_s4 + $0x40] sm:$0xff]  ;;  %v2035_v42 = vld [vmem:[%s8541_s4 + $0x78] sm:$0xff] }
 0x14a   : > { %v6287_v38 = vpack.c.bf16 %v2030_v37, %v2028_v36 }
 0x14b   : > { %v5427_v46 = vpop.f32.mrb[40].mxu0  ;;  %5559 = vmatmul.mubr.f32.gmra.mrb[22].mxu1 %v358_v43  ;;  %6226 = vmatprep.subr.bf16.mxu1 %v6225_v44 }
 0x14c   : > { %v930_v47 = vpop.f32.mrb[41].mxu0  ;;  %6228 = vmatpush3.bf16.msra.mxu1 %v6225_v44  ;;  %5561 = vmatprep.mubr.f32.mxu1 %v359_v45  ;;  %v381_v44 = vld [vmem:[%s7074_s12 + $0x170] sm:$0xff] }
 0x14d   : > { %v6229_v49 = vpack.c.bf16 %v5427_v46, %v930_v47  ;;  %1497 = vrot.lane.b32.xlu1 %v5424_v41, %s6815_s23  ;;  %1499 = vrot.lane.b32.xlu0 %v930_v47, %s6815_s23  ;;  %v2033_v41 = vld [vmem:[%s8541_s4 + $0x68] sm:$0xff]  ;;  %v2034_v47 = vld [vmem:[%s8541_s4 + $0x70] sm:$0xff] }
 0x14e   : > { %v6289_v45 = vpack.c.bf16 %v2035_v42, %v2033_v41  ;;  %6288 = vmatpush1.bf16.msra.mxu0 %v6287_v38 }
 0x14f   : > { %v5430_v51 = vpop.f32.mrb[42].mxu0  ;;  %5562 = vmatmul.mubr.f32.gmra.mrb[24].mxu1 %v360_v48  ;;  %6230 = vmatprep.subr.bf16.mxu1 %v6229_v49 }
 0x150   : > { %v940_v52 = vpop.f32.mrb[43].mxu0  ;;  %6232 = vmatpush3.bf16.msra.mxu1 %v6229_v49  ;;  %5564 = vmatprep.mubr.f32.mxu1 %v361_v50 }
 0x151   : > { %v6233_v54 = vpack.c.bf16 %v5430_v51, %v940_v52  ;;  %1501 = vrot.lane.b32.xlu1 %v5427_v46, %s6815_s23  ;;  %1503 = vrot.lane.b32.xlu0 %v940_v52, %s6815_s23  ;;  %v2032_v46 = vld [vmem:[%s8541_s4 + $0x60] sm:$0xff] }
 0x152   : > { %v6291_v49 = vpack.c.bf16 %v2034_v47, %v2032_v46  ;;  %6290 = vmatprep.subr.bf16.mxu0 %v6289_v45 }
 0x153   : > { %v5433_v56 = vpop.f32.mrb[44].mxu0  ;;  %5565 = vmatmul.mubr.f32.gmra.mrb[26].mxu1 %v362_v53  ;;  %6234 = vmatprep.subr.bf16.mxu1 %v6233_v54  ;;  %v383_v53 = vld [vmem:[%s7074_s12 + $0x180] sm:$0xff] }
 0x154   : > { %v950_v57 = vpop.f32.mrb[45].mxu0  ;;  %6236 = vmatpush3.bf16.msra.mxu1 %v6233_v54  ;;  %5567 = vmatprep.mubr.f32.mxu1 %v363_v55  ;;  %v8546_v55 = vmov 0.0  }
 0x155   : > { %v6237_v59 = vpack.c.bf16 %v5433_v56, %v950_v57  ;;  %1505 = vrot.lane.b32.xlu1 %v5430_v51, %s6815_s23  ;;  %1507 = vrot.lane.b32.xlu0 %v950_v57, %s6815_s23  ;;  %v382_v51 = vld [vmem:[%s7074_s12 + $0x178] sm:$0xff]  ;;  %v385_v57 = vld [vmem:[%s7074_s12 + $0x190] sm:$0xff] }
 0x156   : > { %6292 = vmatpush1.bf16.msra.mxu0 %v6291_v49  ;;  %2292 = vmatprep.mubr.f32.mxu0 %v8546_v55 }
 0x157   : > { %v5436_v61 = vpop.f32.mrb[46].mxu0  ;;  %5568 = vmatmul.mubr.f32.gmra.mrb[28].mxu1 %v364_v58  ;;  %6238 = vmatprep.subr.bf16.mxu1 %v6237_v59  ;;  %v386_v58 = vld [vmem:[%s7074_s12 + $0x198] sm:$0xff] }
 0x158   : > { %v960_v62 = vpop.f32.mrb[47].mxu0  ;;  %6240 = vmatpush3.bf16.msra.mxu1 %v6237_v59  ;;  %5570 = vmatprep.mubr.f32.mxu1 %v365_v60  ;;  %v387_v59 = vld [vmem:[%s7074_s12 + $0x1a0] sm:$0xff]  ;;  %v388_v60 = vld [vmem:[%s7074_s12 + $0x1a8] sm:$0xff] }
 0x159   : > { %v6241_v0 = vpack.c.bf16 %v5436_v61, %v960_v62  ;;  %1509 = vrot.lane.b32.xlu1 %v5433_v56, %s6815_s23  ;;  %1511 = vrot.lane.b32.xlu0 %v960_v62, %s6815_s23  ;;  %v384_v56 = vld [vmem:[%s7074_s12 + $0x188] sm:$0xff]  ;;  %v390_v62 = vld [vmem:[%s7074_s12 + $0x1b8] sm:$0xff] }
 0x15b   : > { %v5439_v2 = vpop.f32.mrb[48].mxu0  ;;  %5571 = vmatmul.mubr.f32.gmra.mrb[30].mxu1 %v366_v63  ;;  %6242 = vmatprep.subr.bf16.mxu1 %v6241_v0  ;;  %v391_v63 = vld [vmem:[%s7074_s12 + $0x1c0] sm:$0xff] }
 0x15c   : > { %v970_v3 = vpop.f32.mrb[49].mxu0  ;;  %6244 = vmatpush3.bf16.msra.mxu1 %v6241_v0  ;;  %5605 = vmatprep.mubr.f32.mxu1 %v367_v1  ;;  %v392_v0 = vld [vmem:[%s7074_s12 + $0x1c8] sm:$0xff]  ;;  %v393_v1 = vld [vmem:[%s7074_s12 + $0x1d0] sm:$0xff] }
 0x15d   : > { %v6245_v5 = vpack.c.bf16 %v5439_v2, %v970_v3  ;;  %1513 = vrot.lane.b32.xlu1 %v5436_v61, %s6815_s23  ;;  %1692 = vrot.lane.b32.xlu0 %v970_v3, %s6815_s23  ;;  %v389_v61 = vld [vmem:[%s7074_s12 + $0x1b0] sm:$0xff]  ;;  %v395_v3 = vld [vmem:[%s7074_s12 + $0x1e0] sm:$0xff] }
 0x15f   : > { %v5442_v7 = vpop.f32.mrb[50].mxu0  ;;  %5606 = vmatmul.mubr.f32.vlgmr.msra.gmra.mrb[32].mxu1 %v368_v4  ;;  %6246 = vmatprep.subr.bf16.mxu1 %v6245_v5  ;;  %v396_v4 = vld [vmem:[%s7074_s12 + $0x1e8] sm:$0xff] }
 0x160   : > { %v980_v8 = vpop.f32.mrb[51].mxu0  ;;  %6248 = vmatpush3.bf16.msra.mxu1 %v6245_v5  ;;  %5608 = vmatprep.mubr.f32.mxu1 %v369_v6  ;;  %v397_v5 = vld [vmem:[%s7074_s12 + $0x1f0] sm:$0xff]  ;;  %v398_v6 = vld [vmem:[%s7074_s12 + $0x1f8] sm:$0xff] }
 0x161   : > { %v6249_v11 = vpack.c.bf16 %v5442_v7, %v980_v8  ;;  %1694 = vrot.lane.b32.xlu1 %v5439_v2, %s6815_s23  ;;  %1696 = vrot.lane.b32.xlu0 %v980_v8, %s6815_s23  ;;  %v394_v2 = vld [vmem:[%s7074_s12 + $0x1d8] sm:$0xff] }
 0x163   : > { %v5445_v13 = vpop.f32.mrb[52].mxu0  ;;  %5609 = vmatmul.mubr.f32.gmra.mrb[34].mxu1 %v370_v9  ;;  %6250 = vmatprep.subr.bf16.mxu1 %v6249_v11 }
 0x164   : > { %v990_v14 = vpop.f32.mrb[53].mxu0  ;;  %6252 = vmatpush3.bf16.msra.mxu1 %v6249_v11  ;;  %5611 = vmatprep.mubr.f32.mxu1 %v371_v12  ;;  %v7267_v11 = vld [vmem:[%s8540_s3] ss:$0 sm:$0xff] }
 0x165   : > { %v6253_v16 = vpack.c.bf16 %v5445_v13, %v990_v14  ;;  %1698 = vrot.lane.b32.xlu1 %v5442_v7, %s6815_s23  ;;  %1700 = vrot.lane.b32.xlu0 %v990_v14, %s6815_s23 }
 0x167   : > { %v5448_v18 = vpop.f32.mrb[54].mxu0  ;;  %5612 = vmatmul.mubr.f32.gmra.mrb[36].mxu1 %v372_v15  ;;  %6254 = vmatprep.subr.bf16.mxu1 %v6253_v16 }
 0x168   : > { %v1000_v19 = vpop.f32.mrb[55].mxu0  ;;  %6256 = vmatpush3.bf16.msra.mxu1 %v6253_v16  ;;  %5614 = vmatprep.mubr.f32.mxu1 %v373_v17 }
 0x169   : > { %v6257_v21 = vpack.c.bf16 %v5448_v18, %v1000_v19  ;;  %1702 = vrot.lane.b32.xlu1 %v5445_v13, %s6815_s23  ;;  %1704 = vrot.lane.b32.xlu0 %v1000_v19, %s6815_s23 }
 0x16b   : > { %v5451_v23 = vpop.f32.mrb[56].mxu0  ;;  %5615 = vmatmul.mubr.f32.gmra.mrb[38].mxu1 %v374_v20  ;;  %6258 = vmatprep.subr.bf16.mxu1 %v6257_v21 }
 0x16c   : > { %v1010_v24 = vpop.f32.mrb[57].mxu0  ;;  %6260 = vmatpush3.bf16.msra.mxu1 %v6257_v21  ;;  %5617 = vmatprep.mubr.f32.mxu1 %v375_v22 }
 0x16d   : > { %v6261_v26 = vpack.c.bf16 %v5451_v23, %v1010_v24  ;;  %1706 = vrot.lane.b32.xlu1 %v5448_v18, %s6815_s23  ;;  %1708 = vrot.lane.b32.xlu0 %v1010_v24, %s6815_s23 }
 0x16f   : > { %v5454_v28 = vpop.f32.mrb[58].mxu0  ;;  %5618 = vmatmul.mubr.f32.gmra.mrb[40].mxu1 %v376_v25  ;;  %6262 = vmatprep.subr.bf16.mxu1 %v6261_v26  ;;  %v1066_v7 = vpop.permute.xlu0 %1065 }
 0x170   : > { %v1020_v30 = vpop.f32.mrb[59].mxu0  ;;  %6264 = vmatpush3.bf16.msra.mxu1 %v6261_v26  ;;  %5620 = vmatprep.mubr.f32.mxu1 %v377_v27 }
 0x171   : > { %v6265_v34 = vpack.c.bf16 %v5454_v28, %v1020_v30  ;;  %1710 = vrot.lane.b32.xlu1 %v5451_v23, %s6815_s23  ;;  %1712 = vrot.lane.b32.xlu0 %v1020_v30, %s6815_s23 }
 0x173   : > { %5621 = vmatmul.mubr.f32.gmra.mrb[42].mxu1 %v378_v29  ;;  %6266 = vmatprep.subr.bf16.mxu1 %v6265_v34  ;;  %v5457_v39 = vpop.f32.mrb[60].mxu0  ;;  %v1068_v9 = vpop.permute.xlu0 %1067 }
 0x174   : > { %6268 = vmatpush3.bf16.msra.mxu1 %v6265_v34  ;;  %5623 = vmatprep.mubr.f32.mxu1 %v379_v31  ;;  %v1030_v43 = vpop.f32.mrb[61].mxu0  ;;  %v1070_v15 = vpop.permute.xlu1 %1069 }
 0x175   : > { %1714 = vrot.lane.b32.xlu1 %v5454_v28, %s6815_s23  ;;  %v6269_v48 = vpack.c.bf16 %v5457_v39, %v1030_v43  ;;  %1716 = vrot.lane.b32.xlu0 %v1030_v43, %s6815_s23 }
 0x177   : > { %5624 = vmatmul.mubr.f32.gmra.mrb[44].mxu1 %v380_v40  ;;  %v5460_v50 = vpop.f32.mrb[62].mxu0  ;;  %6270 = vmatprep.subr.bf16.mxu1 %v6269_v48  ;;  %v1074_v28 = vpop.permute.xlu0 %1073 }
 0x178   : > { %5626 = vmatprep.mubr.f32.mxu1 %v381_v44  ;;  %v1040_v52 = vpop.f32.mrb[63].mxu0  ;;  %6272 = vmatpush3.bf16.msra.mxu1 %v6269_v48  ;;  %v1072_v22 = vpop.permute.xlu1 %1071 }
 0x179   : > { %1718 = vrot.lane.b32.xlu1 %v5457_v39, %s6815_s23  ;;  %v6273_v54 = vpack.c.bf16 %v5460_v50, %v1040_v52  ;;  %1720 = vrot.lane.b32.xlu0 %v1040_v52, %s6815_s23 }
 0x17b   : > { %5627 = vmatmul.mubr.f32.gmra.mrb[46].mxu1 %v382_v51  ;;  %6274 = vmatprep.subr.bf16.mxu1 %v6273_v54  ;;  %v1078_v40 = vpop.permute.xlu0 %1077 }
 0x17c   : > { %5661 = vmatprep.mubr.f32.mxu1 %v383_v53  ;;  %6276 = vmatpush3.bf16.msra.mxu1 %v6273_v54  ;;  %v1076_v34 = vpop.permute.xlu1 %1075 }
 0x17d   : > { %1722 = vrot.lane.b32.xlu1 %v5460_v50, %s6815_s23  ;;  %s8296_s23 = scalar_lea.vmem [#allocation2], %s4745_s26 }
 0x17e   : > { %s4667_s10 = sshll.u32 %s8296_s23, 4  ;;  %s8490_s10 = int_to_ptr.vmem [resolvable:$true] %s4667_s10 }
 0x17f   : > { %5662 = vmatmul.mubr.f32.vlgmr.msra.gmra.mrb[48].mxu1 %v384_v56  ;;  %v1082_v52 = vpop.permute.xlu0 %1081  ;;  %s6751_s19 = scalar_lea.vmem %s8490_s10, 8192  ;;  %p6758_p0 = scmp.lt.s32.totalorder %s8490_s10, %s6756_s21 }
 0x180   : > { %5664 = vmatprep.mubr.f32.mxu1 %v385_v57  ;;  %v1080_v46 = vpop.permute.xlu1 %1079  ;;  %p6752_p11 = scmp.ne.s32.totalorder %s8490_s10, %s6751_s19  ;;  %p6759_p1 = scmp.lt.s32.totalorder %s6757_s24, %s6751_s19 }
 0x182   : > { %p6753_p12 = pnand %p6752_p11, %p6903_p5  ;;  %p6760_p2 = por %p6759_p1, %p6758_p0 }
 0x183   : > { %5665 = vmatmul.mubr.f32.gmra.mrb[50].mxu1 %v386_v58 }
 0x184   : > { %5667 = vmatprep.mubr.f32.mxu1 %v387_v59  ;;  %v1084_v59 = vpop.permute.xlu1 %1083  ;;  %p6754_p13 = pneg %p6753_p12 }
 0x186   : > { %p6761_p3 = pnand %p6760_p2, %p6754_p13 }
 0x187   : > { %5668 = vmatmul.mubr.f32.gmra.mrb[52].mxu1 %v388_v60 }
 0x188   : > { %5670 = vmatprep.mubr.f32.mxu1 %v389_v61 }
 0x18b   : > { %5671 = vmatmul.mubr.f32.gmra.mrb[54].mxu1 %v390_v62 }
 0x18c   : > { %5673 = vmatprep.mubr.f32.mxu1 %v391_v63 }
 0x18f   : > { %5674 = vmatmul.mubr.f32.gmra.mrb[56].mxu1 %v392_v0 }
 0x190   : > { %5676 = vmatprep.mubr.f32.mxu1 %v393_v1  ;;  %v1086_v1 = vpop.permute.xlu0 %1085 }
 0x193   : > { %5677 = vmatmul.mubr.f32.gmra.mrb[58].mxu1 %v394_v2 }
 0x194   : > { %5679 = vmatprep.mubr.f32.mxu1 %v395_v3 }
 0x197   : > { %5680 = vmatmul.mubr.f32.gmra.mrb[60].mxu1 %v396_v4 }
 0x198   : > { %5682 = vmatprep.mubr.f32.mxu1 %v397_v5 }
 0x19b   : > { %5683 = vmatmul.mubr.f32.gmra.mrb[62].mxu1 %v398_v6 }
 0x19c   : > { %5717 = vmatprep.mubr.f32.mxu1 %v7079_v10 }
 0x1f2   : > { %v5495_v8 = vpop.f32.mrb[0].mxu1 }
 0x1f3   : > { %v1179_v12 = vpop.f32.mrb[1].mxu1  ;;  %v1185_v13 = vadd.f32 %v5495_v8, %v1068_v9 }
 0x1f4   : > { %v1180_v14 = vadd.f32 %v1179_v12, %v1066_v7  ;;  %v1088_v7 = vpop.permute.xlu1 %1087 }
 0x1f5   : > { %v1893_v19 = vadd.f32 %v7267_v11, %v1185_v13 }
 0x1f6   : > { %v1892_v16 = vadd.f32 %v7267_v11, %v1180_v14  ;;  %v5498_v17 = vpop.f32.mrb[2].mxu1 }
 0x1f7   : > { %v1189_v18 = vpop.f32.mrb[3].mxu1  ;;  %v1957_v24 = vmax.f32 %v1893_v19, 0.0  ;;  %v1195_v25 = vadd.f32 %v5498_v17, %v1072_v22 }
 0x1f8   : > { %v1956_v20 = vmax.f32 %v1892_v16, 0.0  ;;  %v1190_v10 = vadd.f32 %v1189_v18, %v1070_v15  ;;  %v1090_v15 = vpop.permute.xlu0 %1089 }
 0x1f9   : > { %v1895_v30 = vadd.f32 %v7267_v11, %v1195_v25 }
 0x1fa   : > { %v5501_v21 = vpop.f32.mrb[4].mxu1  ;;  %4817 = vmatmul.mubr.msk.f32.vlgmr.msra.gmra.mrb[64].mxu0 %vm471_vm0, %v1956_v20  ;;  %v1894_v26 = vadd.f32 %v7267_v11, %v1190_v10  ;;  %v1092_v10 = vpop.permute.xlu1 %1091 }
 0x1fb   : > { %v1199_v23 = vpop.f32.mrb[5].mxu1  ;;  %2298 = vmatprep.mubr.f32.mxu0 %v8546_v55  ;;  %v1959_v36 = vmax.f32 %v1895_v30, 0.0  ;;  %v1205_v37 = vadd.f32 %v5501_v21, %v1076_v34 }
 0x1fc   : > { %v1958_v31 = vmax.f32 %v1894_v26, 0.0  ;;  %v1200_v32 = vadd.f32 %v1199_v23, %v1074_v28  ;;  %v1094_v26 = vpop.permute.xlu0 %1093 }
 0x1fd   : > { %v1897_v42 = vadd.f32 %v7267_v11, %v1205_v37 }
 0x1fe   : > { %v5504_v27 = vpop.f32.mrb[6].mxu1  ;;  %4818 = vmatmul.mubr.msk.f32.gmra.mrb[66].mxu0 %vm471_vm0, %v1957_v24  ;;  %v1896_v38 = vadd.f32 %v7267_v11, %v1200_v32  ;;  %v1096_v32 = vpop.permute.xlu1 %1095 }
 0x1ff   : > { %v1209_v29 = vpop.f32.mrb[7].mxu1  ;;  %2304 = vmatprep.mubr.f32.mxu0 %v8546_v55  ;;  %v1961_v48 = vmax.f32 %v1897_v42, 0.0  ;;  %v1215_v49 = vadd.f32 %v5504_v27, %v1080_v46 }
 0x200   : > { %v1960_v43 = vmax.f32 %v1896_v38, 0.0  ;;  %v1210_v44 = vadd.f32 %v1209_v29, %v1078_v40  ;;  %v1275_v38 = vpop.permute.xlu0 %1274 }
 0x201   : > { %v1899_v54 = vadd.f32 %v7267_v11, %v1215_v49 }
 0x202   : > { %v5507_v33 = vpop.f32.mrb[8].mxu1  ;;  %4819 = vmatmul.mubr.msk.f32.gmra.mrb[68].mxu0 %vm471_vm0, %v1958_v31  ;;  %v1898_v50 = vadd.f32 %v7267_v11, %v1210_v44  ;;  %v1277_v44 = vpop.permute.xlu1 %1276 }
 0x203   : > { %v1219_v35 = vpop.f32.mrb[9].mxu1  ;;  %2310 = vmatprep.mubr.f32.mxu0 %v8546_v55  ;;  %v1963_v61 = vmax.f32 %v1899_v54, 0.0  ;;  %v1225_v62 = vadd.f32 %v5507_v33, %v1084_v59 }
 0x204   : > { %v1962_v56 = vmax.f32 %v1898_v50, 0.0  ;;  %v1220_v57 = vadd.f32 %v1219_v35, %v1082_v52  ;;  %v1279_v50 = vpop.permute.xlu0 %1278 }
 0x205   : > { %v1901_v3 = vadd.f32 %v7267_v11, %v1225_v62 }
 0x206   : > { %v5510_v39 = vpop.f32.mrb[10].mxu1  ;;  %4820 = vmatmul.mubr.msk.f32.gmra.mrb[70].mxu0 %vm471_vm0, %v1959_v36  ;;  %v1900_v63 = vadd.f32 %v7267_v11, %v1220_v57  ;;  %v1281_v57 = vpop.permute.xlu1 %1280 }
 0x207   : > { %v1229_v41 = vpop.f32.mrb[11].mxu1  ;;  %2316 = vmatprep.mubr.f32.mxu0 %v8546_v55  ;;  %v1965_v9 = vmax.f32 %v1901_v3, 0.0  ;;  %v1235_v12 = vadd.f32 %v5510_v39, %v1088_v7 }
 0x208   : > { %v1964_v4 = vmax.f32 %v1900_v63, 0.0  ;;  %v1230_v5 = vadd.f32 %v1229_v41, %v1086_v1  ;;  %v1283_v63 = vpop.permute.xlu0 %1282 }
 0x209   : > { %v1903_v17 = vadd.f32 %v7267_v11, %v1235_v12 }
 0x20a   : > { %v5513_v45 = vpop.f32.mrb[12].mxu1  ;;  %4821 = vmatmul.mubr.msk.f32.gmra.mrb[72].mxu0 %vm471_vm0, %v1960_v43  ;;  %v1902_v13 = vadd.f32 %v7267_v11, %v1230_v5 }
 0x20b   : > { %v1239_v47 = vpop.f32.mrb[13].mxu1  ;;  %2322 = vmatprep.mubr.f32.mxu0 %v8546_v55  ;;  %v1967_v22 = vmax.f32 %v1903_v17, 0.0  ;;  %v1245_v23 = vadd.f32 %v5513_v45, %v1092_v10 }
 0x20c   : > { %v1966_v18 = vmax.f32 %v1902_v13, 0.0  ;;  %v1240_v19 = vadd.f32 %v1239_v47, %v1090_v15  ;;  %v1287_v17 = vpop.permute.xlu0 %1286 }
 0x20d   : > { %v1905_v28 = vadd.f32 %v7267_v11, %v1245_v23 }
 0x20e   : > { %v5516_v51 = vpop.f32.mrb[14].mxu1  ;;  %4822 = vmatmul.mubr.msk.f32.gmra.mrb[74].mxu0 %vm471_vm0, %v1961_v48  ;;  %v1904_v24 = vadd.f32 %v7267_v11, %v1240_v19 }
 0x20f   : > { %v1249_v53 = vpop.f32.mrb[15].mxu1  ;;  %2328 = vmatprep.mubr.f32.mxu0 %v8546_v55  ;;  %v1969_v34 = vmax.f32 %v1905_v28, 0.0  ;;  %v1255_v35 = vadd.f32 %v5516_v51, %v1096_v32 }
 0x210   : > { %v1968_v29 = vmax.f32 %v1904_v24, 0.0  ;;  %v1250_v30 = vadd.f32 %v1249_v53, %v1094_v26 }
 0x211   : > { %v1907_v40 = vadd.f32 %v7267_v11, %v1255_v35 }
 0x212   : > { %v7289_v58 = vpop.f32.mrb[16].mxu1  ;;  %4823 = vmatmul.mubr.msk.f32.gmra.mrb[76].mxu0 %vm471_vm0, %v1962_v56  ;;  %v1906_v36 = vadd.f32 %v7267_v11, %v1250_v30  ;;  %v1291_v30 = vpop.permute.xlu0 %1290 }
 0x213   : > { %v1388_v60 = vpop.f32.mrb[17].mxu1  ;;  %2334 = vmatprep.mubr.f32.mxu0 %v8546_v55  ;;  %v1971_v46 = vmax.f32 %v1907_v40, 0.0  ;;  %v1394_v47 = vadd.f32 %v7289_v58, %v1277_v44 }
 0x214   : > { %v1970_v41 = vmax.f32 %v1906_v36, 0.0  ;;  %v1389_v42 = vadd.f32 %v1388_v60, %v1275_v38 }
 0x215   : > { %v1909_v52 = vadd.f32 %v7267_v11, %v1394_v47 }
 0x216   : > { %v7294_v0 = vpop.f32.mrb[18].mxu1  ;;  %4824 = vmatmul.mubr.msk.f32.gmra.mrb[78].mxu0 %vm471_vm0, %v1963_v61  ;;  %v1908_v48 = vadd.f32 %v7267_v11, %v1389_v42  ;;  %v1295_v44 = vpop.permute.xlu0 %1294 }
 0x217   : > { %v7297_v2 = vpop.f32.mrb[19].mxu1  ;;  %2340 = vmatprep.mubr.f32.mxu0 %v8546_v55  ;;  %v1973_v59 = vmax.f32 %v1909_v52, 0.0  ;;  %v1404_v60 = vadd.f32 %v7294_v0, %v1281_v57  ;;  %v1285_v0 = vpop.permute.xlu1 %1284 }
 0x218   : > { %v1972_v53 = vmax.f32 %v1908_v48, 0.0  ;;  %v1399_v54 = vadd.f32 %v7297_v2, %v1279_v50 }
 0x219   : > { %v1911_v2 = vadd.f32 %v7267_v11, %v1404_v60 }
 0x21a   : > { %v7301_v6 = vpop.f32.mrb[20].mxu1  ;;  %4825 = vmatmul.mubr.msk.f32.gmra.mrb[80].mxu0 %vm471_vm0, %v1964_v4  ;;  %v1910_v61 = vadd.f32 %v7267_v11, %v1399_v54  ;;  %v1299_v60 = vpop.permute.xlu0 %1298 }
 0x21b   : > { %v7304_v8 = vpop.f32.mrb[21].mxu1  ;;  %2346 = vmatprep.mubr.f32.mxu0 %v8546_v55  ;;  %v1414_v12 = vadd.f32 %v7301_v6, %v1285_v0  ;;  %v1289_v6 = vpop.permute.xlu1 %1288 }
 0x21c   : > { %v1974_v3 = vmax.f32 %v1910_v61, 0.0  ;;  %v1409_v4 = vadd.f32 %v7304_v8, %v1283_v63 }
 0x21e   : > { %v7308_v14 = vpop.f32.mrb[22].mxu1  ;;  %4826 = vmatmul.mubr.msk.f32.gmra.mrb[82].mxu0 %vm471_vm0, %v1965_v9  ;;  %v1975_v9 = vmax.f32 %v1911_v2, 0.0  ;;  %v1912_v13 = vadd.f32 %v7267_v11, %v1409_v4 }
 0x21f   : > { %v7311_v16 = vpop.f32.mrb[23].mxu1  ;;  %2352 = vmatprep.mubr.f32.mxu0 %v8546_v55  ;;  %v1424_v26 = vadd.f32 %v7308_v14, %v1289_v6  ;;  %v1293_v36 = vpop.permute.xlu1 %1292 }
 0x220   : > { %v1976_v19 = vmax.f32 %v1912_v13, 0.0  ;;  %v1419_v10 = vadd.f32 %v7311_v16, %v1287_v17  ;;  %v1303_v17 = vpop.permute.xlu0 %1302 }
 0x221   : > { %v1915_v32 = vadd.f32 %v7267_v11, %v1424_v26 }
 0x222   : > { %v7315_v20 = vpop.f32.mrb[24].mxu1  ;;  %4827 = vmatmul.mubr.msk.f32.gmra.mrb[84].mxu0 %vm471_vm0, %v1966_v18  ;;  %v1913_v18 = vadd.f32 %v7267_v11, %v1414_v12  ;;  %v1914_v28 = vadd.f32 %v7267_v11, %v1419_v10 }
 0x223   : > { %v7318_v21 = vpop.f32.mrb[25].mxu1  ;;  %2358 = vmatprep.mubr.f32.mxu0 %v8546_v55  ;;  %v1979_v38 = vmax.f32 %v1915_v32, 0.0  ;;  %v1434_v40 = vadd.f32 %v7315_v20, %v1293_v36  ;;  %v1297_v20 = vpop.permute.xlu1 %1296 }
 0x224   : > { %v1977_v24 = vmax.f32 %v1913_v18, 0.0  ;;  %v1429_v35 = vadd.f32 %v7318_v21, %v1291_v30 }
 0x225   : > { %v1917_v21 = vadd.f32 %v7267_v11, %v1434_v40 }
 0x226   : > { %v7322_v25 = vpop.f32.mrb[26].mxu1  ;;  %4828 = vmatmul.mubr.msk.f32.gmra.mrb[86].mxu0 %vm471_vm0, %v1967_v22 }
 0x227   : > { %v7325_v27 = vpop.f32.mrb[27].mxu1  ;;  %2364 = vmatprep.mubr.f32.mxu0 %v8546_v55  ;;  %v1444_v54 = vadd.f32 %v7322_v25, %v1297_v20  ;;  %v1301_v25 = vpop.permute.xlu1 %1300 }
 0x228   : > { %v1439_v48 = vadd.f32 %v7325_v27, %v1295_v44 }
 0x229   : > { %v1919_v61 = vadd.f32 %v7267_v11, %v1444_v54 }
 0x22a   : > { %v7329_v31 = vpop.f32.mrb[28].mxu1  ;;  %4829 = vmatmul.mubr.msk.f32.gmra.mrb[88].mxu0 %vm471_vm0, %v1968_v29  ;;  %v1918_v57 = vadd.f32 %v7267_v11, %v1439_v48 }
 0x22b   : > { %v7332_v33 = vpop.f32.mrb[29].mxu1  ;;  %2370 = vmatprep.mubr.f32.mxu0 %v8546_v55  ;;  %v1983_v0 = vmax.f32 %v1919_v61, 0.0 }
 0x22c   : > { %v1982_v63 = vmax.f32 %v1918_v57, 0.0  ;;  %v1449_v2 = vadd.f32 %v7332_v33, %v1299_v60 }
 0x22e   : > { %v7336_v37 = vpop.f32.mrb[30].mxu1  ;;  %4830 = vmatmul.mubr.msk.f32.gmra.mrb[90].mxu0 %vm471_vm0, %v1969_v34  ;;  %v1978_v34 = vmax.f32 %v1914_v28, 0.0  ;;  %v1920_v12 = vadd.f32 %v7267_v11, %v1449_v2 }
 0x22f   : > { %v7339_v39 = vpop.f32.mrb[31].mxu1  ;;  %2376 = vmatprep.mubr.f32.mxu0 %v8546_v55 }
 0x230   : > { %v1459_v10 = vadd.f32 %v7339_v39, %v1303_v17 }
 0x232   : > { %v7343_v43 = vpop.f32.mrb[32].mxu1  ;;  %4831 = vmatmul.mubr.msk.f32.gmra.mrb[92].mxu0 %vm471_vm0, %v1970_v41  ;;  %v1916_v41 = vadd.f32 %v7267_v11, %v1429_v35  ;;  %v1922_v30 = vadd.f32 %v7267_v11, %v1459_v10 }
 0x233   : > { %v7346_v45 = vpop.f32.mrb[33].mxu1  ;;  %2382 = vmatprep.mubr.f32.mxu0 %v8546_v55 }
 0x234   : > { %v1980_v47 = vmax.f32 %v1916_v41, 0.0  ;;  %v1986_v36 = vmax.f32 %v1922_v30, 0.0 }
 0x236   : > { %v7351_v49 = vpop.f32.mrb[34].mxu1  ;;  %4832 = vmatmul.mubr.msk.f32.gmra.mrb[94].mxu0 %vm471_vm0, %v1971_v46 }
 0x237   : > { %v7354_v51 = vpop.f32.mrb[35].mxu1  ;;  %2388 = vmatprep.mubr.f32.mxu0 %v8546_v55 }
 0x23a   : > { %v7359_v56 = vpop.f32.mrb[36].mxu1  ;;  %4833 = vmatmul.mubr.msk.f32.gmra.mrb[96].mxu0 %vm471_vm0, %v1972_v53  ;;  %v1981_v53 = vmax.f32 %v1917_v21, 0.0 }
 0x23b   : > { %v7362_v58 = vpop.f32.mrb[37].mxu1  ;;  %2394 = vmatprep.mubr.f32.mxu0 %v8546_v55 }
 0x23e   : > { %v7367_v62 = vpop.f32.mrb[38].mxu1  ;;  %4834 = vmatmul.mubr.msk.f32.gmra.mrb[98].mxu0 %vm471_vm0, %v1973_v59 }
 0x23f   : > { %v7370_v1 = vpop.f32.mrb[39].mxu1  ;;  %2400 = vmatprep.mubr.f32.mxu0 %v8546_v55 }
 0x242   : > { %v7375_v5 = vpop.f32.mrb[40].mxu1  ;;  %4835 = vmatmul.mubr.msk.f32.gmra.mrb[100].mxu0 %vm471_vm0, %v1974_v3 }
 0x243   : > { %v7378_v7 = vpop.f32.mrb[41].mxu1  ;;  %2406 = vmatprep.mubr.f32.mxu0 %v8546_v55 }
 0x246   : > { %v7383_v15 = vpop.f32.mrb[42].mxu1  ;;  %4836 = vmatmul.mubr.msk.f32.gmra.mrb[102].mxu0 %vm471_vm0, %v1975_v9  ;;  %v1454_v9 = vadd.f32 %v7329_v31, %v1301_v25  ;;  %v1305_v31 = vpop.permute.xlu1 %1304 }
 0x247   : > { %v7386_v8 = vpop.f32.mrb[43].mxu1  ;;  %2412 = vmatprep.mubr.f32.mxu0 %v8546_v55  ;;  %v1464_v28 = vadd.f32 %v7336_v37, %v1305_v31 }
 0x248   : > { %v1921_v18 = vadd.f32 %v7267_v11, %v1454_v9 }
 0x249   : > { %v1923_v35 = vadd.f32 %v7267_v11, %v1464_v28 }
 0x24a   : > { %v7391_v22 = vpop.f32.mrb[44].mxu1  ;;  %4837 = vmatmul.mubr.msk.f32.gmra.mrb[104].mxu0 %vm471_vm0, %v1976_v19  ;;  %v1984_v19 = vmax.f32 %v1920_v12, 0.0  ;;  %v1985_v26 = vmax.f32 %v1921_v18, 0.0  ;;  %v1486_v37 = vpop.permute.xlu1 %1485 }
 0x24b   : > { %v7394_v23 = vpop.f32.mrb[45].mxu1  ;;  %2418 = vmatprep.mubr.f32.mxu0 %v8546_v55  ;;  %v1987_v41 = vmax.f32 %v1923_v35, 0.0  ;;  %v1603_v44 = vadd.f32 %v7343_v43, %v1486_v37 }
 0x24d   : > { %v1925_v48 = vadd.f32 %v7267_v11, %v1603_v44 }
 0x24e   : > { %v7399_v29 = vpop.f32.mrb[46].mxu1  ;;  %4838 = vmatmul.mubr.msk.f32.gmra.mrb[106].mxu0 %vm471_vm0, %v1977_v24 }
 0x24f   : > { %v7402_v16 = vpop.f32.mrb[47].mxu1  ;;  %2424 = vmatprep.mubr.f32.mxu0 %v8546_v55  ;;  %v1989_v54 = vmax.f32 %v1925_v48, 0.0 }
 0x252   : > { %4839 = vmatmul.mubr.msk.f32.gmra.mrb[108].mxu0 %vm471_vm0, %v1978_v34  ;;  %v7408_v14 = vpop.f32.mrb[48].mxu1  ;;  %v1484_v34 = vpop.permute.xlu0 %1483 }
 0x253   : > { %2430 = vmatprep.mubr.f32.mxu0 %v8546_v55  ;;  %v7413_v42 = vpop.f32.mrb[49].mxu1 }
 0x256   : > { %4840 = vmatmul.mubr.msk.f32.gmra.mrb[110].mxu0 %vm471_vm0, %v1979_v38  ;;  %v7416_v46 = vpop.f32.mrb[50].mxu1  ;;  %v1598_v38 = vadd.f32 %v7346_v45, %v1484_v34 }
 0x257   : > { %2436 = vmatprep.mubr.f32.mxu0 %v8546_v55  ;;  %v7421_v50 = vpop.f32.mrb[51].mxu1 }
 0x258   : > { %v1924_v21 = vadd.f32 %v7267_v11, %v1598_v38 }
 0x25a   : > { %4841 = vmatmul.mubr.msk.f32.gmra.mrb[112].mxu0 %vm471_vm0, %v1980_v47  ;;  %v7424_v52 = vpop.f32.mrb[52].mxu1  ;;  %v1488_v47 = vpop.permute.xlu0 %1487  ;;  %v1988_v45 = vmax.f32 %v1924_v21, 0.0 }
 0x25b   : > { %2442 = vmatprep.mubr.f32.mxu0 %v8546_v55  ;;  %v7429_v59 = vpop.f32.mrb[53].mxu1  ;;  %v1608_v20 = vadd.f32 %v7354_v51, %v1488_v47 }
 0x25d   : > { %v1926_v57 = vadd.f32 %v7267_v11, %v1608_v20 }
 0x25e   : > { %4842 = vmatmul.mubr.msk.f32.gmra.mrb[114].mxu0 %vm471_vm0, %v1981_v53  ;;  %v7432_v27 = vpop.f32.mrb[54].mxu1  ;;  %v1490_v53 = vpop.permute.xlu1 %1489 }
 0x25f   : > { %2448 = vmatprep.mubr.f32.mxu0 %v8546_v55  ;;  %v7437_v3 = vpop.f32.mrb[55].mxu1  ;;  %v1613_v43 = vadd.f32 %v7351_v49, %v1490_v53  ;;  %v1492_v60 = vpop.permute.xlu0 %1491 }
 0x260   : > { %v1618_v51 = vadd.f32 %v7362_v58, %v1492_v60 }
 0x261   : > { %v1927_v61 = vadd.f32 %v7267_v11, %v1613_v43 }
 0x262   : > { %4843 = vmatmul.mubr.msk.f32.gmra.mrb[116].mxu0 %vm471_vm0, %v1982_v63  ;;  %v7440_v4 = vpop.f32.mrb[56].mxu1  ;;  %v1990_v63 = vmax.f32 %v1926_v57, 0.0  ;;  %v1494_v2 = vpop.permute.xlu1 %1493 }
 0x263   : > { %2454 = vmatprep.mubr.f32.mxu0 %v8546_v55  ;;  %v7445_v13 = vpop.f32.mrb[57].mxu1  ;;  %v1991_v25 = vmax.f32 %v1927_v61, 0.0  ;;  %v1623_v49 = vadd.f32 %v7359_v56, %v1494_v2  ;;  %v1496_v9 = vpop.permute.xlu0 %1495 }
 0x264   : > { %v1628_v58 = vadd.f32 %v7370_v1, %v1496_v9 }
 0x265   : > { %v1929_v12 = vadd.f32 %v7267_v11, %v1623_v49 }
 0x266   : > { %4844 = vmatmul.mubr.msk.f32.gmra.mrb[118].mxu0 %vm471_vm0, %v1983_v0  ;;  %v7448_v33 = vpop.f32.mrb[58].mxu1  ;;  %v1928_v0 = vadd.f32 %v7267_v11, %v1618_v51  ;;  %v1498_v18 = vpop.permute.xlu1 %1497  ;;  %v1930_v10 = vadd.f32 %v7267_v11, %v1628_v58 }
 0x267   : > { %2460 = vmatprep.mubr.f32.mxu0 %v8546_v55  ;;  %v7453_v6 = vpop.f32.mrb[59].mxu1  ;;  %v1633_v56 = vadd.f32 %v7367_v62, %v1498_v18  ;;  %v1500_v31 = vpop.permute.xlu0 %1499 }
 0x268   : > { %v1992_v17 = vmax.f32 %v1928_v0, 0.0  ;;  %v1994_v28 = vmax.f32 %v1930_v10, 0.0  ;;  %v1638_v1 = vadd.f32 %v7378_v7, %v1500_v31 }
 0x26a   : > { %4845 = vmatmul.mubr.msk.f32.gmra.mrb[120].mxu0 %vm471_vm0, %v1984_v19  ;;  %v7456_v24 = vpop.f32.mrb[60].mxu1  ;;  %v1993_v19 = vmax.f32 %v1929_v12, 0.0  ;;  %v1502_v30 = vpop.permute.xlu1 %1501  ;;  %v1932_v35 = vadd.f32 %v7267_v11, %v1638_v1 }
 0x26b   : > { %2466 = vmatprep.mubr.f32.mxu0 %v8546_v55  ;;  %v7461_v32 = vpop.f32.mrb[61].mxu1  ;;  %v1643_v62 = vadd.f32 %v7375_v5, %v1502_v30 }
 0x26c   : > { %v1996_v37 = vmax.f32 %v1932_v35, 0.0 }
 0x26d   : > { %v1933_v38 = vadd.f32 %v7267_v11, %v1643_v62 }
 0x26e   : > { %4846 = vmatmul.mubr.msk.f32.gmra.mrb[122].mxu0 %vm471_vm0, %v1985_v26  ;;  %v7464_v39 = vpop.f32.mrb[62].mxu1  ;;  %v1931_v26 = vadd.f32 %v7267_v11, %v1633_v56 }
 0x26f   : > { %2472 = vmatprep.mubr.f32.mxu0 %v8546_v55  ;;  %v7469_v40 = vpop.f32.mrb[63].mxu1  ;;  %v1997_v44 = vmax.f32 %v1933_v38, 0.0 }
 0x270   : > { %v1995_v34 = vmax.f32 %v1931_v26, 0.0 }
 0x272   : > { %4847 = vmatmul.mubr.msk.f32.gmra.mrb[124].mxu0 %vm471_vm0, %v1986_v36  ;;  %v1504_v36 = vpop.permute.xlu0 %1503 }
 0x273   : > { %2478 = vmatprep.mubr.f32.mxu0 %v8546_v55  ;;  %v1648_v7 = vadd.f32 %v7386_v8, %v1504_v36 }
 0x275   : > { %v1934_v21 = vadd.f32 %v7267_v11, %v1648_v7 }
 0x276   : > { %4848 = vmatmul.mubr.msk.f32.gmra.mrb[126].mxu0 %vm471_vm0, %v1987_v41  ;;  %v1506_v41 = vpop.permute.xlu1 %1505  ;;  %v1508_v47 = vpop.permute.xlu0 %1507 }
 0x277   : > { %2484 = vmatprep.mubr.f32.mxu0 %v8546_v55  ;;  %v1653_v5 = vadd.f32 %v7383_v15, %v1506_v41  ;;  %v1658_v8 = vadd.f32 %v7394_v23, %v1508_v47 }
 0x279   : > { %v1935_v48 = vadd.f32 %v7267_v11, %v1653_v5 }
 0x27a   : > { %4849 = vmatmul.mubr.msk.f32.gmra.mrb[128].mxu0 %vm471_vm0, %v1988_v45  ;;  %v1998_v45 = vmax.f32 %v1934_v21, 0.0  ;;  %v1510_v20 = vpop.permute.xlu1 %1509  ;;  %v1512_v43 = vpop.permute.xlu0 %1511 }
 0x27b   : > { %2490 = vmatprep.mubr.f32.mxu0 %v8546_v55  ;;  %v1999_v53 = vmax.f32 %v1935_v48, 0.0  ;;  %v1663_v15 = vadd.f32 %v7391_v22, %v1510_v20  ;;  %v1668_v23 = vadd.f32 %v7402_v16, %v1512_v43 }
 0x27d   : > { %v1937_v57 = vadd.f32 %v7267_v11, %v1663_v15  ;;  %v1938_v51 = vadd.f32 %v7267_v11, %v1668_v23 }
 0x27e   : > { %4850 = vmatmul.mubr.msk.f32.gmra.mrb[130].mxu0 %vm471_vm0, %v1989_v54  ;;  %v1936_v54 = vadd.f32 %v7267_v11, %v1658_v8  ;;  %v1514_v61 = vpop.permute.xlu1 %1513  ;;  %v1693_v2 = vpop.permute.xlu0 %1692 }
 0x27f   : > { %2496 = vmatprep.mubr.f32.mxu0 %v8546_v55  ;;  %v1673_v22 = vadd.f32 %v7399_v29, %v1514_v61  ;;  %v2002_v49 = vmax.f32 %v1938_v51, 0.0  ;;  %v1807_v16 = vadd.f32 %v7413_v42, %v1693_v2 }
 0x280   : > { %v2000_v60 = vmax.f32 %v1936_v54, 0.0 }
 0x281   : > { %v1940_v12 = vadd.f32 %v7267_v11, %v1807_v16 }
 0x282   : > { %4851 = vmatmul.mubr.msk.f32.gmra.mrb[132].mxu0 %vm471_vm0, %v1990_v63  ;;  %v2001_v63 = vmax.f32 %v1937_v57, 0.0  ;;  %v1695_v0 = vpop.permute.xlu1 %1694 }
 0x283   : > { %2502 = vmatprep.mubr.f32.mxu0 %v8546_v55  ;;  %v1812_v29 = vadd.f32 %v7408_v14, %v1695_v0  ;;  %v2004_v18 = vmax.f32 %v1940_v12, 0.0 }
 0x285   : > { %v1941_v58 = vadd.f32 %v7267_v11, %v1812_v29 }
 0x286   : > { %4852 = vmatmul.mubr.msk.f32.gmra.mrb[134].mxu0 %vm471_vm0, %v1991_v25  ;;  %v1939_v25 = vadd.f32 %v7267_v11, %v1673_v22 }
 0x287   : > { %2508 = vmatprep.mubr.f32.mxu0 %v8546_v55  ;;  %v2005_v56 = vmax.f32 %v1941_v58, 0.0 }
 0x288   : > { %v2003_v9 = vmax.f32 %v1939_v25, 0.0 }
 0x28a   : > { %4853 = vmatmul.mubr.msk.f32.gmra.mrb[136].mxu0 %vm471_vm0, %v1992_v17  ;;  %v1697_v17 = vpop.permute.xlu0 %1696 }
 0x28b   : > { %2514 = vmatprep.mubr.f32.mxu0 %v8546_v55  ;;  %v1817_v42 = vadd.f32 %v7421_v50, %v1697_v17 }
 0x28d   : > { %v1942_v10 = vadd.f32 %v7267_v11, %v1817_v42 }
 0x28e   : > { %4854 = vmatmul.mubr.msk.f32.gmra.mrb[138].mxu0 %vm471_vm0, %v1993_v19  ;;  %v1699_v19 = vpop.permute.xlu1 %1698  ;;  %v1701_v31 = vpop.permute.xlu0 %1700 }
 0x28f   : > { %2520 = vmatprep.mubr.f32.mxu0 %v8546_v55  ;;  %v1822_v14 = vadd.f32 %v7416_v46, %v1699_v19  ;;  %v1827_v50 = vadd.f32 %v7429_v59, %v1701_v31 }
 0x291   : > { %v1943_v26 = vadd.f32 %v7267_v11, %v1822_v14 }
 0x292   : > { %4855 = vmatmul.mubr.msk.f32.gmra.mrb[140].mxu0 %vm471_vm0, %v1994_v28  ;;  %v2006_v28 = vmax.f32 %v1942_v10, 0.0  ;;  %v1703_v1 = vpop.permute.xlu1 %1702  ;;  %v1705_v62 = vpop.permute.xlu0 %1704 }
 0x293   : > { %2526 = vmatprep.mubr.f32.mxu0 %v8546_v55  ;;  %v2007_v30 = vmax.f32 %v1943_v26, 0.0  ;;  %v1832_v46 = vadd.f32 %v7424_v52, %v1703_v1  ;;  %v1837_v59 = vadd.f32 %v7437_v3, %v1705_v62 }
 0x295   : > { %v1945_v35 = vadd.f32 %v7267_v11, %v1832_v46  ;;  %v1946_v7 = vadd.f32 %v7267_v11, %v1837_v59 }
 0x296   : > { %4856 = vmatmul.mubr.msk.f32.gmra.mrb[142].mxu0 %vm471_vm0, %v1995_v34  ;;  %v1944_v34 = vadd.f32 %v7267_v11, %v1827_v50  ;;  %v1707_v38 = vpop.permute.xlu1 %1706  ;;  %v1709_v5 = vpop.permute.xlu0 %1708 }
 0x297   : > { %2532 = vmatprep.mubr.f32.mxu0 %v8546_v55  ;;  %v1842_v52 = vadd.f32 %v7432_v27, %v1707_v38  ;;  %v2010_v21 = vmax.f32 %v1946_v7, 0.0  ;;  %v1847_v47 = vadd.f32 %v7445_v13, %v1709_v5 }
 0x298   : > { %v2008_v36 = vmax.f32 %v1944_v34, 0.0 }
 0x299   : > { %v1947_v3 = vadd.f32 %v7267_v11, %v1842_v52  ;;  %v1948_v15 = vadd.f32 %v7267_v11, %v1847_v47 }
 0x29a   : > { %4857 = vmatmul.mubr.msk.f32.gmra.mrb[144].mxu0 %vm471_vm0, %v1996_v37  ;;  %v2009_v37 = vmax.f32 %v1945_v35, 0.0  ;;  %v1711_v27 = vpop.permute.xlu1 %1710  ;;  %v1713_v13 = vpop.permute.xlu0 %1712 }
 0x29b   : > { %2538 = vmatprep.mubr.f32.mxu0 %v8546_v55  ;;  %v2011_v20 = vmax.f32 %v1947_v3, 0.0  ;;  %v1857_v23 = vadd.f32 %v7453_v6, %v1713_v13 }
 0x29d   : > { %v1950_v25 = vadd.f32 %v7267_v11, %v1857_v23  ;;  %v6625_v23 = vld [vmem:[%s7074_s12 + $0x8] sm:$0xff] }
 0x29e   : > { %4858 = vmatmul.mubr.msk.f32.gmra.mrb[146].mxu0 %vm471_vm0, %v1997_v44  ;;  %v1715_v22 = vpop.permute.xlu1 %1714  ;;  %v1717_v6 = vpop.permute.xlu0 %1716 }
 0x29f   : > { %2544 = vmatprep.mubr.f32.mxu0 %v8546_v55  ;;  %v1862_v2 = vadd.f32 %v7448_v33, %v1715_v22  ;;  %v1867_v29 = vadd.f32 %v7461_v32, %v1717_v6 }
 0x2a1   : > { %v1951_v0 = vadd.f32 %v7267_v11, %v1862_v2  ;;  %v1952_v19 = vadd.f32 %v7267_v11, %v1867_v29  ;;  %v6627_v2 = vld [vmem:[%s7074_s12 + $0x18] sm:$0xff]  ;;  %v6630_v29 = vld [vmem:[%s7074_s12 + $0x30] sm:$0xff] }
 0x2a2   : > { %4859 = vmatmul.mubr.msk.f32.gmra.mrb[148].mxu0 %vm471_vm0, %v1998_v45  ;;  %v1719_v58 = vpop.permute.xlu1 %1718  ;;  %v1721_v32 = vpop.permute.xlu0 %1720 }
 0x2a3   : > { %2550 = vmatprep.mubr.f32.mxu0 %v8546_v55  ;;  %v1872_v42 = vadd.f32 %v7456_v24, %v1719_v58  ;;  %v2016_v31 = vmax.f32 %v1952_v19, 0.0  ;;  %v1877_v26 = vadd.f32 %v7469_v40, %v1721_v32  ;;  %v6631_v58 = vld [vmem:[%s7074_s12 + $0x38] sm:$0xff] }
 0x2a5   : > { %v1953_v10 = vadd.f32 %v7267_v11, %v1872_v42  ;;  %v1954_v34 = vadd.f32 %v7267_v11, %v1877_v26  ;;  %v6632_v42 = vld [vmem:[%s7074_s12 + $0x40] sm:$0xff] }
 0x2a6   : > { %4860 = vmatmul.mubr.msk.f32.gmra.mrb[150].mxu0 %vm471_vm0, %v1999_v53  ;;  %v1852_v53 = vadd.f32 %v7440_v4, %v1711_v27  ;;  %v1723_v1 = vpop.permute.xlu1 %1722 }
 0x2a7   : > { %2556 = vmatprep.mubr.f32.mxu0 %v8546_v55  ;;  %v1882_v46 = vadd.f32 %v7464_v39, %v1723_v1  ;;  %v6636_v1 = vld [vmem:[%s7074_s12 + $0x60] sm:$0xff] }
 0x2a8   : > { %v1949_v57 = vadd.f32 %v7267_v11, %v1852_v53 }
 0x2a9   : > { %v1955_v40 = vadd.f32 %v7267_v11, %v1882_v46  ;;  %v6637_v46 = vld [vmem:[%s7074_s12 + $0x68] sm:$0xff] }
 0x2aa   : > { %4861 = vmatmul.mubr.msk.f32.gmra.mrb[152].mxu0 %vm471_vm0, %v2000_v60  ;;  %v2012_v60 = vmax.f32 %v1948_v15, 0.0  ;;  %v2013_v51 = vmax.f32 %v1949_v57, 0.0 }
 0x2ab   : > { %2562 = vmatprep.mubr.f32.mxu0 %v8546_v55  ;;  %v2019_v39 = vmax.f32 %v1955_v40, 0.0 }
 0x2ae   : > { %4862 = vmatmul.mubr.msk.f32.gmra.mrb[154].mxu0 %vm471_vm0, %v2001_v63 }
 0x2af   : > { %2568 = vmatprep.mubr.f32.mxu0 %v8546_v55 }
 0x2b2   : > { %4863 = vmatmul.mubr.msk.f32.gmra.mrb[156].mxu0 %vm471_vm0, %v2002_v49 }
 0x2b3   : > { %2574 = vmatprep.mubr.f32.mxu0 %v8546_v55 }
 0x2b6   : > { %4864 = vmatmul.mubr.msk.f32.gmra.mrb[158].mxu0 %vm471_vm0, %v2003_v9  ;;  %v2014_v9 = vmax.f32 %v1950_v25, 0.0 }
 0x2b7   : > { %2580 = vmatprep.mubr.f32.mxu0 %v8546_v55 }
 0x2ba   : > { %4865 = vmatmul.mubr.msk.f32.gmra.mrb[160].mxu0 %vm471_vm0, %v2004_v18  ;;  %v2015_v18 = vmax.f32 %v1951_v0, 0.0  ;;  %v6629_v0 = vld [vmem:[%s7074_s12 + $0x28] sm:$0xff] }
 0x2bb   : > { %2586 = vmatprep.mubr.f32.mxu0 %v8546_v55 }
 0x2be   : > { %4866 = vmatmul.mubr.msk.f32.gmra.mrb[162].mxu0 %vm471_vm0, %v2005_v56 }
 0x2bf   : > { %2592 = vmatprep.mubr.f32.mxu0 %v8546_v55 }
 0x2c2   : > { %4867 = vmatmul.mubr.msk.f32.gmra.mrb[164].mxu0 %vm471_vm0, %v2006_v28 }
 0x2c3   : > { %2598 = vmatprep.mubr.f32.mxu0 %v8546_v55 }
 0x2c6   : > { %4868 = vmatmul.mubr.msk.f32.gmra.mrb[166].mxu0 %vm471_vm0, %v2007_v30  ;;  %v2017_v30 = vmax.f32 %v1953_v10, 0.0  ;;  %v6634_v10 = vld [vmem:[%s7074_s12 + $0x50] sm:$0xff] }
 0x2c7   : > { %2604 = vmatprep.mubr.f32.mxu0 %v8546_v55 }
 0x2ca   : > { %4869 = vmatmul.mubr.msk.f32.gmra.mrb[168].mxu0 %vm471_vm0, %v2008_v36  ;;  %v2018_v36 = vmax.f32 %v1954_v34, 0.0 }
 0x2cb   : > { %2610 = vmatprep.mubr.f32.mxu0 %v8546_v55 }
 0x2cd   : > { %v2294_v41 = vpop.f32.mrb[64].mxu0 }
 0x2ce   : > { %v7563_v44 = vpop.f32.mrb[65].mxu0  ;;  %4870 = vmatmul.mubr.msk.f32.gmra.mrb[170].mxu0 %vm471_vm0, %v2009_v37 }
 0x2cf   : > { %2616 = vmatprep.mubr.f32.mxu0 %v8546_v55 }
 0x2d1   : > { %v2300_v48 = vpop.f32.mrb[66].mxu0 }
 0x2d2   : > { %v6293_v45 = vpack.c.bf16 %v2300_v48, %v2294_v41  ;;  %v7569_v8 = vpop.f32.mrb[67].mxu0  ;;  %4871 = vmatmul.mubr.msk.f32.gmra.mrb[172].mxu0 %vm471_vm0, %v2010_v21  ;;  %v6624_v41 = vld [vmem:[%s7074_s12] sm:$0xff] }
 0x2d3   : > { %2622 = vmatprep.mubr.f32.mxu0 %v8546_v55 }
 0x2d4   : > { %6294 = vmatprep.subr.bf16.mxu1 %v6293_v45 }
 0x2d5   : > { %v2306_v54 = vpop.f32.mrb[68].mxu0  ;;  %6296 = vmatpush3.bf16.msra.mxu1 %v6293_v45 }
 0x2d6   : > { %v7575_v43 = vpop.f32.mrb[69].mxu0  ;;  %4872 = vmatmul.mubr.msk.f32.gmra.mrb[174].mxu0 %vm471_vm0, %v2011_v20 }
 0x2d7   : > { %2628 = vmatprep.mubr.f32.mxu0 %v8546_v55 }
 0x2d9   : > { %v2312_v61 = vpop.f32.mrb[70].mxu0 }
 0x2da   : > { %v6297_v63 = vpack.c.bf16 %v2312_v61, %v2306_v54  ;;  %v7581_v4 = vpop.f32.mrb[71].mxu0  ;;  %4873 = vmatmul.mubr.msk.f32.gmra.mrb[176].mxu0 %vm471_vm0, %v2012_v60 }
 0x2db   : > { %2634 = vmatprep.mubr.f32.mxu0 %v8546_v55 }
 0x2dc   : > { %6298 = vmatprep.subr.bf16.mxu1 %v6297_v63 }
 0x2dd   : > { %v2318_v49 = vpop.f32.mrb[72].mxu0  ;;  %6300 = vmatpush3.bf16.msra.mxu1 %v6297_v63  ;;  %v6626_v63 = vld [vmem:[%s7074_s12 + $0x10] sm:$0xff] }
 0x2de   : > { %v7587_v16 = vpop.f32.mrb[73].mxu0  ;;  %4874 = vmatmul.mubr.msk.f32.gmra.mrb[178].mxu0 %vm471_vm0, %v2013_v51 }
 0x2df   : > { %2640 = vmatprep.mubr.f32.mxu0 %v8546_v55 }
 0x2e1   : > { %v2324_v12 = vpop.f32.mrb[74].mxu0 }
 0x2e2   : > { %v6301_v17 = vpack.c.bf16 %v2324_v12, %v2318_v49  ;;  %v7593_v33 = vpop.f32.mrb[75].mxu0  ;;  %4875 = vmatmul.mubr.msk.f32.gmra.mrb[180].mxu0 %vm471_vm0, %v2014_v9  ;;  %v6628_v49 = vld [vmem:[%s7074_s12 + $0x20] sm:$0xff] }
 0x2e3   : > { %2646 = vmatprep.mubr.f32.mxu0 %v8546_v55 }
 0x2e4   : > { %6302 = vmatprep.subr.bf16.mxu1 %v6301_v17 }
 0x2e5   : > { %v2330_v56 = vpop.f32.mrb[76].mxu0  ;;  %6304 = vmatpush3.bf16.msra.mxu1 %v6301_v17 }
 0x2e6   : > { %v7599_v14 = vpop.f32.mrb[77].mxu0  ;;  %4876 = vmatmul.mubr.msk.f32.gmra.mrb[182].mxu0 %vm471_vm0, %v2015_v18 }
 0x2e7   : > { %2652 = vmatprep.mubr.f32.mxu0 %v8546_v55 }
 0x2e9   : > { %v2336_v28 = vpop.f32.mrb[78].mxu0 }
 0x2ea   : > { %v6305_v50 = vpack.c.bf16 %v2336_v28, %v2330_v56  ;;  %v7605_v24 = vpop.f32.mrb[79].mxu0  ;;  %4877 = vmatmul.mubr.msk.f32.gmra.mrb[184].mxu0 %vm471_vm0, %v2016_v31  ;;  %v6633_v56 = vld [vmem:[%s7074_s12 + $0x48] sm:$0xff]  ;;  %v6635_v28 = vld [vmem:[%s7074_s12 + $0x58] sm:$0xff] }
 0x2eb   : > { %2658 = vmatprep.mubr.f32.mxu0 %v8546_v55 }
 0x2ec   : > { %6306 = vmatprep.subr.bf16.mxu1 %v6305_v50 }
 0x2ed   : > { %v2342_v62 = vpop.f32.mrb[80].mxu0  ;;  %6308 = vmatpush3.bf16.msra.mxu1 %v6305_v50 }
 0x2ee   : > { %v7611_v35 = vpop.f32.mrb[81].mxu0  ;;  %4878 = vmatmul.mubr.msk.f32.gmra.mrb[186].mxu0 %vm471_vm0, %v2017_v30 }
 0x2ef   : > { %2664 = vmatprep.mubr.f32.mxu0 %v8546_v55 }
 0x2f1   : > { %v2348_v59 = vpop.f32.mrb[82].mxu0 }
 0x2f2   : > { %v6309_v38 = vpack.c.bf16 %v2348_v59, %v2342_v62  ;;  %v7616_v37 = vpop.f32.mrb[83].mxu0  ;;  %4879 = vmatmul.mubr.msk.f32.gmra.mrb[188].mxu0 %vm471_vm0, %v2018_v36  ;;  %v6638_v62 = vld [vmem:[%s7074_s12 + $0x70] sm:$0xff]  ;;  %v6639_v59 = vld [vmem:[%s7074_s12 + $0x78] sm:$0xff] }
 0x2f3   : > { %2670 = vmatprep.mubr.f32.mxu0 %v8546_v55  ;;  %v6669_v55 = vld [vmem:[%s7074_s12 + $0x168] sm:$0xff] }
 0x2f4   : > { %6310 = vmatprep.subr.bf16.mxu1 %v6309_v38 }
 0x2f5   : > { %v2354_v52 = vpop.f32.mrb[84].mxu0  ;;  %6312 = vmatpush3.bf16.msra.mxu1 %v6309_v38 }
 0x2f6   : > { %v7620_v7 = vpop.f32.mrb[85].mxu0  ;;  %4880 = vmatmul.mubr.msk.f32.gmra.mrb[190].mxu0 %vm471_vm0, %v2019_v39  ;;  %v6640_v39 = vld [vmem:[%s7074_s12 + $0x80] sm:$0xff] }
 0x2f7   : > { %5941 = vmatprep.mubr.f32.mxu0 %v6624_v41 }
 0x2f9   : > { %v2360_v11 = vpop.f32.mrb[86].mxu0 }
 0x2fa   : > { %v6313_v5 = vpack.c.bf16 %v2360_v11, %v2354_v52  ;;  %v7624_v3 = vpop.f32.mrb[87].mxu0 }
 0x2fc   : > { %6314 = vmatprep.subr.bf16.mxu1 %v6313_v5 }
 0x2fd   : > { %v2366_v21 = vpop.f32.mrb[88].mxu0  ;;  %6316 = vmatpush3.bf16.msra.mxu1 %v6313_v5 }
 0x2fe   : > { %v7626_v47 = vpop.f32.mrb[89].mxu0 }
 0x301   : > { %v2372_v48 = vpop.f32.mrb[90].mxu0 }
 0x302   : > { %v6317_v45 = vpack.c.bf16 %v2372_v48, %v2366_v21  ;;  %v7628_v27 = vpop.f32.mrb[91].mxu0 }
 0x304   : > { %6318 = vmatprep.subr.bf16.mxu1 %v6317_v45 }
 0x305   : > { %v2378_v20 = vpop.f32.mrb[92].mxu0  ;;  %6320 = vmatpush3.bf16.msra.mxu1 %v6317_v45 }
 0x306   : > { %v7630_v53 = vpop.f32.mrb[93].mxu0 }
 0x309   : > { %v2384_v15 = vpop.f32.mrb[94].mxu0 }
 0x30a   : > { %v6321_v54 = vpack.c.bf16 %v2384_v15, %v2378_v20  ;;  %v7632_v13 = vpop.f32.mrb[95].mxu0 }
 0x30c   : > { %6322 = vmatprep.subr.bf16.mxu1 %v6321_v54 }
 0x30d   : > { %v2390_v57 = vpop.f32.mrb[96].mxu0  ;;  %6324 = vmatpush3.bf16.msra.mxu1 %v6321_v54 }
 0x30e   : > { %v7634_v60 = vpop.f32.mrb[97].mxu0 }
 0x310   : > { %5718 = vmatmul.mubr.f32.vlgmr.msra.gmra.mrb[64].mxu1 %v6625_v23 }
 0x311   : > { %v2396_v61 = vpop.f32.mrb[98].mxu0  ;;  %5720 = vmatprep.mubr.f32.mxu1 %v6626_v63 }
 0x312   : > { %v6325_v22 = vpack.c.bf16 %v2396_v61, %v2390_v57  ;;  %v7638_v51 = vpop.f32.mrb[99].mxu0 }
 0x314   : > { %5721 = vmatmul.mubr.f32.gmra.mrb[66].mxu1 %v6627_v2  ;;  %6326 = vmatprep.subr.bf16.mxu1 %v6325_v22 }
 0x315   : > { %v2402_v25 = vpop.f32.mrb[100].mxu0  ;;  %6328 = vmatpush3.bf16.msra.mxu1 %v6325_v22  ;;  %5723 = vmatprep.mubr.f32.mxu1 %v6628_v49 }
 0x316   : > { %v7642_v6 = vpop.f32.mrb[101].mxu0 }
 0x318   : > { %5724 = vmatmul.mubr.f32.gmra.mrb[68].mxu1 %v6629_v0 }
 0x319   : > { %v2408_v9 = vpop.f32.mrb[102].mxu0  ;;  %5726 = vmatprep.mubr.f32.mxu1 %v6630_v29 }
 0x31a   : > { %v6329_v12 = vpack.c.bf16 %v2408_v9, %v2402_v25  ;;  %v7646_v17 = vpop.f32.mrb[103].mxu0 }
 0x31c   : > { %5727 = vmatmul.mubr.f32.gmra.mrb[70].mxu1 %v6631_v58  ;;  %6330 = vmatprep.subr.bf16.mxu1 %v6329_v12 }
 0x31d   : > { %v2414_v18 = vpop.f32.mrb[104].mxu0  ;;  %6332 = vmatpush3.bf16.msra.mxu1 %v6329_v12  ;;  %5729 = vmatprep.mubr.f32.mxu1 %v6632_v42  ;;  %v6641_v12 = vld [vmem:[%s7074_s12 + $0x88] sm:$0xff] }
 0x31e   : > { %v7650_v19 = vpop.f32.mrb[105].mxu0 }
 0x320   : > { %5730 = vmatmul.mubr.f32.gmra.mrb[72].mxu1 %v6633_v56 }
 0x321   : > { %v2420_v32 = vpop.f32.mrb[106].mxu0  ;;  %5732 = vmatprep.mubr.f32.mxu1 %v6634_v10 }
 0x322   : > { %v6333_v31 = vpack.c.bf16 %v2420_v32, %v2414_v18  ;;  %v7654_v26 = vpop.f32.mrb[107].mxu0  ;;  %v6642_v18 = vld [vmem:[%s7074_s12 + $0x90] sm:$0xff]  ;;  %v6643_v32 = vld [vmem:[%s7074_s12 + $0x98] sm:$0xff] }
 0x324   : > { %5733 = vmatmul.mubr.f32.gmra.mrb[74].mxu1 %v6635_v28  ;;  %6334 = vmatprep.subr.bf16.mxu1 %v6333_v31 }
 0x325   : > { %v2426_v50 = vpop.f32.mrb[108].mxu0  ;;  %6336 = vmatpush3.bf16.msra.mxu1 %v6333_v31  ;;  %5735 = vmatprep.mubr.f32.mxu1 %v6636_v1  ;;  %v6644_v31 = vld [vmem:[%s7074_s12 + $0xa0] sm:$0xff] }
 0x326   : > { %v7658_v30 = vpop.f32.mrb[109].mxu0 }
 0x328   : > { %5736 = vmatmul.mubr.f32.gmra.mrb[76].mxu1 %v6637_v46  ;;  %v6646_v46 = vld [vmem:[%s7074_s12 + $0xb0] sm:$0xff] }
 0x329   : > { %v2432_v34 = vpop.f32.mrb[110].mxu0  ;;  %5738 = vmatprep.mubr.f32.mxu1 %v6638_v62 }
 0x32a   : > { %v6337_v40 = vpack.c.bf16 %v2432_v34, %v2426_v50  ;;  %v7662_v36 = vpop.f32.mrb[111].mxu0  ;;  %v6645_v50 = vld [vmem:[%s7074_s12 + $0xa8] sm:$0xff] }
 0x32c   : > { %5739 = vmatmul.mubr.f32.gmra.mrb[78].mxu1 %v6639_v59  ;;  %6338 = vmatprep.subr.bf16.mxu1 %v6337_v40 }
 0x32d   : > { %v2438_v38 = vpop.f32.mrb[112].mxu0  ;;  %6340 = vmatpush3.bf16.msra.mxu1 %v6337_v40  ;;  %5773 = vmatprep.mubr.f32.mxu1 %v6640_v39  ;;  %v6647_v40 = vld [vmem:[%s7074_s12 + $0xb8] sm:$0xff] }
 0x32e   : > { %v7666_v52 = vpop.f32.mrb[113].mxu0 }
 0x331   : > { %v2444_v41 = vpop.f32.mrb[114].mxu0 }
 0x332   : > { %v6341_v11 = vpack.c.bf16 %v2444_v41, %v2438_v38  ;;  %v7668_v5 = vpop.f32.mrb[115].mxu0  ;;  %v6648_v38 = vld [vmem:[%s7074_s12 + $0xc0] sm:$0xff]  ;;  %v6649_v41 = vld [vmem:[%s7074_s12 + $0xc8] sm:$0xff] }
 0x334   : > { %6342 = vmatprep.subr.bf16.mxu1 %v6341_v11 }
 0x335   : > { %v2450_v21 = vpop.f32.mrb[116].mxu0  ;;  %6344 = vmatpush3.bf16.msra.mxu1 %v6341_v11 }
 0x336   : > { %v7670_v48 = vpop.f32.mrb[117].mxu0 }
 0x339   : > { %v2456_v45 = vpop.f32.mrb[118].mxu0 }
 0x33a   : > { %v6345_v20 = vpack.c.bf16 %v2456_v45, %v2450_v21  ;;  %v7672_v15 = vpop.f32.mrb[119].mxu0  ;;  %v6650_v21 = vld [vmem:[%s7074_s12 + $0xd0] sm:$0xff] }
 0x33c   : > { %6346 = vmatprep.subr.bf16.mxu1 %v6345_v20 }
 0x33d   : > { %v2462_v54 = vpop.f32.mrb[120].mxu0  ;;  %6348 = vmatpush3.bf16.msra.mxu1 %v6345_v20 }
 0x33e   : > { %v7674_v57 = vpop.f32.mrb[121].mxu0 }
 0x341   : > { %v2468_v23 = vpop.f32.mrb[122].mxu0 }
 0x342   : > { %v6349_v61 = vpack.c.bf16 %v2468_v23, %v2462_v54  ;;  %v7676_v63 = vpop.f32.mrb[123].mxu0  ;;  %v6651_v54 = vld [vmem:[%s7074_s12 + $0xd8] sm:$0xff] }
 0x344   : > { %6350 = vmatprep.subr.bf16.mxu1 %v6349_v61 }
 0x345   : > { %v2474_v22 = vpop.f32.mrb[124].mxu0  ;;  %6352 = vmatpush3.bf16.msra.mxu1 %v6349_v61  ;;  %v6652_v61 = vld [vmem:[%s7074_s12 + $0xe0] sm:$0xff] }
 0x346   : > { %v7678_v2 = vpop.f32.mrb[125].mxu0 }
 0x349   : > { %v2480_v25 = vpop.f32.mrb[126].mxu0 }
 0x34a   : > { %v6353_v49 = vpack.c.bf16 %v2480_v25, %v2474_v22  ;;  %v7680_v0 = vpop.f32.mrb[127].mxu0  ;;  %v6653_v25 = vld [vmem:[%s7074_s12 + $0xe8] sm:$0xff] }
 0x34c   : > { %6354 = vmatprep.subr.bf16.mxu1 %v6353_v49 }
 0x34d   : > { %v2486_v9 = vpop.f32.mrb[128].mxu0  ;;  %6356 = vmatpush3.bf16.msra.mxu1 %v6353_v49 }
 0x34e   : > { %v7682_v29 = vpop.f32.mrb[129].mxu0 }
 0x350   : > { %5774 = vmatmul.mubr.f32.vlgmr.msra.gmra.mrb[80].mxu1 %v6641_v12 }
 0x351   : > { %v2492_v58 = vpop.f32.mrb[130].mxu0  ;;  %5776 = vmatprep.mubr.f32.mxu1 %v6642_v18  ;;  %v6655_v18 = vld [vmem:[%s7074_s12 + $0xf8] sm:$0xff] }
 0x352   : > { %v6357_v42 = vpack.c.bf16 %v2492_v58, %v2486_v9  ;;  %v7686_v56 = vpop.f32.mrb[131].mxu0  ;;  %v6654_v9 = vld [vmem:[%s7074_s12 + $0xf0] sm:$0xff] }
 0x354   : > { %5777 = vmatmul.mubr.f32.gmra.mrb[82].mxu1 %v6643_v32  ;;  %6358 = vmatprep.subr.bf16.mxu1 %v6357_v42  ;;  %v6656_v32 = vld [vmem:[%s7074_s12 + $0x100] sm:$0xff] }
 0x355   : > { %v2498_v10 = vpop.f32.mrb[132].mxu0  ;;  %6360 = vmatpush3.bf16.msra.mxu1 %v6357_v42  ;;  %5779 = vmatprep.mubr.f32.mxu1 %v6644_v31 }
 0x356   : > { %v7690_v28 = vpop.f32.mrb[133].mxu0 }
 0x358   : > { %5780 = vmatmul.mubr.f32.gmra.mrb[84].mxu1 %v6645_v50 }
 0x359   : > { %v2504_v1 = vpop.f32.mrb[134].mxu0  ;;  %5782 = vmatprep.mubr.f32.mxu1 %v6646_v46 }
 0x35a   : > { %v6361_v34 = vpack.c.bf16 %v2504_v1, %v2498_v10  ;;  %v7694_v62 = vpop.f32.mrb[135].mxu0 }
 0x35c   : > { %5783 = vmatmul.mubr.f32.gmra.mrb[86].mxu1 %v6647_v40  ;;  %6362 = vmatprep.subr.bf16.mxu1 %v6361_v34 }
 0x35d   : > { %v2510_v59 = vpop.f32.mrb[136].mxu0  ;;  %6364 = vmatpush3.bf16.msra.mxu1 %v6361_v34  ;;  %5785 = vmatprep.mubr.f32.mxu1 %v6648_v38 }
 0x35e   : > { %v7698_v39 = vpop.f32.mrb[137].mxu0 }
 0x360   : > { %5786 = vmatmul.mubr.f32.gmra.mrb[88].mxu1 %v6649_v41 }
 0x361   : > { %v2516_v11 = vpop.f32.mrb[138].mxu0  ;;  %5788 = vmatprep.mubr.f32.mxu1 %v6650_v21 }
 0x362   : > { %v6365_v45 = vpack.c.bf16 %v2516_v11, %v2510_v59  ;;  %v7702_v20 = vpop.f32.mrb[139].mxu0 }
 0x364   : > { %5789 = vmatmul.mubr.f32.gmra.mrb[90].mxu1 %v6651_v54  ;;  %6366 = vmatprep.subr.bf16.mxu1 %v6365_v45 }
 0x365   : > { %v2522_v23 = vpop.f32.mrb[140].mxu0  ;;  %6368 = vmatpush3.bf16.msra.mxu1 %v6365_v45  ;;  %5791 = vmatprep.mubr.f32.mxu1 %v6652_v61 }
 0x366   : > { %v7706_v22 = vpop.f32.mrb[141].mxu0 }
 0x368   : > { %5792 = vmatmul.mubr.f32.gmra.mrb[92].mxu1 %v6653_v25 }
 0x369   : > { %v2528_v49 = vpop.f32.mrb[142].mxu0  ;;  %5794 = vmatprep.mubr.f32.mxu1 %v6654_v9 }
 0x36a   : > { %v6369_v12 = vpack.c.bf16 %v2528_v49, %v2522_v23  ;;  %v7710_v58 = vpop.f32.mrb[143].mxu0 }
 0x36c   : > { %5795 = vmatmul.mubr.f32.gmra.mrb[94].mxu1 %v6655_v18  ;;  %6370 = vmatprep.subr.bf16.mxu1 %v6369_v12 }
 0x36d   : > { %v2534_v42 = vpop.f32.mrb[144].mxu0  ;;  %6372 = vmatpush3.bf16.msra.mxu1 %v6369_v12  ;;  %5829 = vmatprep.mubr.f32.mxu1 %v6656_v32 }
 0x36e   : > { %v7714_v10 = vpop.f32.mrb[145].mxu0 }
 0x371   : > { %v2540_v31 = vpop.f32.mrb[146].mxu0 }
 0x372   : > { %v6373_v50 = vpack.c.bf16 %v2540_v31, %v2534_v42  ;;  %v7716_v1 = vpop.f32.mrb[147].mxu0  ;;  %v6657_v42 = vld [vmem:[%s7074_s12 + $0x108] sm:$0xff]  ;;  %v6658_v31 = vld [vmem:[%s7074_s12 + $0x110] sm:$0xff] }
 0x374   : > { %6374 = vmatprep.subr.bf16.mxu1 %v6373_v50 }
 0x375   : > { %v2546_v46 = vpop.f32.mrb[148].mxu0  ;;  %6376 = vmatpush3.bf16.msra.mxu1 %v6373_v50 }
 0x376   : > { %v7718_v34 = vpop.f32.mrb[149].mxu0 }
 0x379   : > { %v2552_v40 = vpop.f32.mrb[150].mxu0 }
 0x37a   : > { %v6377_v59 = vpack.c.bf16 %v2552_v40, %v2546_v46  ;;  %v7720_v38 = vpop.f32.mrb[151].mxu0  ;;  %v6659_v40 = vld [vmem:[%s7074_s12 + $0x118] sm:$0xff] }
 0x37c   : > { %6378 = vmatprep.subr.bf16.mxu1 %v6377_v59 }
 0x37d   : > { %v2558_v41 = vpop.f32.mrb[152].mxu0  ;;  %6380 = vmatpush3.bf16.msra.mxu1 %v6377_v59 }
 0x37e   : > { %v7722_v11 = vpop.f32.mrb[153].mxu0 }
 0x381   : > { %v2564_v21 = vpop.f32.mrb[154].mxu0 }
 0x382   : > { %v6381_v45 = vpack.c.bf16 %v2564_v21, %v2558_v41  ;;  %v7724_v54 = vpop.f32.mrb[155].mxu0  ;;  %v6660_v41 = vld [vmem:[%s7074_s12 + $0x120] sm:$0xff] }
 0x384   : > { %6382 = vmatprep.subr.bf16.mxu1 %v6381_v45 }
 0x385   : > { %v2570_v23 = vpop.f32.mrb[156].mxu0  ;;  %6384 = vmatpush3.bf16.msra.mxu1 %v6381_v45  ;;  %v6661_v45 = vld [vmem:[%s7074_s12 + $0x128] sm:$0xff] }
 0x386   : > { %v7726_v61 = vpop.f32.mrb[157].mxu0 }
 0x387   : > { %8550 = vst [vmem:[#allocation5_spill] sm:$0xff] %v7726_v61  ;;  %v6687_v61 = vld [vmem:[%s7074_s12 + $0x1f8] sm:$0xff] }
 0x389   : > { %v2576_v25 = vpop.f32.mrb[158].mxu0 }
 0x38a   : > { %v6385_v49 = vpack.c.bf16 %v2576_v25, %v2570_v23  ;;  %v7728_v9 = vpop.f32.mrb[159].mxu0  ;;  %v6662_v25 = vld [vmem:[%s7074_s12 + $0x130] sm:$0xff] }
 0x38c   : > { %6386 = vmatprep.subr.bf16.mxu1 %v6385_v49 }
 0x38d   : > { %v2582_v12 = vpop.f32.mrb[160].mxu0  ;;  %6388 = vmatpush3.bf16.msra.mxu1 %v6385_v49 }
 0x38e   : > { %v7730_v18 = vpop.f32.mrb[161].mxu0 }
 0x38f   : > { %8551 = vst [vmem:[#allocation6_spill] sm:$0xff] %v7730_v18  ;;  %v3420_v18 = vld [vmem:[%s8543_s6 + $0xe0] sm:$0xff] }
 0x390   : > { %5830 = vmatmul.mubr.f32.vlgmr.msra.gmra.mrb[96].mxu1 %v6657_v42  ;;  %v6663_v42 = vld [vmem:[%s7074_s12 + $0x138] sm:$0xff] }
 0x391   : > { %v2588_v32 = vpop.f32.mrb[162].mxu0  ;;  %5832 = vmatprep.mubr.f32.mxu1 %v6658_v31  ;;  %v6664_v31 = vld [vmem:[%s7074_s12 + $0x140] sm:$0xff] }
 0x392   : > { %v6389_v50 = vpack.c.bf16 %v2588_v32, %v2582_v12  ;;  %v7734_v46 = vpop.f32.mrb[163].mxu0 }
 0x393   : > { %8552 = vst [vmem:[#allocation7_spill] sm:$0xff] %v7734_v46 }
 0x394   : > { %5833 = vmatmul.mubr.f32.gmra.mrb[98].mxu1 %v6659_v40  ;;  %6390 = vmatprep.subr.bf16.mxu1 %v6389_v50  ;;  %v6665_v40 = vld [vmem:[%s7074_s12 + $0x148] sm:$0xff] }
 0x395   : > { %v2594_v59 = vpop.f32.mrb[164].mxu0  ;;  %6392 = vmatpush3.bf16.msra.mxu1 %v6389_v50  ;;  %5835 = vmatprep.mubr.f32.mxu1 %v6660_v41 }
 0x396   : > { %v7738_v21 = vpop.f32.mrb[165].mxu0 }
 0x397   : > { %8553 = vst [vmem:[#allocation8_spill] sm:$0xff] %v7738_v21 }
 0x398   : > { %5836 = vmatmul.mubr.f32.gmra.mrb[100].mxu1 %v6661_v45  ;;  %v6666_v45 = vld [vmem:[%s7074_s12 + $0x150] sm:$0xff] }
 0x399   : > { %v2600_v23 = vpop.f32.mrb[166].mxu0  ;;  %5838 = vmatprep.mubr.f32.mxu1 %v6662_v25  ;;  %v6667_v25 = vld [vmem:[%s7074_s12 + $0x158] sm:$0xff] }
 0x39a   : > { %v6393_v49 = vpack.c.bf16 %v2600_v23, %v2594_v59  ;;  %v7742_v12 = vpop.f32.mrb[167].mxu0 }
 0x39b   : > { %8554 = vst [vmem:[#allocation9_spill] sm:$0xff] %v7742_v12 }
 0x39c   : > { %5839 = vmatmul.mubr.f32.gmra.mrb[102].mxu1 %v6663_v42  ;;  %6394 = vmatprep.subr.bf16.mxu1 %v6393_v49  ;;  %v6668_v42 = vld [vmem:[%s7074_s12 + $0x160] sm:$0xff] }
 0x39d   : > { %v2606_v32 = vpop.f32.mrb[168].mxu0  ;;  %6396 = vmatpush3.bf16.msra.mxu1 %v6393_v49  ;;  %5841 = vmatprep.mubr.f32.mxu1 %v6664_v31 }
 0x39e   : > { %v7746_v50 = vpop.f32.mrb[169].mxu0 }
 0x39f   : > { %8555 = vst [vmem:[#allocation10_spill] sm:$0xff] %v7746_v50  ;;  %v6670_v50 = vld [vmem:[%s7074_s12 + $0x170] sm:$0xff] }
 0x3a0   : > { %5842 = vmatmul.mubr.f32.gmra.mrb[104].mxu1 %v6665_v40 }
 0x3a1   : > { %v2612_v41 = vpop.f32.mrb[170].mxu0  ;;  %5844 = vmatprep.mubr.f32.mxu1 %v6666_v45 }
 0x3a2   : > { %v6397_v59 = vpack.c.bf16 %v2612_v41, %v2606_v32  ;;  %v7750_v23 = vpop.f32.mrb[171].mxu0  ;;  %v6671_v41 = vld [vmem:[%s7074_s12 + $0x178] sm:$0xff] }
 0x3a3   : > { %8556 = vst [vmem:[#allocation11_spill] sm:$0xff] %v7750_v23  ;;  %v6672_v23 = vld [vmem:[%s7074_s12 + $0x180] sm:$0xff] }
 0x3a4   : > { %5845 = vmatmul.mubr.f32.gmra.mrb[106].mxu1 %v6667_v25  ;;  %6398 = vmatprep.subr.bf16.mxu1 %v6397_v59 }
 0x3a5   : > { %v2618_v49 = vpop.f32.mrb[172].mxu0  ;;  %6400 = vmatpush3.bf16.msra.mxu1 %v6397_v59  ;;  %5847 = vmatprep.mubr.f32.mxu1 %v6668_v42 }
 0x3a6   : > { %v7754_v31 = vpop.f32.mrb[173].mxu0 }
 0x3a7   : > { %8557 = vst [vmem:[#allocation12_spill] sm:$0xff] %v7754_v31 }
 0x3a8   : > { %5848 = vmatmul.mubr.f32.gmra.mrb[108].mxu1 %v6669_v55 }
 0x3a9   : > { %v2624_v40 = vpop.f32.mrb[174].mxu0  ;;  %5850 = vmatprep.mubr.f32.mxu1 %v6670_v50 }
 0x3aa   : > { %v6401_v45 = vpack.c.bf16 %v2624_v40, %v2618_v49  ;;  %v7758_v32 = vpop.f32.mrb[175].mxu0 }
 0x3ab   : > { %8558 = vst [vmem:[#allocation13_spill] sm:$0xff] %v7758_v32 }
 0x3ac   : > { %5851 = vmatmul.mubr.f32.gmra.mrb[110].mxu1 %v6671_v41  ;;  %6402 = vmatprep.subr.bf16.mxu1 %v6401_v45 }
 0x3ad   : > { %v2630_v25 = vpop.f32.mrb[176].mxu0  ;;  %6404 = vmatpush3.bf16.msra.mxu1 %v6401_v45  ;;  %5885 = vmatprep.mubr.f32.mxu1 %v6672_v23 }
 0x3ae   : > { %v7762_v59 = vpop.f32.mrb[177].mxu0 }
 0x3af   : > { %8559 = vst [vmem:[#allocation14_spill] sm:$0xff] %v7762_v59 }
 0x3b1   : > { %v2636_v42 = vpop.f32.mrb[178].mxu0 }
 0x3b2   : > { %v6405_v21 = vpack.c.bf16 %v2636_v42, %v2630_v25  ;;  %v7764_v31 = vpop.f32.mrb[179].mxu0 }
 0x3b3   : > { %8560 = vst [vmem:[#allocation15_spill] sm:$0xff] %v7764_v31 }
 0x3b4   : > { %6406 = vmatprep.subr.bf16.mxu1 %v6405_v21 }
 0x3b5   : > { %v2642_v55 = vpop.f32.mrb[180].mxu0  ;;  %6408 = vmatpush3.bf16.msra.mxu1 %v6405_v21  ;;  %v3393_v21 = vld [vmem:[%s8543_s6 + $0x8] sm:$0xff] }
 0x3b6   : > { %v7766_v50 = vpop.f32.mrb[181].mxu0 }
 0x3b7   : > { %8561 = vst [vmem:[#allocation16_spill] sm:$0xff] %v7766_v50  ;;  %v3402_v50 = vld [vmem:[%s8543_s6 + $0x50] sm:$0xff] }
 0x3b9   : > { %v2648_v49 = vpop.f32.mrb[182].mxu0 }
 0x3ba   : > { %v6409_v40 = vpack.c.bf16 %v2648_v49, %v2642_v55  ;;  %v7768_v32 = vpop.f32.mrb[183].mxu0  ;;  %v3395_v55 = vld [vmem:[%s8543_s6 + $0x18] sm:$0xff] }
 0x3bb   : > { %8562 = vst [vmem:[#allocation17_spill] sm:$0xff] %v7768_v32  ;;  %v3405_v32 = vld [vmem:[%s8543_s6 + $0x68] sm:$0xff] }
 0x3bc   : > { %6410 = vmatprep.subr.bf16.mxu1 %v6409_v40 }
 0x3bd   : > { %v2654_v41 = vpop.f32.mrb[184].mxu0  ;;  %6412 = vmatpush3.bf16.msra.mxu1 %v6409_v40 }
 0x3be   : > { %v7770_v45 = vpop.f32.mrb[185].mxu0 }
 0x3bf   : > { %8563 = vst [vmem:[#allocation18_spill] sm:$0xff] %v7770_v45 }
 0x3c1   : > { %v2660_v23 = vpop.f32.mrb[186].mxu0 }
 0x3c2   : > { %v6413_v59 = vpack.c.bf16 %v2660_v23, %v2654_v41  ;;  %v7772_v12 = vpop.f32.mrb[187].mxu0  ;;  %v6421_v41 = vpack.c.bf16 %v3395_v55, %v3393_v21  ;;  %v3394_v23 = vld [vmem:[%s8543_s6 + $0x10] sm:$0xff] }
 0x3c3   : > { %8564 = vst [vmem:[#allocation19_spill] sm:$0xff] %v7772_v12  ;;  %v3401_v12 = vld [vmem:[%s8543_s6 + $0x48] sm:$0xff] }
 0x3c4   : > { %6414 = vmatprep.subr.bf16.mxu1 %v6413_v59 }
 0x3c5   : > { %v2666_v25 = vpop.f32.mrb[188].mxu0  ;;  %6416 = vmatpush3.bf16.msra.mxu1 %v6413_v59  ;;  %v3392_v59 = vld [vmem:[%s8543_s6] sm:$0xff] }
 0x3c6   : > { %v7774_v42 = vpop.f32.mrb[189].mxu0  ;;  %v6423_v21 = vpack.c.bf16 %v3394_v23, %v3392_v59 }
 0x3c7   : > { %8565 = vst [vmem:[#allocation20_spill] sm:$0xff] %v7774_v42  ;;  %v3397_v42 = vld [vmem:[%s8543_s6 + $0x28] sm:$0xff] }
 0x3c9   : > { %v2672_v49 = vpop.f32.mrb[190].mxu0 }
 0x3ca   : > { %v6417_v40 = vpack.c.bf16 %v2672_v49, %v2666_v25  ;;  %v7782_v45 = vpop.f32.mrb[191].mxu0  ;;  %v3399_v25 = vld [vmem:[%s8543_s6 + $0x38] sm:$0xff]  ;;  %v3396_v49 = vld [vmem:[%s8543_s6 + $0x20] sm:$0xff] }
 0x3cb   : > { %8566 = vst [vmem:[#allocation21_spill] sm:$0xff] %v7782_v45  ;;  %v6425_v55 = vpack.c.bf16 %v3399_v25, %v3397_v42  ;;  %v3398_v45 = vld [vmem:[%s8543_s6 + $0x30] sm:$0xff]  ;;  %v3400_v25 = vld [vmem:[%s8543_s6 + $0x40] sm:$0xff] }
 0x3cc   : > { %6418 = vmatprep.subr.bf16.mxu1 %v6417_v40  ;;  %v6674_v42 = vld [vmem:[%s7074_s12 + $0x190] sm:$0xff]  ;;  %v6427_v59 = vpack.c.bf16 %v3398_v45, %v3396_v49  ;;  %v6675_v45 = vld [vmem:[%s7074_s12 + $0x198] sm:$0xff] }
 0x3cd   : > { %6420 = vmatpush3.bf16.msra.mxu1 %v6417_v40  ;;  %v3403_v40 = vld [vmem:[%s8543_s6 + $0x58] sm:$0xff] }
 0x3ce   : > { %6422 = vmatprep.subr.bf16.mxu1 %v6421_v41  ;;  %v6673_v41 = vld [vmem:[%s7074_s12 + $0x188] sm:$0xff]  ;;  %v6429_v23 = vpack.c.bf16 %v3403_v40, %v3401_v12  ;;  %v6676_v12 = vld [vmem:[%s7074_s12 + $0x1a0] sm:$0xff] }
 0x3cf   : > { %v3404_v40 = vld [vmem:[%s8543_s6 + $0x60] sm:$0xff] }
 0x3d0   : > { %5886 = vmatmul.mubr.f32.vlgmr.msra.gmra.mrb[112].mxu1 %v6673_v41  ;;  %v3406_v41 = vld [vmem:[%s8543_s6 + $0x70] sm:$0xff] }
 0x3d1   : > { %6424 = vmatpush1.bf16.msra.mxu1 %v6423_v21  ;;  %5888 = vmatprep.mubr.f32.mxu1 %v6674_v42  ;;  %v3407_v21 = vld [vmem:[%s8543_s6 + $0x78] sm:$0xff]  ;;  %v3409_v42 = vld [vmem:[%s8543_s6 + $0x88] sm:$0xff] }
 0x3d2   : > { %6426 = vmatprep.subr.bf16.mxu1 %v6425_v55  ;;  %v6431_v55 = vpack.c.bf16 %v3402_v50, %v3400_v25  ;;  %v6433_v49 = vpack.c.bf16 %v3407_v21, %v3405_v32  ;;  %v6677_v50 = vld [vmem:[%s7074_s12 + $0x1a8] sm:$0xff]  ;;  %v6678_v32 = vld [vmem:[%s7074_s12 + $0x1b0] sm:$0xff]  ;;  %v3408_v21 = vld [vmem:[%s8543_s6 + $0x80] sm:$0xff] }
 0x3d4   : > { %5889 = vmatmul.mubr.f32.gmra.mrb[114].mxu1 %v6675_v45  ;;  %v3410_v45 = vld [vmem:[%s8543_s6 + $0x90] sm:$0xff] }
 0x3d5   : > { %6428 = vmatpush1.bf16.msra.mxu1 %v6427_v59  ;;  %5891 = vmatprep.mubr.f32.mxu1 %v6676_v12  ;;  %v3411_v59 = vld [vmem:[%s8543_s6 + $0x98] sm:$0xff]  ;;  %v3413_v12 = vld [vmem:[%s8543_s6 + $0xa8] sm:$0xff] }
 0x3d6   : > { %6430 = vmatprep.subr.bf16.mxu1 %v6429_v23  ;;  %v6435_v23 = vpack.c.bf16 %v3406_v41, %v3404_v40  ;;  %v6437_v25 = vpack.c.bf16 %v3411_v59, %v3409_v42  ;;  %v6680_v40 = vld [vmem:[%s7074_s12 + $0x1c0] sm:$0xff]  ;;  %v6439_v41 = vpack.c.bf16 %v3410_v45, %v3408_v21  ;;  %v6681_v21 = vld [vmem:[%s7074_s12 + $0x1c8] sm:$0xff] }
 0x3d7   : > { %v3412_v59 = vld [vmem:[%s8543_s6 + $0xa0] sm:$0xff] }
 0x3d8   : > { %5892 = vmatmul.mubr.f32.gmra.mrb[116].mxu1 %v6677_v50  ;;  %v3414_v50 = vld [vmem:[%s8543_s6 + $0xb0] sm:$0xff] }
 0x3d9   : > { %6432 = vmatpush1.bf16.msra.mxu1 %v6431_v55  ;;  %5894 = vmatprep.mubr.f32.mxu1 %v6678_v32  ;;  %v3415_v55 = vld [vmem:[%s8543_s6 + $0xb8] sm:$0xff]  ;;  %v3417_v32 = vld [vmem:[%s8543_s6 + $0xc8] sm:$0xff]  ;;  %v6443_v45 = vpack.c.bf16 %v3414_v50, %v3412_v59 }
 0x3da   : > { %6434 = vmatprep.subr.bf16.mxu1 %v6433_v49  ;;  %v6679_v49 = vld [vmem:[%s7074_s12 + $0x1b8] sm:$0xff]  ;;  %v6441_v42 = vpack.c.bf16 %v3415_v55, %v3413_v12  ;;  %v3416_v55 = vld [vmem:[%s8543_s6 + $0xc0] sm:$0xff] }
 0x3db   : > { %v6683_v50 = vld [vmem:[%s7074_s12 + $0x1d8] sm:$0xff] }
 0x3dc   : > { %5895 = vmatmul.mubr.f32.gmra.mrb[118].mxu1 %v6679_v49  ;;  %v3418_v49 = vld [vmem:[%s8543_s6 + $0xd0] sm:$0xff] }
 0x3dd   : > { %6436 = vmatpush1.bf16.msra.mxu1 %v6435_v23  ;;  %5897 = vmatprep.mubr.f32.mxu1 %v6680_v40  ;;  %v3419_v23 = vld [vmem:[%s8543_s6 + $0xd8] sm:$0xff] }
 0x3de   : > { %6438 = vmatprep.subr.bf16.mxu1 %v6437_v25  ;;  %v6682_v25 = vld [vmem:[%s7074_s12 + $0x1d0] sm:$0xff]  ;;  %v6445_v12 = vpack.c.bf16 %v3419_v23, %v3417_v32  ;;  %v6684_v23 = vld [vmem:[%s7074_s12 + $0x1e0] sm:$0xff] }
 0x3e0   : > { %5898 = vmatmul.mubr.f32.gmra.mrb[120].mxu1 %v6681_v21  ;;  %v3421_v21 = vld [vmem:[%s8543_s6 + $0xe8] sm:$0xff] }
 0x3e1   : > { %6440 = vmatpush1.bf16.msra.mxu1 %v6439_v41  ;;  %5900 = vmatprep.mubr.f32.mxu1 %v6682_v25  ;;  %v3423_v41 = vld [vmem:[%s8543_s6 + $0xf8] sm:$0xff]  ;;  %v6447_v25 = vpack.c.bf16 %v3418_v49, %v3416_v55 }
 0x3e2   : > { %6442 = vmatprep.subr.bf16.mxu1 %v6441_v42  ;;  %v6449_v31 = vpack.c.bf16 %v3423_v41, %v3421_v21  ;;  %v6686_v21 = vld [vmem:[%s7074_s12 + $0x1f0] sm:$0xff] }
 0x3e3   : > { %v5719_v40 = vpop.f32.mrb[64].mxu1 }
 0x3e4   : > { %v2749_v42 = vadd.f32 %v5719_v40, %v7569_v8  ;;  %v2743_v59 = vpop.f32.mrb[65].mxu1  ;;  %5901 = vmatmul.mubr.f32.gmra.mrb[122].mxu1 %v6683_v50  ;;  %v3422_v8 = vld [vmem:[%s8543_s6 + $0xf0] sm:$0xff]  ;;  %v7891_v40 = vld [vmem:[%s8542_s5] ss:$0 sm:$0xff] }
 0x3e5   : > { %v2744_v32 = vadd.f32 %v2743_v59, %v7563_v44  ;;  %6444 = vmatpush1.bf16.msra.mxu1 %v6443_v45  ;;  %5903 = vmatprep.mubr.f32.mxu1 %v6684_v23  ;;  %v6451_v41 = vpack.c.bf16 %v3422_v8, %v3420_v18 }
 0x3e6   : > { %6446 = vmatprep.subr.bf16.mxu1 %v6445_v12  ;;  %v6685_v12 = vld [vmem:[%s7074_s12 + $0x1e8] sm:$0xff] }
 0x3e7   : > { %v5722_v44 = vpop.f32.mrb[66].mxu1  ;;  %v3264_v59 = vadd.f32 %v7891_v40, %v2744_v32 }
 0x3e8   : > { %v2759_v45 = vadd.f32 %v5722_v44, %v7581_v4  ;;  %v2753_v55 = vpop.f32.mrb[67].mxu1  ;;  %5904 = vmatmul.mubr.f32.gmra.mrb[124].mxu1 %v6685_v12  ;;  %v8567_v44 = vmov 0.0  }
 0x3e9   : > { %v2754_v49 = vadd.f32 %v2753_v55, %v7575_v43  ;;  %6448 = vmatpush1.bf16.msra.mxu1 %v6447_v25  ;;  %5906 = vmatprep.mubr.f32.mxu1 %v6686_v21  ;;  %v3265_v43 = vadd.f32 %v7891_v40, %v2749_v42  ;;  %v3328_v25 = vmax.f32 %v3264_v59, 0.0 }
 0x3ea   : > { %6450 = vmatprep.subr.bf16.mxu1 %v6449_v31 }
 0x3eb   : > { %v5725_v50 = vpop.f32.mrb[68].mxu1 }
 0x3ec   : > { %v2769_v23 = vadd.f32 %v5725_v50, %v7593_v33  ;;  %v2763_v46 = vpop.f32.mrb[69].mxu1  ;;  %5907 = vmatmul.mubr.f32.gmra.mrb[126].mxu1 %v6687_v61  ;;  %v3329_v33 = vmax.f32 %v3265_v43, 0.0  ;;  %v3266_v61 = vadd.f32 %v7891_v40, %v2754_v49 }
 0x3ed   : > { %v2764_v4 = vadd.f32 %v2763_v46, %v7587_v16  ;;  %6452 = vmatpush1.bf16.msra.mxu1 %v6451_v41  ;;  %3488 = vmatprep.mubr.f32.mxu1 %v8567_v44 }
 0x3ee   : > { %v3330_v12 = vmax.f32 %v3266_v61, 0.0 }
 0x3ef   : > { %v5728_v55 = vpop.f32.mrb[70].mxu1 }
 0x3f0   : > { %v2779_v18 = vadd.f32 %v5728_v55, %v7605_v24  ;;  %v2773_v8 = vpop.f32.mrb[71].mxu1  ;;  %3489 = vmatmul.mubr.f32.vlgmr.msra.gmra.mrb[128].mxu1 %v3328_v25  ;;  %v3267_v24 = vadd.f32 %v7891_v40, %v2759_v45 }
 0x3f1   : > { %v2774_v31 = vadd.f32 %v2773_v8, %v7599_v14  ;;  %3494 = vmatprep.mubr.f32.mxu1 %v8567_v44 }
 0x3f2   : > { %v3331_v49 = vmax.f32 %v3267_v24, 0.0 }
 0x3f3   : > { %v5731_v32 = vpop.f32.mrb[72].mxu1 }
 0x3f4   : > { %v2789_v16 = vadd.f32 %v5731_v32, %v7616_v37  ;;  %v2783_v46 = vpop.f32.mrb[73].mxu1  ;;  %3495 = vmatmul.mubr.f32.gmra.mrb[130].mxu1 %v3329_v33  ;;  %v3268_v37 = vadd.f32 %v7891_v40, %v2764_v4 }
 0x3f5   : > { %v2784_v42 = vadd.f32 %v2783_v46, %v7611_v35  ;;  %3500 = vmatprep.mubr.f32.mxu1 %v8567_v44 }
 0x3f6   : > { %v3332_v25 = vmax.f32 %v3268_v37, 0.0 }
 0x3f7   : > { %v5734_v21 = vpop.f32.mrb[74].mxu1 }
 0x3f8   : > { %v2799_v14 = vadd.f32 %v5734_v21, %v7624_v3  ;;  %v2793_v41 = vpop.f32.mrb[75].mxu1  ;;  %3501 = vmatmul.mubr.f32.gmra.mrb[132].mxu1 %v3330_v12  ;;  %v3269_v3 = vadd.f32 %v7891_v40, %v2769_v23 }
 0x3f9   : > { %v2794_v59 = vadd.f32 %v2793_v41, %v7620_v7  ;;  %3506 = vmatprep.mubr.f32.mxu1 %v8567_v44 }
 0x3fa   : > { %v3333_v4 = vmax.f32 %v3269_v3, 0.0 }
 0x3fb   : > { %v5737_v50 = vpop.f32.mrb[76].mxu1  ;;  %v3274_v46 = vadd.f32 %v7891_v40, %v2794_v59 }
 0x3fc   : > { %v2809_v35 = vadd.f32 %v5737_v50, %v7628_v27  ;;  %v2803_v43 = vpop.f32.mrb[77].mxu1  ;;  %3507 = vmatmul.mubr.f32.gmra.mrb[134].mxu1 %v3331_v49  ;;  %v3270_v27 = vadd.f32 %v7891_v40, %v2774_v31 }
 0x3fd   : > { %v2804_v45 = vadd.f32 %v2803_v43, %v7626_v47  ;;  %3512 = vmatprep.mubr.f32.mxu1 %v8567_v44  ;;  %v3271_v47 = vadd.f32 %v7891_v40, %v2779_v18  ;;  %v3275_v18 = vadd.f32 %v7891_v40, %v2799_v14  ;;  %v3338_v24 = vmax.f32 %v3274_v46, 0.0 }
 0x3fe   : > { %v3334_v61 = vmax.f32 %v3270_v27, 0.0 }
 0x3ff   : > { %v5740_v55 = vpop.f32.mrb[78].mxu1  ;;  %v3335_v23 = vmax.f32 %v3271_v47, 0.0  ;;  %v3276_v12 = vadd.f32 %v7891_v40, %v2804_v45 }
 0x400   : > { %v2819_v7 = vadd.f32 %v5740_v55, %v7632_v13  ;;  %v2813_v8 = vpop.f32.mrb[79].mxu1  ;;  %3513 = vmatmul.mubr.f32.gmra.mrb[136].mxu1 %v3332_v25  ;;  %v3272_v13 = vadd.f32 %v7891_v40, %v2784_v42  ;;  %v3339_v42 = vmax.f32 %v3275_v18, 0.0 }
 0x401   : > { %v2814_v33 = vadd.f32 %v2813_v8, %v7630_v53  ;;  %3518 = vmatprep.mubr.f32.mxu1 %v8567_v44  ;;  %v3273_v53 = vadd.f32 %v7891_v40, %v2789_v16  ;;  %v3277_v16 = vadd.f32 %v7891_v40, %v2809_v35  ;;  %v3340_v21 = vmax.f32 %v3276_v12, 0.0 }
 0x402   : > { %v3336_v32 = vmax.f32 %v3272_v13, 0.0  ;;  %v3279_v43 = vadd.f32 %v7891_v40, %v2819_v7 }
 0x403   : > { %v3337_v31 = vmax.f32 %v3273_v53, 0.0  ;;  %v3341_v41 = vmax.f32 %v3277_v16, 0.0  ;;  %v3278_v59 = vadd.f32 %v7891_v40, %v2814_v33 }
 0x404   : > { %3519 = vmatmul.mubr.f32.gmra.mrb[138].mxu1 %v3333_v4  ;;  %v3343_v8 = vmax.f32 %v3279_v43, 0.0 }
 0x405   : > { %3524 = vmatprep.mubr.f32.mxu1 %v8567_v44  ;;  %v3342_v45 = vmax.f32 %v3278_v59, 0.0 }
 0x408   : > { %3525 = vmatmul.mubr.f32.gmra.mrb[140].mxu1 %v3334_v61 }
 0x409   : > { %3530 = vmatprep.mubr.f32.mxu1 %v8567_v44 }
 0x40c   : > { %3531 = vmatmul.mubr.f32.gmra.mrb[142].mxu1 %v3335_v23 }
 0x40d   : > { %3536 = vmatprep.mubr.f32.mxu1 %v8567_v44 }
 0x410   : > { %3537 = vmatmul.mubr.f32.gmra.mrb[144].mxu1 %v3336_v32 }
 0x411   : > { %3542 = vmatprep.mubr.f32.mxu1 %v8567_v44 }
 0x414   : > { %3543 = vmatmul.mubr.f32.gmra.mrb[146].mxu1 %v3337_v31 }
 0x415   : > { %3548 = vmatprep.mubr.f32.mxu1 %v8567_v44 }
 0x418   : > { %3549 = vmatmul.mubr.f32.gmra.mrb[148].mxu1 %v3338_v24 }
 0x419   : > { %3554 = vmatprep.mubr.f32.mxu1 %v8567_v44 }
 0x41c   : > { %3555 = vmatmul.mubr.f32.gmra.mrb[150].mxu1 %v3339_v42 }
 0x41d   : > { %3560 = vmatprep.mubr.f32.mxu1 %v8567_v44 }
 0x420   : > { %3561 = vmatmul.mubr.f32.gmra.mrb[152].mxu1 %v3340_v21 }
 0x421   : > { %3566 = vmatprep.mubr.f32.mxu1 %v8567_v44 }
 0x423   : > { %v5775_v14 = vpop.f32.mrb[80].mxu1 }
 0x424   : > { %v2894_v49 = vadd.f32 %v5775_v14, %v7638_v51  ;;  %v2888_v37 = vpop.f32.mrb[81].mxu1  ;;  %3567 = vmatmul.mubr.f32.gmra.mrb[154].mxu1 %v3341_v41 }
 0x425   : > { %v2889_v50 = vadd.f32 %v2888_v37, %v7634_v60  ;;  %3572 = vmatprep.mubr.f32.mxu1 %v8567_v44 }
 0x427   : > { %v5778_v35 = vpop.f32.mrb[82].mxu1  ;;  %v3280_v51 = vadd.f32 %v7891_v40, %v2889_v50 }
 0x428   : > { %v2904_v3 = vadd.f32 %v5778_v35, %v7646_v17  ;;  %v2898_v25 = vpop.f32.mrb[83].mxu1  ;;  %3573 = vmatmul.mubr.f32.gmra.mrb[156].mxu1 %v3342_v45  ;;  %v3281_v17 = vadd.f32 %v7891_v40, %v2894_v49 }
 0x429   : > { %v2899_v55 = vadd.f32 %v2898_v25, %v7642_v6  ;;  %3578 = vmatprep.mubr.f32.mxu1 %v8567_v44  ;;  %v3344_v27 = vmax.f32 %v3280_v51, 0.0 }
 0x42a   : > { %v3345_v13 = vmax.f32 %v3281_v17, 0.0 }
 0x42b   : > { %v5781_v33 = vpop.f32.mrb[84].mxu1 }
 0x42c   : > { %v2914_v60 = vadd.f32 %v5781_v33, %v7654_v26  ;;  %v2908_v4 = vpop.f32.mrb[85].mxu1  ;;  %3579 = vmatmul.mubr.f32.gmra.mrb[158].mxu1 %v3343_v8  ;;  %v3282_v26 = vadd.f32 %v7891_v40, %v2899_v55 }
 0x42d   : > { %v2909_v7 = vadd.f32 %v2908_v4, %v7650_v19  ;;  %3584 = vmatprep.mubr.f32.mxu1 %v8567_v44 }
 0x42e   : > { %v3346_v46 = vmax.f32 %v3282_v26, 0.0 }
 0x42f   : > { %v5784_v47 = vpop.f32.mrb[86].mxu1 }
 0x430   : > { %v2924_v6 = vadd.f32 %v5784_v47, %v7662_v36  ;;  %v2918_v61 = vpop.f32.mrb[87].mxu1  ;;  %3585 = vmatmul.mubr.f32.gmra.mrb[160].mxu1 %v3344_v27  ;;  %v3283_v36 = vadd.f32 %v7891_v40, %v2904_v3 }
 0x431   : > { %v2919_v23 = vadd.f32 %v2918_v61, %v7658_v30  ;;  %3590 = vmatprep.mubr.f32.mxu1 %v8567_v44 }
 0x432   : > { %v3347_v12 = vmax.f32 %v3283_v36, 0.0 }
 0x433   : > { %v5787_v53 = vpop.f32.mrb[88].mxu1 }
 0x434   : > { %v2934_v19 = vadd.f32 %v5787_v53, %v7668_v5  ;;  %v2928_v32 = vpop.f32.mrb[89].mxu1  ;;  %3591 = vmatmul.mubr.f32.gmra.mrb[162].mxu1 %v3345_v13  ;;  %v3284_v5 = vadd.f32 %v7891_v40, %v2909_v7 }
 0x435   : > { %v2929_v31 = vadd.f32 %v2928_v32, %v7666_v52  ;;  %3596 = vmatprep.mubr.f32.mxu1 %v8567_v44 }
 0x436   : > { %v3348_v59 = vmax.f32 %v3284_v5, 0.0 }
 0x437   : > { %v5790_v18 = vpop.f32.mrb[90].mxu1 }
 0x438   : > { %v2944_v30 = vadd.f32 %v5790_v18, %v7672_v15  ;;  %v2938_v24 = vpop.f32.mrb[91].mxu1  ;;  %3597 = vmatmul.mubr.f32.gmra.mrb[164].mxu1 %v3346_v46  ;;  %v3285_v15 = vadd.f32 %v7891_v40, %v2914_v60 }
 0x439   : > { %v2939_v42 = vadd.f32 %v2938_v24, %v7670_v48  ;;  %3602 = vmatprep.mubr.f32.mxu1 %v8567_v44 }
 0x43a   : > { %v3349_v50 = vmax.f32 %v3285_v15, 0.0  ;;  %v3291_v55 = vadd.f32 %v7891_v40, %v2944_v30 }
 0x43b   : > { %v5793_v16 = vpop.f32.mrb[92].mxu1  ;;  %v3290_v25 = vadd.f32 %v7891_v40, %v2939_v42 }
 0x43c   : > { %v2954_v52 = vadd.f32 %v5793_v16, %v7676_v63  ;;  %v2948_v21 = vpop.f32.mrb[93].mxu1  ;;  %3603 = vmatmul.mubr.f32.gmra.mrb[166].mxu1 %v3347_v12  ;;  %v3286_v63 = vadd.f32 %v7891_v40, %v2919_v23  ;;  %v3355_v51 = vmax.f32 %v3291_v55, 0.0 }
 0x43d   : > { %v2949_v41 = vadd.f32 %v2948_v21, %v7674_v57  ;;  %3608 = vmatprep.mubr.f32.mxu1 %v8567_v44  ;;  %v3287_v57 = vadd.f32 %v7891_v40, %v2924_v6  ;;  %v3354_v8 = vmax.f32 %v3290_v25, 0.0 }
 0x43e   : > { %v3350_v43 = vmax.f32 %v3286_v63, 0.0  ;;  %v3293_v60 = vadd.f32 %v7891_v40, %v2954_v52 }
 0x43f   : > { %v5796_v14 = vpop.f32.mrb[94].mxu1  ;;  %v3351_v45 = vmax.f32 %v3287_v57, 0.0  ;;  %v3292_v33 = vadd.f32 %v7891_v40, %v2949_v41 }
 0x440   : > { %v2964_v48 = vadd.f32 %v5796_v14, %v7680_v0  ;;  %v2958_v49 = vpop.f32.mrb[95].mxu1  ;;  %3609 = vmatmul.mubr.f32.gmra.mrb[168].mxu1 %v3348_v59  ;;  %v3288_v0 = vadd.f32 %v7891_v40, %v2929_v31  ;;  %v3357_v7 = vmax.f32 %v3293_v60, 0.0 }
 0x441   : > { %v2959_v37 = vadd.f32 %v2958_v49, %v7678_v2  ;;  %3614 = vmatprep.mubr.f32.mxu1 %v8567_v44  ;;  %v3289_v2 = vadd.f32 %v7891_v40, %v2934_v19  ;;  %v3356_v4 = vmax.f32 %v3292_v33, 0.0 }
 0x442   : > { %v3352_v35 = vmax.f32 %v3288_v0, 0.0  ;;  %v3295_v23 = vadd.f32 %v7891_v40, %v2964_v48 }
 0x443   : > { %v3353_v3 = vmax.f32 %v3289_v2, 0.0  ;;  %v3294_v17 = vadd.f32 %v7891_v40, %v2959_v37 }
 0x444   : > { %3615 = vmatmul.mubr.f32.gmra.mrb[170].mxu1 %v3349_v50  ;;  %v3359_v31 = vmax.f32 %v3295_v23, 0.0  ;;  %v8569_v23 = vld [vmem:[#allocation7_spill] sm:$0xff] }
 0x445   : > { %3620 = vmatprep.mubr.f32.mxu1 %v8567_v44  ;;  %v3358_v13 = vmax.f32 %v3294_v17, 0.0 }
 0x448   : > { %3621 = vmatmul.mubr.f32.gmra.mrb[172].mxu1 %v3350_v43 }
 0x449   : > { %3626 = vmatprep.mubr.f32.mxu1 %v8567_v44 }
 0x44c   : > { %3627 = vmatmul.mubr.f32.gmra.mrb[174].mxu1 %v3351_v45  ;;  %v8568_v45 = vld [vmem:[#allocation5_spill] sm:$0xff] }
 0x44d   : > { %3632 = vmatprep.mubr.f32.mxu1 %v8567_v44 }
 0x450   : > { %3633 = vmatmul.mubr.f32.gmra.mrb[176].mxu1 %v3352_v35 }
 0x451   : > { %3638 = vmatprep.mubr.f32.mxu1 %v8567_v44 }
 0x454   : > { %3639 = vmatmul.mubr.f32.gmra.mrb[178].mxu1 %v3353_v3 }
 0x455   : > { %3644 = vmatprep.mubr.f32.mxu1 %v8567_v44 }
 0x458   : > { %3645 = vmatmul.mubr.f32.gmra.mrb[180].mxu1 %v3354_v8 }
 0x459   : > { %3650 = vmatprep.mubr.f32.mxu1 %v8567_v44 }
 0x45c   : > { %3651 = vmatmul.mubr.f32.gmra.mrb[182].mxu1 %v3355_v51 }
 0x45d   : > { %3656 = vmatprep.mubr.f32.mxu1 %v8567_v44 }
 0x460   : > { %3657 = vmatmul.mubr.f32.gmra.mrb[184].mxu1 %v3356_v4 }
 0x461   : > { %3662 = vmatprep.mubr.f32.mxu1 %v8567_v44 }
 0x463   : > { %v5831_v27 = vpop.f32.mrb[96].mxu1 }
 0x464   : > { %v3039_v47 = vadd.f32 %v5831_v27, %v7686_v56  ;;  %v3033_v6 = vpop.f32.mrb[97].mxu1  ;;  %3663 = vmatmul.mubr.f32.gmra.mrb[186].mxu1 %v3357_v7 }
 0x465   : > { %v3034_v61 = vadd.f32 %v3033_v6, %v7682_v29  ;;  %3668 = vmatprep.mubr.f32.mxu1 %v8567_v44 }
 0x467   : > { %v5834_v26 = vpop.f32.mrb[98].mxu1  ;;  %v3296_v56 = vadd.f32 %v7891_v40, %v3034_v61 }
 0x468   : > { %v3049_v53 = vadd.f32 %v5834_v26, %v7694_v62  ;;  %v3043_v19 = vpop.f32.mrb[99].mxu1  ;;  %3669 = vmatmul.mubr.f32.gmra.mrb[188].mxu1 %v3358_v13  ;;  %v3297_v62 = vadd.f32 %v7891_v40, %v3039_v47 }
 0x469   : > { %v3044_v32 = vadd.f32 %v3043_v19, %v7690_v28  ;;  %3674 = vmatprep.mubr.f32.mxu1 %v8567_v44  ;;  %v3360_v30 = vmax.f32 %v3296_v56, 0.0 }
 0x46a   : > { %v3361_v5 = vmax.f32 %v3297_v62, 0.0 }
 0x46b   : > { %v5837_v36 = vpop.f32.mrb[100].mxu1 }
 0x46c   : > { %v3059_v29 = vadd.f32 %v5837_v36, %v7702_v20  ;;  %v3053_v46 = vpop.f32.mrb[101].mxu1  ;;  %3675 = vmatmul.mubr.f32.gmra.mrb[190].mxu1 %v3359_v31  ;;  %v3298_v20 = vadd.f32 %v7891_v40, %v3044_v32  ;;  %v8571_v36 = vld [vmem:[#allocation9_spill] sm:$0xff] }
 0x46d   : > { %v3054_v18 = vadd.f32 %v3053_v46, %v7698_v39  ;;  %3680 = vmatprep.mubr.f32.mxu1 %v8567_v44 }
 0x46e   : > { %v3362_v41 = vmax.f32 %v3298_v20, 0.0  ;;  %v8574_v20 = vld [vmem:[#allocation10_spill] sm:$0xff] }
 0x46f   : > { %v5840_v24 = vpop.f32.mrb[102].mxu1 }
 0x470   : > { %v3069_v28 = vadd.f32 %v5840_v24, %v7710_v58  ;;  %v3063_v42 = vpop.f32.mrb[103].mxu1  ;;  %3681 = vmatmul.mubr.f32.gmra.mrb[192].mxu1 %v3360_v30  ;;  %v3299_v58 = vadd.f32 %v7891_v40, %v3049_v53  ;;  %v8570_v53 = vld [vmem:[#allocation6_spill] sm:$0xff] }
 0x471   : > { %v3064_v12 = vadd.f32 %v3063_v42, %v7706_v22  ;;  %3686 = vmatprep.mubr.f32.mxu1 %v8567_v44  ;;  %v8573_v42 = vld [vmem:[#allocation11_spill] sm:$0xff] }
 0x472   : > { %v3363_v48 = vmax.f32 %v3299_v58, 0.0  ;;  %v8575_v58 = vld [vmem:[#allocation13_spill] sm:$0xff] }
 0x473   : > { %v5843_v16 = vpop.f32.mrb[104].mxu1 }
 0x474   : > { %v3079_v39 = vadd.f32 %v5843_v16, %v7716_v1  ;;  %v3073_v52 = vpop.f32.mrb[105].mxu1  ;;  %3687 = vmatmul.mubr.f32.gmra.mrb[194].mxu1 %v3361_v5  ;;  %v3300_v1 = vadd.f32 %v7891_v40, %v3054_v18  ;;  %v8572_v18 = vld [vmem:[#allocation8_spill] sm:$0xff] }
 0x475   : > { %v3074_v21 = vadd.f32 %v3073_v52, %v7714_v10  ;;  %3692 = vmatprep.mubr.f32.mxu1 %v8567_v44 }
 0x476   : > { %v3364_v63 = vmax.f32 %v3300_v1, 0.0  ;;  %v3305_v25 = vadd.f32 %v7891_v40, %v3079_v39 }
 0x477   : > { %v5846_v15 = vpop.f32.mrb[106].mxu1 }
 0x478   : > { %v3089_v22 = vadd.f32 %v5846_v15, %v7720_v38  ;;  %v3083_v59 = vpop.f32.mrb[107].mxu1  ;;  %3693 = vmatmul.mubr.f32.gmra.mrb[196].mxu1 %v3362_v41  ;;  %v3301_v38 = vadd.f32 %v7891_v40, %v3059_v29  ;;  %v3369_v8 = vmax.f32 %v3305_v25, 0.0 }
 0x479   : > { %v3084_v14 = vadd.f32 %v3083_v59, %v7718_v34  ;;  %3698 = vmatprep.mubr.f32.mxu1 %v8567_v44 }
 0x47a   : > { %v3365_v2 = vmax.f32 %v3301_v38, 0.0  ;;  %v3307_v33 = vadd.f32 %v7891_v40, %v3089_v22  ;;  %v8576_v22 = vld [vmem:[#allocation12_spill] sm:$0xff] }
 0x47b   : > { %v5849_v49 = vpop.f32.mrb[108].mxu1  ;;  %v3306_v51 = vadd.f32 %v7891_v40, %v3084_v14 }
 0x47c   : > { %v3099_v10 = vadd.f32 %v5849_v49, %v7724_v54  ;;  %v3093_v37 = vpop.f32.mrb[109].mxu1  ;;  %3699 = vmatmul.mubr.f32.gmra.mrb[198].mxu1 %v3363_v48  ;;  %v3302_v54 = vadd.f32 %v7891_v40, %v3064_v12  ;;  %v3371_v4 = vmax.f32 %v3307_v33, 0.0  ;;  %v8577_v49 = vld [vmem:[#allocation15_spill] sm:$0xff] }
 0x47d   : > { %v3094_v50 = vadd.f32 %v3093_v37, %v7722_v11  ;;  %3704 = vmatprep.mubr.f32.mxu1 %v8567_v44  ;;  %v3303_v11 = vadd.f32 %v7891_v40, %v3069_v28  ;;  %v3370_v60 = vmax.f32 %v3306_v51, 0.0 }
 0x47e   : > { %v3366_v35 = vmax.f32 %v3302_v54, 0.0  ;;  %v3309_v17 = vadd.f32 %v7891_v40, %v3099_v10 }
 0x47f   : > { %v5852_v57 = vpop.f32.mrb[110].mxu1  ;;  %v3367_v3 = vmax.f32 %v3303_v11, 0.0  ;;  %v3308_v7 = vadd.f32 %v7891_v40, %v3094_v50  ;;  %v8578_v50 = vld [vmem:[#allocation14_spill] sm:$0xff] }
 0x480   : > { %v3109_v34 = vadd.f32 %v5852_v57, %v7728_v9  ;;  %v3103_v43 = vpop.f32.mrb[111].mxu1  ;;  %3705 = vmatmul.mubr.f32.gmra.mrb[200].mxu1 %v3364_v63  ;;  %v3304_v9 = vadd.f32 %v7891_v40, %v3074_v21  ;;  %v3373_v47 = vmax.f32 %v3309_v17, 0.0 }
 0x481   : > { %v3104_v0 = vadd.f32 %v3103_v43, %v8568_v45  ;;  %3710 = vmatprep.mubr.f32.mxu1 %v8567_v44  ;;  %v3372_v27 = vmax.f32 %v3308_v7, 0.0  ;;  %v8579_v43 = vld [vmem:[#allocation17_spill] sm:$0xff] }
 0x482   : > { %v3368_v55 = vmax.f32 %v3304_v9, 0.0  ;;  %v3311_v32 = vadd.f32 %v7891_v40, %v3109_v34  ;;  %v8581_v9 = vld [vmem:[#allocation19_spill] sm:$0xff]  ;;  %v8583_v7 = vld [vmem:[#allocation21_spill] sm:$0xff] }
 0x483   : > { %v3310_v6 = vadd.f32 %v7891_v40, %v3104_v0 }
 0x484   : > { %3711 = vmatmul.mubr.f32.gmra.mrb[202].mxu1 %v3365_v2  ;;  %v3375_v30 = vmax.f32 %v3311_v32, 0.0  ;;  %v8580_v2 = vld [vmem:[#allocation16_spill] sm:$0xff] }
 0x485   : > { %3716 = vmatprep.mubr.f32.mxu1 %v8567_v44  ;;  %v3374_v31 = vmax.f32 %v3310_v6, 0.0 }
 0x488   : > { %3717 = vmatmul.mubr.f32.gmra.mrb[204].mxu1 %v3366_v35 }
 0x489   : > { %3722 = vmatprep.mubr.f32.mxu1 %v8567_v44 }
 0x48c   : > { %3723 = vmatmul.mubr.f32.gmra.mrb[206].mxu1 %v3367_v3 }
 0x48d   : > { %3728 = vmatprep.mubr.f32.mxu1 %v8567_v44 }
 0x490   : > { %3729 = vmatmul.mubr.f32.gmra.mrb[208].mxu1 %v3368_v55 }
 0x491   : > { %3734 = vmatprep.mubr.f32.mxu1 %v8567_v44 }
 0x494   : > { %3735 = vmatmul.mubr.f32.gmra.mrb[210].mxu1 %v3369_v8  ;;  %v8582_v8 = vld [vmem:[#allocation18_spill] sm:$0xff] }
 0x495   : > { %3740 = vmatprep.mubr.f32.mxu1 %v8567_v44 }
 0x498   : > { %3741 = vmatmul.mubr.f32.gmra.mrb[212].mxu1 %v3370_v60 }
 0x499   : > { %3746 = vmatprep.mubr.f32.mxu1 %v8567_v44 }
 0x49c   : > { %3747 = vmatmul.mubr.f32.gmra.mrb[214].mxu1 %v3371_v4 }
 0x49d   : > { %3752 = vmatprep.mubr.f32.mxu1 %v8567_v44 }
 0x4a0   : > { %3753 = vmatmul.mubr.f32.gmra.mrb[216].mxu1 %v3372_v27 }
 0x4a1   : > { %3758 = vmatprep.mubr.f32.mxu1 %v8567_v44 }
 0x4a3   : > { %v5887_v61 = vpop.f32.mrb[112].mxu1 }
 0x4a4   : > { %v3184_v13 = vadd.f32 %v5887_v61, %v8569_v23  ;;  %v3178_v26 = vpop.f32.mrb[113].mxu1  ;;  %3759 = vmatmul.mubr.f32.gmra.mrb[218].mxu1 %v3373_v47  ;;  %v8584_v47 = vld [vmem:[#allocation20_spill] sm:$0xff] }
 0x4a5   : > { %v3179_v19 = vadd.f32 %v3178_v26, %v8570_v53  ;;  %3764 = vmatprep.mubr.f32.mxu1 %v8567_v44 }
 0x4a6   : > { %v3313_v39 = vadd.f32 %v7891_v40, %v3184_v13 }
 0x4a7   : > { %v5890_v56 = vpop.f32.mrb[114].mxu1  ;;  %v3312_v24 = vadd.f32 %v7891_v40, %v3179_v19 }
 0x4a8   : > { %v3194_v29 = vadd.f32 %v5890_v56, %v8571_v36  ;;  %v3188_v46 = vpop.f32.mrb[115].mxu1  ;;  %3765 = vmatmul.mubr.f32.gmra.mrb[220].mxu1 %v3374_v31  ;;  %v3377_v14 = vmax.f32 %v3313_v39, 0.0 }
 0x4a9   : > { %v3189_v62 = vadd.f32 %v3188_v46, %v8572_v18  ;;  %3770 = vmatprep.mubr.f32.mxu1 %v8567_v44  ;;  %v3376_v52 = vmax.f32 %v3312_v24, 0.0 }
 0x4aa   : > { %v3315_v63 = vadd.f32 %v7891_v40, %v3194_v29 }
 0x4ab   : > { %v5893_v28 = vpop.f32.mrb[116].mxu1  ;;  %v3314_v48 = vadd.f32 %v7891_v40, %v3189_v62 }
 0x4ac   : > { %v3204_v12 = vadd.f32 %v5893_v28, %v8573_v42  ;;  %v3198_v5 = vpop.f32.mrb[117].mxu1  ;;  %3771 = vmatmul.mubr.f32.gmra.mrb[222].mxu1 %v3375_v30  ;;  %v3379_v11 = vmax.f32 %v3315_v63, 0.0 }
 0x4ad   : > { %v3199_v16 = vadd.f32 %v3198_v5, %v8574_v20  ;;  %3776 = vmatprep.mubr.f32.mxu1 %v8567_v44  ;;  %v3378_v57 = vmax.f32 %v3314_v48, 0.0 }
 0x4ae   : > { %v3317_v33 = vadd.f32 %v7891_v40, %v3204_v12 }
 0x4af   : > { %v5896_v21 = vpop.f32.mrb[118].mxu1  ;;  %v3316_v35 = vadd.f32 %v7891_v40, %v3199_v16 }
 0x4b0   : > { %v3214_v41 = vadd.f32 %v5896_v21, %v8575_v58  ;;  %v3208_v15 = vpop.f32.mrb[119].mxu1  ;;  %3777 = vmatmul.mubr.f32.gmra.mrb[224].mxu1 %v3376_v52  ;;  %v3381_v61 = vmax.f32 %v3317_v33, 0.0 }
 0x4b1   : > { %v3209_v59 = vadd.f32 %v3208_v15, %v8576_v22  ;;  %3782 = vmatprep.mubr.f32.mxu1 %v8567_v44  ;;  %v3380_v60 = vmax.f32 %v3316_v35, 0.0 }
 0x4b2   : > { %v3319_v53 = vadd.f32 %v7891_v40, %v3214_v41 }
 0x4b3   : > { %v5899_v1 = vpop.f32.mrb[120].mxu1  ;;  %v3318_v23 = vadd.f32 %v7891_v40, %v3209_v59 }
 0x4b4   : > { %v3224_v10 = vadd.f32 %v5899_v1, %v8577_v49  ;;  %v3218_v37 = vpop.f32.mrb[121].mxu1  ;;  %3783 = vmatmul.mubr.f32.gmra.mrb[226].mxu1 %v3377_v14  ;;  %v3383_v36 = vmax.f32 %v3319_v53, 0.0 }
 0x4b5   : > { %v3219_v38 = vadd.f32 %v3218_v37, %v8578_v50  ;;  %3788 = vmatprep.mubr.f32.mxu1 %v8567_v44  ;;  %v3382_v19 = vmax.f32 %v3318_v23, 0.0  ;;  %v6689_v23 = vld [vmem:[%s7074_s12 + $0x10] sm:$0xff] }
 0x4b6   : > { %v3321_v62 = vadd.f32 %v7891_v40, %v3224_v10 }
 0x4b7   : > { %v5902_v34 = vpop.f32.mrb[122].mxu1  ;;  %v3320_v29 = vadd.f32 %v7891_v40, %v3219_v38 }
 0x4b8   : > { %v3234_v45 = vadd.f32 %v5902_v34, %v8579_v43  ;;  %v3228_v0 = vpop.f32.mrb[123].mxu1  ;;  %3789 = vmatmul.mubr.f32.gmra.mrb[228].mxu1 %v3378_v57  ;;  %v3385_v12 = vmax.f32 %v3321_v62, 0.0  ;;  %v6693_v62 = vld [vmem:[%s7074_s12 + $0x30] sm:$0xff] }
 0x4b9   : > { %v3229_v54 = vadd.f32 %v3228_v0, %v8580_v2  ;;  %3794 = vmatprep.mubr.f32.mxu1 %v8567_v44  ;;  %v3384_v30 = vmax.f32 %v3320_v29, 0.0  ;;  %v6692_v29 = vld [vmem:[%s7074_s12 + $0x28] sm:$0xff] }
 0x4ba   : > { %v3323_v39 = vadd.f32 %v7891_v40, %v3234_v45 }
 0x4bb   : > { %v5905_v3 = vpop.f32.mrb[124].mxu1  ;;  %v3322_v5 = vadd.f32 %v7891_v40, %v3229_v54 }
 0x4bc   : > { %v8060_v25 = vadd.f32 %v5905_v3, %v8581_v9  ;;  %v3238_v55 = vpop.f32.mrb[125].mxu1  ;;  %3795 = vmatmul.mubr.f32.gmra.mrb[230].mxu1 %v3379_v11  ;;  %v3387_v15 = vmax.f32 %v3323_v39, 0.0  ;;  %v6696_v39 = vld [vmem:[%s7074_s12 + $0x48] sm:$0xff] }
 0x4bd   : > { %v3239_v51 = vadd.f32 %v3238_v55, %v8582_v8  ;;  %3800 = vmatprep.mubr.f32.mxu1 %v8567_v44  ;;  %v3386_v52 = vmax.f32 %v3322_v5, 0.0  ;;  %v6695_v5 = vld [vmem:[%s7074_s12 + $0x40] sm:$0xff] }
 0x4be   : > { %v3325_v48 = vadd.f32 %v7891_v40, %v8060_v25 }
 0x4bf   : > { %v5908_v4 = vpop.f32.mrb[126].mxu1  ;;  %v3324_v22 = vadd.f32 %v7891_v40, %v3239_v51 }
 0x4c0   : > { %v8066_v17 = vadd.f32 %v5908_v4, %v8583_v7  ;;  %v3248_v27 = vpop.f32.mrb[127].mxu1  ;;  %3801 = vmatmul.mubr.f32.gmra.mrb[232].mxu1 %v3380_v60  ;;  %v3389_v50 = vmax.f32 %v3325_v48, 0.0  ;;  %v6699_v48 = vld [vmem:[%s7074_s12 + $0x60] sm:$0xff] }
 0x4c1   : > { %v3249_v6 = vadd.f32 %v3248_v27, %v8584_v47  ;;  %3806 = vmatprep.mubr.f32.mxu1 %v8567_v44  ;;  %v3388_v1 = vmax.f32 %v3324_v22, 0.0  ;;  %v6698_v22 = vld [vmem:[%s7074_s12 + $0x58] sm:$0xff] }
 0x4c2   : > { %v3327_v34 = vadd.f32 %v7891_v40, %v8066_v17 }
 0x4c3   : > { %v3490_v13 = vpop.f32.mrb[128].mxu1  ;;  %v3326_v38 = vadd.f32 %v7891_v40, %v3249_v6  ;;  %v6688_v6 = vld [vmem:[%s7074_s12 + $0x8] sm:$0xff] }
 0x4c4   : > { %v8071_v26 = vpop.f32.mrb[129].mxu1  ;;  %3807 = vmatmul.mubr.f32.gmra.mrb[234].mxu1 %v3381_v61  ;;  %v3391_v54 = vmax.f32 %v3327_v34, 0.0  ;;  %v6702_v34 = vld [vmem:[%s7074_s12 + $0x78] sm:$0xff] }
 0x4c5   : > { %3812 = vmatprep.mubr.f32.mxu1 %v8567_v44  ;;  %v3390_v43 = vmax.f32 %v3326_v38, 0.0 }
 0x4c7   : > { %v3496_v32 = vpop.f32.mrb[130].mxu1 }
 0x4c8   : > { %v6453_v31 = vpack.c.bf16 %v3496_v32, %v3490_v13  ;;  %v8075_v56 = vpop.f32.mrb[131].mxu1  ;;  %3813 = vmatmul.mubr.f32.gmra.mrb[236].mxu1 %v3382_v19  ;;  %v6690_v19 = vld [vmem:[%s7074_s12 + $0x18] sm:$0xff] }
 0x4c9   : > { %3818 = vmatprep.mubr.f32.mxu1 %v8567_v44 }
 0x4ca   : > { %6454 = vmatprep.subr.bf16.mxu0 %v6453_v31 }
 0x4cb   : > { %v3502_v46 = vpop.f32.mrb[132].mxu1  ;;  %6456 = vmatpush3.bf16.msra.mxu0 %v6453_v31  ;;  %v6691_v31 = vld [vmem:[%s7074_s12 + $0x20] sm:$0xff] }
 0x4cc   : > { %v8079_v18 = vpop.f32.mrb[133].mxu1  ;;  %3819 = vmatmul.mubr.f32.gmra.mrb[238].mxu1 %v3383_v36 }
 0x4cd   : > { %3824 = vmatprep.mubr.f32.mxu1 %v8567_v44 }
 0x4cf   : > { %v3508_v24 = vpop.f32.mrb[134].mxu1 }
 0x4d0   : > { %v6457_v28 = vpack.c.bf16 %v3508_v24, %v3502_v46  ;;  %v8083_v42 = vpop.f32.mrb[135].mxu1  ;;  %3825 = vmatmul.mubr.f32.gmra.mrb[240].mxu1 %v3384_v30 }
 0x4d1   : > { %3830 = vmatprep.mubr.f32.mxu1 %v8567_v44 }
 0x4d2   : > { %6458 = vmatprep.subr.bf16.mxu0 %v6457_v28 }
 0x4d3   : > { %v3514_v20 = vpop.f32.mrb[136].mxu1  ;;  %6460 = vmatpush3.bf16.msra.mxu0 %v6457_v28  ;;  %v6694_v28 = vld [vmem:[%s7074_s12 + $0x38] sm:$0xff] }
 0x4d4   : > { %v8087_v16 = vpop.f32.mrb[137].mxu1  ;;  %3831 = vmatmul.mubr.f32.gmra.mrb[242].mxu1 %v3385_v12 }
 0x4d5   : > { %3836 = vmatprep.mubr.f32.mxu1 %v8567_v44 }
 0x4d7   : > { %v3520_v21 = vpop.f32.mrb[138].mxu1 }
 0x4d8   : > { %v6461_v58 = vpack.c.bf16 %v3520_v21, %v3514_v20  ;;  %v8091_v41 = vpop.f32.mrb[139].mxu1  ;;  %3837 = vmatmul.mubr.f32.gmra.mrb[244].mxu1 %v3386_v52  ;;  %v6697_v21 = vld [vmem:[%s7074_s12 + $0x50] sm:$0xff] }
 0x4d9   : > { %3842 = vmatprep.mubr.f32.mxu1 %v8567_v44 }
 0x4da   : > { %6462 = vmatprep.subr.bf16.mxu0 %v6461_v58 }
 0x4db   : > { %v3526_v59 = vpop.f32.mrb[140].mxu1  ;;  %6464 = vmatpush3.bf16.msra.mxu0 %v6461_v58 }
 0x4dc   : > { %v8095_v14 = vpop.f32.mrb[141].mxu1  ;;  %3843 = vmatmul.mubr.f32.gmra.mrb[246].mxu1 %v3387_v15 }
 0x4dd   : > { %3848 = vmatprep.mubr.f32.mxu1 %v8567_v44 }
 0x4df   : > { %v3532_v49 = vpop.f32.mrb[142].mxu1 }
 0x4e0   : > { %v6465_v10 = vpack.c.bf16 %v3532_v49, %v3526_v59  ;;  %v8100_v37 = vpop.f32.mrb[143].mxu1  ;;  %3849 = vmatmul.mubr.f32.gmra.mrb[248].mxu1 %v3388_v1  ;;  %v6700_v49 = vld [vmem:[%s7074_s12 + $0x68] sm:$0xff] }
 0x4e1   : > { %3854 = vmatprep.mubr.f32.mxu1 %v8567_v44 }
 0x4e2   : > { %6466 = vmatprep.subr.bf16.mxu0 %v6465_v10 }
 0x4e3   : > { %v3538_v63 = vpop.f32.mrb[144].mxu1  ;;  %6468 = vmatpush3.bf16.msra.mxu0 %v6465_v10 }
 0x4e4   : > { %v8104_v57 = vpop.f32.mrb[145].mxu1  ;;  %3855 = vmatmul.mubr.f32.gmra.mrb[250].mxu1 %v3389_v50  ;;  %v6701_v50 = vld [vmem:[%s7074_s12 + $0x70] sm:$0xff] }
 0x4e5   : > { %3860 = vmatprep.mubr.f32.mxu1 %v8567_v44 }
 0x4e7   : > { %v3544_v45 = vpop.f32.mrb[146].mxu1 }
 0x4e8   : > { %v6469_v0 = vpack.c.bf16 %v3544_v45, %v3538_v63  ;;  %v8109_v2 = vpop.f32.mrb[147].mxu1  ;;  %3861 = vmatmul.mubr.f32.gmra.mrb[252].mxu1 %v3390_v43  ;;  %v6703_v45 = vld [vmem:[%s7074_s12 + $0x80] sm:$0xff] }
 0x4e9   : > { %3866 = vmatprep.mubr.f32.mxu1 %v8567_v44 }
 0x4ea   : > { %6470 = vmatprep.subr.bf16.mxu0 %v6469_v0 }
 0x4eb   : > { %v3550_v11 = vpop.f32.mrb[148].mxu1  ;;  %6472 = vmatpush3.bf16.msra.mxu0 %v6469_v0 }
 0x4ec   : > { %v8112_v35 = vpop.f32.mrb[149].mxu1  ;;  %3867 = vmatmul.mubr.f32.gmra.mrb[254].mxu1 %v3391_v54 }
 0x4ef   : > { %v3556_v3 = vpop.f32.mrb[150].mxu1 }
 0x4f0   : > { %v6473_v9 = vpack.c.bf16 %v3556_v3, %v3550_v11  ;;  %v8114_v25 = vpop.f32.mrb[151].mxu1 }
 0x4f2   : > { %6474 = vmatprep.subr.bf16.mxu0 %v6473_v9 }
 0x4f3   : > { %v3562_v40 = vpop.f32.mrb[152].mxu1  ;;  %6476 = vmatpush3.bf16.msra.mxu0 %v6473_v9 }
 0x4f4   : > { %v8116_v55 = vpop.f32.mrb[153].mxu1 }
 0x4f7   : > { %v3568_v8 = vpop.f32.mrb[154].mxu1 }
 0x4f8   : > { %v6477_v51 = vpack.c.bf16 %v3568_v8, %v3562_v40  ;;  %v8118_v44 = vpop.f32.mrb[155].mxu1 }
 0x4fa   : > { %6478 = vmatprep.subr.bf16.mxu0 %v6477_v51 }
 0x4fb   : > { %v3574_v33 = vpop.f32.mrb[156].mxu1  ;;  %6480 = vmatpush3.bf16.msra.mxu0 %v6477_v51 }
 0x4fc   : > { %v8120_v60 = vpop.f32.mrb[157].mxu1 }
 0x4ff   : > { %v3580_v4 = vpop.f32.mrb[158].mxu1 }
 0x500   : > { %v6481_v7 = vpack.c.bf16 %v3580_v4, %v3574_v33  ;;  %v8122_v17 = vpop.f32.mrb[159].mxu1 }
 0x502   : > { %6482 = vmatprep.subr.bf16.mxu0 %v6481_v7 }
 0x503   : > { %v3586_v27 = vpop.f32.mrb[160].mxu1  ;;  %6484 = vmatpush3.bf16.msra.mxu0 %v6481_v7 }
 0x504   : > { %v8124_v47 = vpop.f32.mrb[161].mxu1 }
 0x506   : > { %5942 = vmatmul.mubr.f32.vlgmr.msra.gmra.mrb[192].mxu0 %v6688_v6 }
 0x507   : > { %v3592_v61 = vpop.f32.mrb[162].mxu1  ;;  %5944 = vmatprep.mubr.f32.mxu0 %v6689_v23 }
 0x508   : > { %v6485_v13 = vpack.c.bf16 %v3592_v61, %v3586_v27  ;;  %v8128_v53 = vpop.f32.mrb[163].mxu1 }
 0x50a   : > { %5945 = vmatmul.mubr.f32.gmra.mrb[194].mxu0 %v6690_v19  ;;  %6486 = vmatprep.subr.bf16.mxu0 %v6485_v13 }
 0x50b   : > { %v3598_v32 = vpop.f32.mrb[164].mxu1  ;;  %6488 = vmatpush3.bf16.msra.mxu0 %v6485_v13  ;;  %5947 = vmatprep.mubr.f32.mxu0 %v6691_v31 }
 0x50c   : > { %v8132_v36 = vpop.f32.mrb[165].mxu1 }
 0x50e   : > { %5948 = vmatmul.mubr.f32.gmra.mrb[196].mxu0 %v6692_v29 }
 0x50f   : > { %v3604_v46 = vpop.f32.mrb[166].mxu1  ;;  %5950 = vmatprep.mubr.f32.mxu0 %v6693_v62  ;;  %v6704_v62 = vld [vmem:[%s7074_s12 + $0x88] sm:$0xff] }
 0x510   : > { %v6489_v30 = vpack.c.bf16 %v3604_v46, %v3598_v32  ;;  %v8136_v24 = vpop.f32.mrb[167].mxu1 }
 0x512   : > { %5951 = vmatmul.mubr.f32.gmra.mrb[198].mxu0 %v6694_v28  ;;  %6490 = vmatprep.subr.bf16.mxu0 %v6489_v30  ;;  %v6705_v28 = vld [vmem:[%s7074_s12 + $0x90] sm:$0xff] }
 0x513   : > { %v3610_v12 = vpop.f32.mrb[168].mxu1  ;;  %6492 = vmatpush3.bf16.msra.mxu0 %v6489_v30  ;;  %5953 = vmatprep.mubr.f32.mxu0 %v6695_v5 }
 0x514   : > { %v8140_v20 = vpop.f32.mrb[169].mxu1 }
 0x516   : > { %5954 = vmatmul.mubr.f32.gmra.mrb[200].mxu0 %v6696_v39  ;;  %v6706_v39 = vld [vmem:[%s7074_s12 + $0x98] sm:$0xff] }
 0x517   : > { %v3616_v52 = vpop.f32.mrb[170].mxu1  ;;  %5956 = vmatprep.mubr.f32.mxu0 %v6697_v21  ;;  %v6707_v21 = vld [vmem:[%s7074_s12 + $0xa0] sm:$0xff] }
 0x518   : > { %v6493_v58 = vpack.c.bf16 %v3616_v52, %v3610_v12  ;;  %v8144_v15 = vpop.f32.mrb[171].mxu1 }
 0x51a   : > { %5957 = vmatmul.mubr.f32.gmra.mrb[202].mxu0 %v6698_v22  ;;  %6494 = vmatprep.subr.bf16.mxu0 %v6493_v58  ;;  %v6708_v22 = vld [vmem:[%s7074_s12 + $0xa8] sm:$0xff] }
 0x51b   : > { %v3622_v59 = vpop.f32.mrb[172].mxu1  ;;  %6496 = vmatpush3.bf16.msra.mxu0 %v6493_v58  ;;  %5959 = vmatprep.mubr.f32.mxu0 %v6699_v48  ;;  %v6709_v48 = vld [vmem:[%s7074_s12 + $0xb0] sm:$0xff] }
 0x51c   : > { %v8148_v1 = vpop.f32.mrb[173].mxu1 }
 0x51e   : > { %5960 = vmatmul.mubr.f32.gmra.mrb[204].mxu0 %v6700_v49 }
 0x51f   : > { %v3628_v10 = vpop.f32.mrb[174].mxu1  ;;  %5962 = vmatprep.mubr.f32.mxu0 %v6701_v50  ;;  %v6710_v50 = vld [vmem:[%s7074_s12 + $0xb8] sm:$0xff] }
 0x520   : > { %v6497_v38 = vpack.c.bf16 %v3628_v10, %v3622_v59  ;;  %v8152_v63 = vpop.f32.mrb[175].mxu1 }
 0x522   : > { %5963 = vmatmul.mubr.f32.gmra.mrb[206].mxu0 %v6702_v34  ;;  %6498 = vmatprep.subr.bf16.mxu0 %v6497_v38  ;;  %v6711_v34 = vld [vmem:[%s7074_s12 + $0xc0] sm:$0xff] }
 0x523   : > { %v3634_v43 = vpop.f32.mrb[176].mxu1  ;;  %6500 = vmatpush3.bf16.msra.mxu0 %v6497_v38  ;;  %5997 = vmatprep.mubr.f32.mxu0 %v6703_v45  ;;  %v6712_v45 = vld [vmem:[%s7074_s12 + $0xc8] sm:$0xff] }
 0x524   : > { %v8156_v0 = vpop.f32.mrb[177].mxu1 }
 0x527   : > { %v3640_v54 = vpop.f32.mrb[178].mxu1 }
 0x528   : > { %v6501_v11 = vpack.c.bf16 %v3640_v54, %v3634_v43  ;;  %v8158_v3 = vpop.f32.mrb[179].mxu1 }
 0x52a   : > { %6502 = vmatprep.subr.bf16.mxu0 %v6501_v11 }
 0x52b   : > { %v3646_v9 = vpop.f32.mrb[180].mxu1  ;;  %6504 = vmatpush3.bf16.msra.mxu0 %v6501_v11  ;;  %v6713_v11 = vld [vmem:[%s7074_s12 + $0xd0] sm:$0xff] }
 0x52c   : > { %v8160_v40 = vpop.f32.mrb[181].mxu1 }
 0x52f   : > { %v3652_v8 = vpop.f32.mrb[182].mxu1 }
 0x530   : > { %v6505_v51 = vpack.c.bf16 %v3652_v8, %v3646_v9  ;;  %v8162_v33 = vpop.f32.mrb[183].mxu1 }
 0x532   : > { %6506 = vmatprep.subr.bf16.mxu0 %v6505_v51 }
 0x533   : > { %v3658_v4 = vpop.f32.mrb[184].mxu1  ;;  %6508 = vmatpush3.bf16.msra.mxu0 %v6505_v51  ;;  %v6714_v51 = vld [vmem:[%s7074_s12 + $0xd8] sm:$0xff] }
 0x534   : > { %v8164_v7 = vpop.f32.mrb[185].mxu1 }
 0x537   : > { %v3664_v27 = vpop.f32.mrb[186].mxu1 }
 0x538   : > { %v6509_v6 = vpack.c.bf16 %v3664_v27, %v3658_v4  ;;  %v8166_v61 = vpop.f32.mrb[187].mxu1  ;;  %v6715_v27 = vld [vmem:[%s7074_s12 + $0xe0] sm:$0xff] }
 0x53a   : > { %6510 = vmatprep.subr.bf16.mxu0 %v6509_v6 }
 0x53b   : > { %v3670_v23 = vpop.f32.mrb[188].mxu1  ;;  %6512 = vmatpush3.bf16.msra.mxu0 %v6509_v6 }
 0x53c   : > { %v8168_v13 = vpop.f32.mrb[189].mxu1 }
 0x53f   : > { %v3676_v19 = vpop.f32.mrb[190].mxu1 }
 0x540   : > { %v6513_v32 = vpack.c.bf16 %v3676_v19, %v3670_v23  ;;  %v8170_v31 = vpop.f32.mrb[191].mxu1  ;;  %v6716_v23 = vld [vmem:[%s7074_s12 + $0xe8] sm:$0xff] }
 0x542   : > { %6514 = vmatprep.subr.bf16.mxu0 %v6513_v32 }
 0x543   : > { %v3682_v29 = vpop.f32.mrb[192].mxu1  ;;  %6516 = vmatpush3.bf16.msra.mxu0 %v6513_v32  ;;  %v6717_v32 = vld [vmem:[%s7074_s12 + $0xf0] sm:$0xff] }
 0x544   : > { %v8172_v46 = vpop.f32.mrb[193].mxu1 }
 0x546   : > { %5998 = vmatmul.mubr.f32.vlgmr.msra.gmra.mrb[208].mxu0 %v6704_v62 }
 0x547   : > { %v3688_v30 = vpop.f32.mrb[194].mxu1  ;;  %6000 = vmatprep.mubr.f32.mxu0 %v6705_v28 }
 0x548   : > { %v6517_v12 = vpack.c.bf16 %v3688_v30, %v3682_v29  ;;  %v8176_v5 = vpop.f32.mrb[195].mxu1  ;;  %v6718_v30 = vld [vmem:[%s7074_s12 + $0xf8] sm:$0xff] }
 0x54a   : > { %6001 = vmatmul.mubr.f32.gmra.mrb[210].mxu0 %v6706_v39  ;;  %6518 = vmatprep.subr.bf16.mxu0 %v6517_v12 }
 0x54b   : > { %v3694_v52 = vpop.f32.mrb[196].mxu1  ;;  %6520 = vmatpush3.bf16.msra.mxu0 %v6517_v12  ;;  %6003 = vmatprep.mubr.f32.mxu0 %v6707_v21  ;;  %v6719_v12 = vld [vmem:[%s7074_s12 + $0x100] sm:$0xff] }
 0x54c   : > { %v8180_v58 = vpop.f32.mrb[197].mxu1 }
 0x54e   : > { %6004 = vmatmul.mubr.f32.gmra.mrb[212].mxu0 %v6708_v22 }
 0x54f   : > { %v3700_v59 = vpop.f32.mrb[198].mxu1  ;;  %6006 = vmatprep.mubr.f32.mxu0 %v6709_v48 }
 0x550   : > { %v6521_v49 = vpack.c.bf16 %v3700_v59, %v3694_v52  ;;  %v8184_v10 = vpop.f32.mrb[199].mxu1 }
 0x552   : > { %6007 = vmatmul.mubr.f32.gmra.mrb[214].mxu0 %v6710_v50  ;;  %6522 = vmatprep.subr.bf16.mxu0 %v6521_v49 }
 0x553   : > { %v3706_v38 = vpop.f32.mrb[200].mxu1  ;;  %6524 = vmatpush3.bf16.msra.mxu0 %v6521_v49  ;;  %6009 = vmatprep.mubr.f32.mxu0 %v6711_v34 }
 0x554   : > { %v8188_v43 = vpop.f32.mrb[201].mxu1 }
 0x556   : > { %6010 = vmatmul.mubr.f32.gmra.mrb[216].mxu0 %v6712_v45 }
 0x557   : > { %v3712_v54 = vpop.f32.mrb[202].mxu1  ;;  %6012 = vmatprep.mubr.f32.mxu0 %v6713_v11 }
 0x558   : > { %v6525_v9 = vpack.c.bf16 %v3712_v54, %v3706_v38  ;;  %v8192_v8 = vpop.f32.mrb[203].mxu1 }
 0x55a   : > { %6013 = vmatmul.mubr.f32.gmra.mrb[218].mxu0 %v6714_v51  ;;  %6526 = vmatprep.subr.bf16.mxu0 %v6525_v9 }
 0x55b   : > { %v3718_v4 = vpop.f32.mrb[204].mxu1  ;;  %6528 = vmatpush3.bf16.msra.mxu0 %v6525_v9  ;;  %6015 = vmatprep.mubr.f32.mxu0 %v6715_v27 }
 0x55c   : > { %v8196_v6 = vpop.f32.mrb[205].mxu1 }
 0x55e   : > { %6016 = vmatmul.mubr.f32.gmra.mrb[220].mxu0 %v6716_v23 }
 0x55f   : > { %v3724_v19 = vpop.f32.mrb[206].mxu1  ;;  %6018 = vmatprep.mubr.f32.mxu0 %v6717_v32 }
 0x560   : > { %v6529_v29 = vpack.c.bf16 %v3724_v19, %v3718_v4  ;;  %v8200_v62 = vpop.f32.mrb[207].mxu1 }
 0x562   : > { %6019 = vmatmul.mubr.f32.gmra.mrb[222].mxu0 %v6718_v30  ;;  %6530 = vmatprep.subr.bf16.mxu0 %v6529_v29  ;;  %v6720_v30 = vld [vmem:[%s7074_s12 + $0x108] sm:$0xff] }
 0x563   : > { %v3730_v28 = vpop.f32.mrb[208].mxu1  ;;  %6532 = vmatpush3.bf16.msra.mxu0 %v6529_v29  ;;  %6053 = vmatprep.mubr.f32.mxu0 %v6719_v12  ;;  %v6721_v12 = vld [vmem:[%s7074_s12 + $0x110] sm:$0xff] }
 0x564   : > { %v8204_v39 = vpop.f32.mrb[209].mxu1 }
 0x567   : > { %v3736_v52 = vpop.f32.mrb[210].mxu1 }
 0x568   : > { %v6533_v21 = vpack.c.bf16 %v3736_v52, %v3730_v28  ;;  %v8206_v22 = vpop.f32.mrb[211].mxu1 }
 0x56a   : > { %6534 = vmatprep.subr.bf16.mxu0 %v6533_v21 }
 0x56b   : > { %v3742_v59 = vpop.f32.mrb[212].mxu1  ;;  %6536 = vmatpush3.bf16.msra.mxu0 %v6533_v21 }
 0x56c   : > { %v8208_v48 = vpop.f32.mrb[213].mxu1 }
 0x56f   : > { %v3748_v49 = vpop.f32.mrb[214].mxu1 }
 0x570   : > { %v6537_v50 = vpack.c.bf16 %v3748_v49, %v3742_v59  ;;  %v8210_v38 = vpop.f32.mrb[215].mxu1  ;;  %v6722_v59 = vld [vmem:[%s7074_s12 + $0x118] sm:$0xff] }
 0x572   : > { %6538 = vmatprep.subr.bf16.mxu0 %v6537_v50 }
 0x573   : > { %v3754_v34 = vpop.f32.mrb[216].mxu1  ;;  %6540 = vmatpush3.bf16.msra.mxu0 %v6537_v50  ;;  %v6723_v50 = vld [vmem:[%s7074_s12 + $0x120] sm:$0xff] }
 0x574   : > { %v8212_v45 = vpop.f32.mrb[217].mxu1 }
 0x577   : > { %v3760_v54 = vpop.f32.mrb[218].mxu1 }
 0x578   : > { %v6541_v11 = vpack.c.bf16 %v3760_v54, %v3754_v34  ;;  %v8214_v9 = vpop.f32.mrb[219].mxu1  ;;  %v6724_v54 = vld [vmem:[%s7074_s12 + $0x128] sm:$0xff] }
 0x57a   : > { %6542 = vmatprep.subr.bf16.mxu0 %v6541_v11 }
 0x57b   : > { %v3766_v51 = vpop.f32.mrb[220].mxu1  ;;  %6544 = vmatpush3.bf16.msra.mxu0 %v6541_v11 }
 0x57c   : > { %v8216_v4 = vpop.f32.mrb[221].mxu1 }
 0x57f   : > { %v3772_v27 = vpop.f32.mrb[222].mxu1 }
 0x580   : > { %v6545_v23 = vpack.c.bf16 %v3772_v27, %v3766_v51  ;;  %v8218_v19 = vpop.f32.mrb[223].mxu1  ;;  %v6725_v51 = vld [vmem:[%s7074_s12 + $0x130] sm:$0xff] }
 0x582   : > { %6546 = vmatprep.subr.bf16.mxu0 %v6545_v23 }
 0x583   : > { %v3778_v32 = vpop.f32.mrb[224].mxu1  ;;  %6548 = vmatpush3.bf16.msra.mxu0 %v6545_v23 }
 0x584   : > { %v8220_v29 = vpop.f32.mrb[225].mxu1 }
 0x586   : > { %6054 = vmatmul.mubr.f32.vlgmr.msra.gmra.mrb[224].mxu0 %v6720_v30 }
 0x587   : > { %v3784_v28 = vpop.f32.mrb[226].mxu1  ;;  %6056 = vmatprep.mubr.f32.mxu0 %v6721_v12 }
 0x588   : > { %v6549_v52 = vpack.c.bf16 %v3784_v28, %v3778_v32  ;;  %v8224_v21 = vpop.f32.mrb[227].mxu1  ;;  %v6726_v32 = vld [vmem:[%s7074_s12 + $0x138] sm:$0xff]  ;;  %v6727_v28 = vld [vmem:[%s7074_s12 + $0x140] sm:$0xff] }
 0x58a   : > { %6057 = vmatmul.mubr.f32.gmra.mrb[226].mxu0 %v6722_v59  ;;  %6550 = vmatprep.subr.bf16.mxu0 %v6549_v52 }
 0x58b   : > { %v3790_v49 = vpop.f32.mrb[228].mxu1  ;;  %6552 = vmatpush3.bf16.msra.mxu0 %v6549_v52  ;;  %6059 = vmatprep.mubr.f32.mxu0 %v6723_v50  ;;  %v6728_v52 = vld [vmem:[%s7074_s12 + $0x148] sm:$0xff]  ;;  %v6729_v50 = vld [vmem:[%s7074_s12 + $0x150] sm:$0xff] }
 0x58c   : > { %v8228_v34 = vpop.f32.mrb[229].mxu1 }
 0x58d   : > { %8585 = vst [vmem:[#allocation5_spill] sm:$0xff] %v8228_v34 }
 0x58e   : > { %6060 = vmatmul.mubr.f32.gmra.mrb[228].mxu0 %v6724_v54 }
 0x58f   : > { %v3796_v11 = vpop.f32.mrb[230].mxu1  ;;  %6062 = vmatprep.mubr.f32.mxu0 %v6725_v51 }
 0x590   : > { %v6553_v27 = vpack.c.bf16 %v3796_v11, %v3790_v49  ;;  %v8232_v23 = vpop.f32.mrb[231].mxu1  ;;  %v6730_v11 = vld [vmem:[%s7074_s12 + $0x158] sm:$0xff] }
 0x591   : > { %8586 = vst [vmem:[#allocation7_spill] sm:$0xff] %v8232_v23  ;;  %v6748_v23 = vld [vmem:[%s7074_s12 + $0x1e8] sm:$0xff] }
 0x592   : > { %6063 = vmatmul.mubr.f32.gmra.mrb[230].mxu0 %v6726_v32  ;;  %6554 = vmatprep.subr.bf16.mxu0 %v6553_v27 }
 0x593   : > { %v3802_v30 = vpop.f32.mrb[232].mxu1  ;;  %6556 = vmatpush3.bf16.msra.mxu0 %v6553_v27  ;;  %6065 = vmatprep.mubr.f32.mxu0 %v6727_v28  ;;  %v6731_v27 = vld [vmem:[%s7074_s12 + $0x160] sm:$0xff]  ;;  %v6732_v28 = vld [vmem:[%s7074_s12 + $0x168] sm:$0xff] }
 0x594   : > { %v8236_v12 = vpop.f32.mrb[233].mxu1 }
 0x595   : > { %8587 = vst [vmem:[#allocation6_spill] sm:$0xff] %v8236_v12  ;;  %v6733_v12 = vld [vmem:[%s7074_s12 + $0x170] sm:$0xff] }
 0x596   : > { %6066 = vmatmul.mubr.f32.gmra.mrb[232].mxu0 %v6728_v52 }
 0x597   : > { %v3808_v59 = vpop.f32.mrb[234].mxu1  ;;  %6068 = vmatprep.mubr.f32.mxu0 %v6729_v50 }
 0x598   : > { %v6557_v49 = vpack.c.bf16 %v3808_v59, %v3802_v30  ;;  %v8240_v54 = vpop.f32.mrb[235].mxu1  ;;  %v6734_v59 = vld [vmem:[%s7074_s12 + $0x178] sm:$0xff] }
 0x599   : > { %8588 = vst [vmem:[#allocation9_spill] sm:$0xff] %v8240_v54  ;;  %v6735_v54 = vld [vmem:[%s7074_s12 + $0x180] sm:$0xff] }
 0x59a   : > { %6069 = vmatmul.mubr.f32.gmra.mrb[234].mxu0 %v6730_v11  ;;  %6558 = vmatprep.subr.bf16.mxu0 %v6557_v49 }
 0x59b   : > { %v3814_v51 = vpop.f32.mrb[236].mxu1  ;;  %6560 = vmatpush3.bf16.msra.mxu0 %v6557_v49  ;;  %6071 = vmatprep.mubr.f32.mxu0 %v6731_v27 }
 0x59c   : > { %v8244_v32 = vpop.f32.mrb[237].mxu1 }
 0x59d   : > { %8589 = vst [vmem:[#allocation8_spill] sm:$0xff] %v8244_v32 }
 0x59e   : > { %6072 = vmatmul.mubr.f32.gmra.mrb[236].mxu0 %v6732_v28 }
 0x59f   : > { %v3820_v52 = vpop.f32.mrb[238].mxu1  ;;  %6074 = vmatprep.mubr.f32.mxu0 %v6733_v12 }
 0x5a0   : > { %v6561_v50 = vpack.c.bf16 %v3820_v52, %v3814_v51  ;;  %v8248_v30 = vpop.f32.mrb[239].mxu1 }
 0x5a1   : > { %8590 = vst [vmem:[#allocation11_spill] sm:$0xff] %v8248_v30 }
 0x5a2   : > { %6075 = vmatmul.mubr.f32.gmra.mrb[238].mxu0 %v6734_v59  ;;  %6562 = vmatprep.subr.bf16.mxu0 %v6561_v50 }
 0x5a3   : > { %v3826_v11 = vpop.f32.mrb[240].mxu1  ;;  %6564 = vmatpush3.bf16.msra.mxu0 %v6561_v50  ;;  %6109 = vmatprep.mubr.f32.mxu0 %v6735_v54 }
 0x5a4   : > { %v8252_v49 = vpop.f32.mrb[241].mxu1 }
 0x5a5   : > { %8591 = vst [vmem:[#allocation10_spill] sm:$0xff] %v8252_v49 }
 0x5a7   : > { %v3832_v27 = vpop.f32.mrb[242].mxu1 }
 0x5a8   : > { %v6565_v34 = vpack.c.bf16 %v3832_v27, %v3826_v11  ;;  %v8254_v32 = vpop.f32.mrb[243].mxu1 }
 0x5a9   : > { %8592 = vst [vmem:[#allocation13_spill] sm:$0xff] %v8254_v32 }
 0x5aa   : > { %6566 = vmatprep.subr.bf16.mxu0 %v6565_v34 }
 0x5ab   : > { %v3838_v28 = vpop.f32.mrb[244].mxu1  ;;  %6568 = vmatpush3.bf16.msra.mxu0 %v6565_v34 }
 0x5ac   : > { %v8256_v12 = vpop.f32.mrb[245].mxu1 }
 0x5ad   : > { %8593 = vst [vmem:[#allocation12_spill] sm:$0xff] %v8256_v12 }
 0x5af   : > { %v3844_v51 = vpop.f32.mrb[246].mxu1 }
 0x5b0   : > { %v6569_v52 = vpack.c.bf16 %v3844_v51, %v3838_v28  ;;  %v8258_v30 = vpop.f32.mrb[247].mxu1 }
 0x5b1   : > { %8594 = vst [vmem:[#allocation15_spill] sm:$0xff] %v8258_v30 }
 0x5b2   : > { %6570 = vmatprep.subr.bf16.mxu0 %v6569_v52 }
 0x5b3   : > { %v3850_v50 = vpop.f32.mrb[248].mxu1  ;;  %6572 = vmatpush3.bf16.msra.mxu0 %v6569_v52 }
 0x5b4   : > { %v8260_v54 = vpop.f32.mrb[249].mxu1 }
 0x5b5   : > { %8595 = vst [vmem:[#allocation14_spill] sm:$0xff] %v8260_v54  ;;  %v6736_v54 = vld [vmem:[%s7074_s12 + $0x188] sm:$0xff] }
 0x5b7   : > { %v3856_v59 = vpop.f32.mrb[250].mxu1 }
 0x5b8   : > { %v6573_v11 = vpack.c.bf16 %v3856_v59, %v3850_v50  ;;  %v8262_v27 = vpop.f32.mrb[251].mxu1  ;;  %v6737_v50 = vld [vmem:[%s7074_s12 + $0x190] sm:$0xff]  ;;  %v6738_v59 = vld [vmem:[%s7074_s12 + $0x198] sm:$0xff] }
 0x5b9   : > { %8596 = vst [vmem:[#allocation17_spill] sm:$0xff] %v8262_v27 }
 0x5ba   : > { %6574 = vmatprep.subr.bf16.mxu0 %v6573_v11 }
 0x5bb   : > { %v3862_v34 = vpop.f32.mrb[252].mxu1  ;;  %6576 = vmatpush3.bf16.msra.mxu0 %v6573_v11  ;;  %v6739_v11 = vld [vmem:[%s7074_s12 + $0x1a0] sm:$0xff] }
 0x5bc   : > { %v8264_v28 = vpop.f32.mrb[253].mxu1 }
 0x5bd   : > { %8597 = vst [vmem:[#allocation16_spill] sm:$0xff] %v8264_v28  ;;  %v6740_v28 = vld [vmem:[%s7074_s12 + $0x1a8] sm:$0xff] }
 0x5bf   : > { %v3868_v51 = vpop.f32.mrb[254].mxu1 }
 0x5c0   : > { %v6577_v12 = vpack.c.bf16 %v3868_v51, %v3862_v34  ;;  %v8266_v52 = vpop.f32.mrb[255].mxu1  ;;  %v6741_v34 = vld [vmem:[%s7074_s12 + $0x1b0] sm:$0xff]  ;;  %v6742_v51 = vld [vmem:[%s7074_s12 + $0x1b8] sm:$0xff] }
 0x5c1   : > { %8598 = vst [vmem:[#allocation19_spill] sm:$0xff] %v8266_v52 }
 0x5c2   : > { %6578 = vmatprep.subr.bf16.mxu0 %v6577_v12 }
 0x5c3   : > { %6580 = vmatpush3.bf16.msra.mxu0 %v6577_v12  ;;  %v6743_v12 = vld [vmem:[%s7074_s12 + $0x1c0] sm:$0xff] }
 0x5c6   : > { %6110 = vmatmul.mubr.f32.vlgmr.msra.gmra.mrb[240].mxu0 %v6736_v54  ;;  %v6744_v54 = vld [vmem:[%s7074_s12 + $0x1c8] sm:$0xff] }
 0x5c7   : > { %6112 = vmatprep.mubr.f32.mxu0 %v6737_v50  ;;  %v6745_v50 = vld [vmem:[%s7074_s12 + $0x1d0] sm:$0xff] }
 0x5ca   : > { %6113 = vmatmul.mubr.f32.gmra.mrb[242].mxu0 %v6738_v59  ;;  %v8282_v59 = vld [vmem:[%s8544_s7] ss:$0 sm:$0xff] }
 0x5cb   : > { %6115 = vmatprep.mubr.f32.mxu0 %v6739_v11 }
 0x5ce   : > { %6116 = vmatmul.mubr.f32.gmra.mrb[244].mxu0 %v6740_v28 }
 0x5cf   : > { %6118 = vmatprep.mubr.f32.mxu0 %v6741_v34  ;;  %v6746_v34 = vld [vmem:[%s7074_s12 + $0x1d8] sm:$0xff] }
 0x5d2   : > { %6119 = vmatmul.mubr.f32.gmra.mrb[246].mxu0 %v6742_v51 }
 0x5d3   : > { %6121 = vmatprep.mubr.f32.mxu0 %v6743_v12  ;;  %v6747_v12 = vld [vmem:[%s7074_s12 + $0x1e0] sm:$0xff] }
 0x5d6   : > { %6122 = vmatmul.mubr.f32.gmra.mrb[248].mxu0 %v6744_v54 }
 0x5d7   : > { %6124 = vmatprep.mubr.f32.mxu0 %v6745_v50 }
 0x5d9   : > { %v5943_v52 = vpop.f32.mrb[192].mxu0 }
 0x5da   : > { %v3945_v28 = vadd.f32 %v5943_v52, %v8075_v56  ;;  %v3939_v11 = vpop.f32.mrb[193].mxu0  ;;  %6125 = vmatmul.mubr.f32.gmra.mrb[250].mxu0 %v6746_v34  ;;  %v6749_v34 = vld [vmem:[%s7074_s12 + $0x1f0] sm:$0xff] }
 0x5db   : > { %v3940_v51 = vadd.f32 %v3939_v11, %v8071_v26  ;;  %6127 = vmatprep.mubr.f32.mxu0 %v6747_v12 }
 0x5dc   : > { %v4461_v54 = vadd.f32 %v8282_v59, %v3945_v28 }
 0x5dd   : > { %v4460_v50 = vadd.f32 %v8282_v59, %v3940_v51  ;;  %v5946_v27 = vpop.f32.mrb[194].mxu0 }
 0x5de   : > { %v4525_v30 = vmax.f32 %v4461_v54, 0.0  ;;  %v3955_v49 = vadd.f32 %v5946_v27, %v8083_v42  ;;  %v3949_v32 = vpop.f32.mrb[195].mxu0  ;;  %6128 = vmatmul.mubr.f32.gmra.mrb[252].mxu0 %v6748_v23 }
 0x5df   : > { %v4524_v56 = vmax.f32 %v4460_v50, 0.0  ;;  %v3950_v52 = vadd.f32 %v3949_v32, %v8079_v18  ;;  %6130 = vmatprep.mubr.f32.mxu0 %v6749_v34  ;;  %v6750_v32 = vld [vmem:[%s7074_s12 + $0x1f8] sm:$0xff]  ;;  %s4892_s12 = sshll.u32 %s6886_s9, 13  ;;  %s8496_s9 = scalar_lea.sflag [#allocation3], %s317_s22 }
 0x5e0   : > { %4589 = vst [vmem:[%s8296_s23 + $0x8] sm:$0xff] %v4525_v30  ;;  %v4463_v26 = vadd.f32 %v8282_v59, %v3955_v49  ;;  %s8488_s18 = scalar_lea.hbm %s8545_s8, %s4892_s12 }
 0x5e1   : > { %4588 = vst [vmem:[%s8296_s23] sm:$0xff] %v4524_v56  ;;  %v4462_v42 = vadd.f32 %v8282_v59, %v3950_v52  ;;  %v5949_v27 = vpop.f32.mrb[196].mxu0 }
 0x5e2   : > { %v4527_v28 = vmax.f32 %v4463_v26, 0.0  ;;  %v3965_v23 = vadd.f32 %v5949_v27, %v8091_v41  ;;  %v3959_v18 = vpop.f32.mrb[197].mxu0  ;;  %6131 = vmatmul.mubr.f32.gmra.mrb[254].mxu0 %v6750_v32 }
 0x5e3   : > { %v4526_v11 = vmax.f32 %v4462_v42, 0.0  ;;  %v3960_v51 = vadd.f32 %v3959_v18, %v8087_v16 }
 0x5e4   : > { %4591 = vst [vmem:[%s8296_s23 + $0x18] sm:$0xff] %v4527_v28  ;;  %v4465_v30 = vadd.f32 %v8282_v59, %v3965_v23 }
 0x5e5   : > { %4590 = vst [vmem:[%s8296_s23 + $0x10] sm:$0xff] %v4526_v11  ;;  %v4464_v49 = vadd.f32 %v8282_v59, %v3960_v51  ;;  %v5952_v12 = vpop.f32.mrb[198].mxu0 }
 0x5e6   : > { %v4529_v54 = vmax.f32 %v4465_v30, 0.0  ;;  %v3975_v50 = vadd.f32 %v5952_v12, %v8100_v37  ;;  %v3969_v41 = vpop.f32.mrb[199].mxu0 }
 0x5e7   : > { %v4528_v56 = vmax.f32 %v4464_v49, 0.0  ;;  %v3970_v52 = vadd.f32 %v3969_v41, %v8095_v14 }
 0x5e8   : > { %4593 = vst [vmem:[%s8296_s23 + $0x28] sm:$0xff] %v4529_v54  ;;  %v4467_v34 = vadd.f32 %v8282_v59, %v3975_v50 }
 0x5e9   : > { %4592 = vst [vmem:[%s8296_s23 + $0x20] sm:$0xff] %v4528_v56  ;;  %v4466_v16 = vadd.f32 %v8282_v59, %v3970_v52  ;;  %v5955_v26 = vpop.f32.mrb[200].mxu0 }
 0x5ea   : > { %v4531_v42 = vmax.f32 %v4467_v34, 0.0  ;;  %v3985_v27 = vadd.f32 %v5955_v26, %v8109_v2  ;;  %v3979_v28 = vpop.f32.mrb[201].mxu0 }
 0x5eb   : > { %v4530_v23 = vmax.f32 %v4466_v16, 0.0  ;;  %v3980_v37 = vadd.f32 %v3979_v28, %v8104_v57 }
 0x5ec   : > { %4595 = vst [vmem:[%s8296_s23 + $0x38] sm:$0xff] %v4531_v42  ;;  %v4469_v18 = vadd.f32 %v8282_v59, %v3985_v27 }
 0x5ed   : > { %4594 = vst [vmem:[%s8296_s23 + $0x30] sm:$0xff] %v4530_v23  ;;  %v4468_v14 = vadd.f32 %v8282_v59, %v3980_v37  ;;  %v5958_v32 = vpop.f32.mrb[202].mxu0 }
 0x5ee   : > { %v4533_v11 = vmax.f32 %v4469_v18, 0.0  ;;  %v3995_v51 = vadd.f32 %v5958_v32, %v8114_v25  ;;  %v3989_v30 = vpop.f32.mrb[203].mxu0 }
 0x5ef   : > { %v4532_v49 = vmax.f32 %v4468_v14, 0.0  ;;  %v3990_v2 = vadd.f32 %v3989_v30, %v8112_v35 }
 0x5f0   : > { %4597 = vst [vmem:[%s8296_s23 + $0x48] sm:$0xff] %v4533_v11  ;;  %v4471_v12 = vadd.f32 %v8282_v59, %v3995_v51 }
 0x5f1   : > { %4596 = vst [vmem:[%s8296_s23 + $0x40] sm:$0xff] %v4532_v49  ;;  %v4470_v57 = vadd.f32 %v8282_v59, %v3990_v2  ;;  %v5961_v54 = vpop.f32.mrb[204].mxu0 }
 0x5f2   : > { %v4535_v50 = vmax.f32 %v4471_v12, 0.0  ;;  %v4005_v41 = vadd.f32 %v5961_v54, %v8118_v44  ;;  %v3999_v56 = vpop.f32.mrb[205].mxu0 }
 0x5f3   : > { %v4534_v52 = vmax.f32 %v4470_v57, 0.0  ;;  %v4000_v25 = vadd.f32 %v3999_v56, %v8116_v55 }
 0x5f4   : > { %4599 = vst [vmem:[%s8296_s23 + $0x58] sm:$0xff] %v4535_v50  ;;  %v4473_v35 = vadd.f32 %v8282_v59, %v4005_v41 }
 0x5f5   : > { %4598 = vst [vmem:[%s8296_s23 + $0x50] sm:$0xff] %v4534_v52  ;;  %v4472_v34 = vadd.f32 %v8282_v59, %v4000_v25  ;;  %v5964_v16 = vpop.f32.mrb[206].mxu0 }
 0x5f6   : > { %v4537_v26 = vmax.f32 %v4473_v35, 0.0  ;;  %v4015_v42 = vadd.f32 %v5964_v16, %v8122_v17  ;;  %v4009_v27 = vpop.f32.mrb[207].mxu0 }
 0x5f7   : > { %v4536_v28 = vmax.f32 %v4472_v34, 0.0  ;;  %v4010_v44 = vadd.f32 %v4009_v27, %v8120_v60 }
 0x5f8   : > { %4601 = vst [vmem:[%s8296_s23 + $0x68] sm:$0xff] %v4537_v26  ;;  %v4475_v23 = vadd.f32 %v8282_v59, %v4015_v42 }
 0x5f9   : > { %4600 = vst [vmem:[%s8296_s23 + $0x60] sm:$0xff] %v4536_v28  ;;  %v4474_v55 = vadd.f32 %v8282_v59, %v4010_v44 }
 0x5fa   : > { %v4539_v37 = vmax.f32 %v4475_v23, 0.0 }
 0x5fb   : > { %v4538_v18 = vmax.f32 %v4474_v55, 0.0 }
 0x5fc   : > { %4603 = vst [vmem:[%s8296_s23 + $0x78] sm:$0xff] %v4539_v37 }
 0x5fd   : > { %4602 = vst [vmem:[%s8296_s23 + $0x70] sm:$0xff] %v4538_v18 }
 0x619   : > { %v5999_v14 = vpop.f32.mrb[208].mxu0 }
 0x61a   : > { %v4090_v32 = vadd.f32 %v5999_v14, %v8128_v53  ;;  %v4084_v17 = vpop.f32.mrb[209].mxu0 }
 0x61b   : > { %v4085_v11 = vadd.f32 %v4084_v17, %v8124_v47 }
 0x61c   : > { %v4477_v60 = vadd.f32 %v8282_v59, %v4090_v32 }
 0x61d   : > { %v4476_v51 = vadd.f32 %v8282_v59, %v4085_v11  ;;  %v6002_v30 = vpop.f32.mrb[210].mxu0 }
 0x61e   : > { %v4541_v49 = vmax.f32 %v4477_v60, 0.0  ;;  %v4100_v2 = vadd.f32 %v6002_v30, %v8136_v24  ;;  %v4094_v12 = vpop.f32.mrb[211].mxu0 }
 0x61f   : > { %v4540_v57 = vmax.f32 %v4476_v51, 0.0  ;;  %v4095_v54 = vadd.f32 %v4094_v12, %v8132_v36 }
 0x620   : > { %4605 = vst [vmem:[%s8296_s23 + $0x88] sm:$0xff] %v4541_v49  ;;  %v4479_v53 = vadd.f32 %v8282_v59, %v4100_v2 }
 0x621   : > { %4604 = vst [vmem:[%s8296_s23 + $0x80] sm:$0xff] %v4540_v57  ;;  %v4478_v47 = vadd.f32 %v8282_v59, %v4095_v54  ;;  %v6005_v50 = vpop.f32.mrb[212].mxu0 }
 0x622   : > { %v4543_v41 = vmax.f32 %v4479_v53, 0.0  ;;  %v4110_v56 = vadd.f32 %v6005_v50, %v8144_v15  ;;  %v4104_v52 = vpop.f32.mrb[213].mxu0 }
 0x623   : > { %v4542_v25 = vmax.f32 %v4478_v47, 0.0  ;;  %v4105_v24 = vadd.f32 %v4104_v52, %v8140_v20 }
 0x624   : > { %4607 = vst [vmem:[%s8296_s23 + $0x98] sm:$0xff] %v4543_v41  ;;  %v4481_v35 = vadd.f32 %v8282_v59, %v4110_v56 }
 0x625   : > { %4606 = vst [vmem:[%s8296_s23 + $0x90] sm:$0xff] %v4542_v25  ;;  %v4480_v36 = vadd.f32 %v8282_v59, %v4105_v24  ;;  %v6008_v34 = vpop.f32.mrb[214].mxu0 }
 0x626   : > { %v4545_v16 = vmax.f32 %v4481_v35, 0.0  ;;  %v4120_v26 = vadd.f32 %v6008_v34, %v8152_v63  ;;  %v4114_v42 = vpop.f32.mrb[215].mxu0 }
 0x627   : > { %v4544_v27 = vmax.f32 %v4480_v36, 0.0  ;;  %v4115_v15 = vadd.f32 %v4114_v42, %v8148_v1 }
 0x628   : > { %4609 = vst [vmem:[%s8296_s23 + $0xa8] sm:$0xff] %v4545_v16  ;;  %v4483_v28 = vadd.f32 %v8282_v59, %v4120_v26 }
 0x629   : > { %4608 = vst [vmem:[%s8296_s23 + $0xa0] sm:$0xff] %v4544_v27  ;;  %v4482_v20 = vadd.f32 %v8282_v59, %v4115_v15  ;;  %v6011_v44 = vpop.f32.mrb[216].mxu0 }
 0x62a   : > { %v4547_v23 = vmax.f32 %v4483_v28, 0.0  ;;  %v4130_v55 = vadd.f32 %v6011_v44, %v8158_v3  ;;  %v4124_v37 = vpop.f32.mrb[217].mxu0 }
 0x62b   : > { %v4546_v18 = vmax.f32 %v4482_v20, 0.0  ;;  %v4125_v63 = vadd.f32 %v4124_v37, %v8156_v0 }
 0x62c   : > { %4611 = vst [vmem:[%s8296_s23 + $0xb8] sm:$0xff] %v4547_v23  ;;  %v4485_v14 = vadd.f32 %v8282_v59, %v4130_v55 }
 0x62d   : > { %4610 = vst [vmem:[%s8296_s23 + $0xb0] sm:$0xff] %v4546_v18  ;;  %v4484_v1 = vadd.f32 %v8282_v59, %v4125_v63  ;;  %v6014_v32 = vpop.f32.mrb[218].mxu0 }
 0x62e   : > { %v4549_v17 = vmax.f32 %v4485_v14, 0.0  ;;  %v4140_v11 = vadd.f32 %v6014_v32, %v8162_v33  ;;  %v4134_v60 = vpop.f32.mrb[219].mxu0 }
 0x62f   : > { %v4548_v51 = vmax.f32 %v4484_v1, 0.0  ;;  %v4135_v3 = vadd.f32 %v4134_v60, %v8160_v40 }
 0x630   : > { %4613 = vst [vmem:[%s8296_s23 + $0xc8] sm:$0xff] %v4549_v17  ;;  %v4487_v30 = vadd.f32 %v8282_v59, %v4140_v11 }
 0x631   : > { %4612 = vst [vmem:[%s8296_s23 + $0xc0] sm:$0xff] %v4548_v51  ;;  %v4486_v0 = vadd.f32 %v8282_v59, %v4135_v3  ;;  %v6017_v49 = vpop.f32.mrb[220].mxu0 }
 0x632   : > { %v4551_v2 = vmax.f32 %v4487_v30, 0.0  ;;  %v4150_v12 = vadd.f32 %v6017_v49, %v8166_v61  ;;  %v4144_v57 = vpop.f32.mrb[221].mxu0 }
 0x633   : > { %v4550_v54 = vmax.f32 %v4486_v0, 0.0  ;;  %v4145_v33 = vadd.f32 %v4144_v57, %v8164_v7 }
 0x634   : > { %4615 = vst [vmem:[%s8296_s23 + $0xd8] sm:$0xff] %v4551_v2  ;;  %v4489_v40 = vadd.f32 %v8282_v59, %v4150_v12 }
 0x635   : > { %4614 = vst [vmem:[%s8296_s23 + $0xd0] sm:$0xff] %v4550_v54  ;;  %v4488_v53 = vadd.f32 %v8282_v59, %v4145_v33  ;;  %v6020_v47 = vpop.f32.mrb[222].mxu0 }
 0x636   : > { %v4553_v50 = vmax.f32 %v4489_v40, 0.0  ;;  %v4160_v41 = vadd.f32 %v6020_v47, %v8170_v31  ;;  %v4154_v56 = vpop.f32.mrb[223].mxu0 }
 0x637   : > { %v4552_v52 = vmax.f32 %v4488_v53, 0.0  ;;  %v4155_v61 = vadd.f32 %v4154_v56, %v8168_v13 }
 0x638   : > { %4617 = vst [vmem:[%s8296_s23 + $0xe8] sm:$0xff] %v4553_v50  ;;  %v4491_v25 = vadd.f32 %v8282_v59, %v4160_v41 }
 0x639   : > { %4616 = vst [vmem:[%s8296_s23 + $0xe0] sm:$0xff] %v4552_v52  ;;  %v4490_v7 = vadd.f32 %v8282_v59, %v4155_v61 }
 0x63a   : > { %v4555_v24 = vmax.f32 %v4491_v25, 0.0 }
 0x63b   : > { %v4554_v35 = vmax.f32 %v4490_v7, 0.0 }
 0x63c   : > { %4619 = vst [vmem:[%s8296_s23 + $0xf8] sm:$0xff] %v4555_v24 }
 0x63d   : > { %4618 = vst [vmem:[%s8296_s23 + $0xf0] sm:$0xff] %v4554_v35 }
 0x659   : > { %v6055_v36 = vpop.f32.mrb[224].mxu0 }
 0x65a   : > { %v4235_v34 = vadd.f32 %v6055_v36, %v8176_v5  ;;  %v4229_v31 = vpop.f32.mrb[225].mxu0 }
 0x65b   : > { %v4230_v16 = vadd.f32 %v4229_v31, %v8172_v46 }
 0x65c   : > { %v4493_v13 = vadd.f32 %v8282_v59, %v4235_v34 }
 0x65d   : > { %v4492_v26 = vadd.f32 %v8282_v59, %v4230_v16  ;;  %v6058_v42 = vpop.f32.mrb[226].mxu0 }
 0x65e   : > { %v4557_v27 = vmax.f32 %v4493_v13, 0.0  ;;  %v4245_v15 = vadd.f32 %v6058_v42, %v8184_v10  ;;  %v4239_v28 = vpop.f32.mrb[227].mxu0 }
 0x65f   : > { %v4556_v20 = vmax.f32 %v4492_v26, 0.0  ;;  %v4240_v44 = vadd.f32 %v4239_v28, %v8180_v58 }
 0x660   : > { %4621 = vst [vmem:[%s8296_s23 + $0x108] sm:$0xff] %v4557_v27  ;;  %v4495_v5 = vadd.f32 %v8282_v59, %v4245_v15 }
 0x661   : > { %4620 = vst [vmem:[%s8296_s23 + $0x100] sm:$0xff] %v4556_v20  ;;  %v4494_v46 = vadd.f32 %v8282_v59, %v4240_v44  ;;  %v6061_v23 = vpop.f32.mrb[228].mxu0  ;;  %v8599_v44 = vld [vmem:[#allocation7_spill] sm:$0xff] }
 0x662   : > { %v4559_v55 = vmax.f32 %v4495_v5, 0.0  ;;  %v4255_v37 = vadd.f32 %v6061_v23, %v8192_v8  ;;  %v4249_v18 = vpop.f32.mrb[229].mxu0 }
 0x663   : > { %v4558_v63 = vmax.f32 %v4494_v46, 0.0  ;;  %v4250_v10 = vadd.f32 %v4249_v18, %v8188_v43 }
 0x664   : > { %4623 = vst [vmem:[%s8296_s23 + $0x118] sm:$0xff] %v4559_v55  ;;  %v4497_v14 = vadd.f32 %v8282_v59, %v4255_v37  ;;  %v8600_v55 = vld [vmem:[#allocation5_spill] sm:$0xff] }
 0x665   : > { %4622 = vst [vmem:[%s8296_s23 + $0x110] sm:$0xff] %v4558_v63  ;;  %v4496_v58 = vadd.f32 %v8282_v59, %v4250_v10  ;;  %v6064_v1 = vpop.f32.mrb[230].mxu0  ;;  %v8601_v10 = vld [vmem:[#allocation9_spill] sm:$0xff] }
 0x666   : > { %v4561_v32 = vmax.f32 %v4497_v14, 0.0  ;;  %v4265_v17 = vadd.f32 %v6064_v1, %v8200_v62  ;;  %v4259_v11 = vpop.f32.mrb[231].mxu0 }
 0x667   : > { %v4560_v60 = vmax.f32 %v4496_v58, 0.0  ;;  %v4260_v8 = vadd.f32 %v4259_v11, %v8196_v6 }
 0x668   : > { %4625 = vst [vmem:[%s8296_s23 + $0x128] sm:$0xff] %v4561_v32  ;;  %v4499_v51 = vadd.f32 %v8282_v59, %v4265_v17  ;;  %v8602_v32 = vld [vmem:[#allocation6_spill] sm:$0xff] }
 0x669   : > { %4624 = vst [vmem:[%s8296_s23 + $0x120] sm:$0xff] %v4560_v60  ;;  %v4498_v43 = vadd.f32 %v8282_v59, %v4260_v8  ;;  %v6067_v3 = vpop.f32.mrb[232].mxu0 }
 0x66a   : > { %v4563_v30 = vmax.f32 %v4499_v51, 0.0  ;;  %v4275_v0 = vadd.f32 %v6067_v3, %v8206_v22  ;;  %v4269_v49 = vpop.f32.mrb[233].mxu0 }
 0x66b   : > { %v4562_v2 = vmax.f32 %v4498_v43, 0.0  ;;  %v4270_v62 = vadd.f32 %v4269_v49, %v8204_v39  ;;  %v8603_v43 = vld [vmem:[#allocation11_spill] sm:$0xff]  ;;  %v8604_v49 = vld [vmem:[#allocation8_spill] sm:$0xff] }
 0x66c   : > { %4627 = vst [vmem:[%s8296_s23 + $0x138] sm:$0xff] %v4563_v30  ;;  %v4501_v12 = vadd.f32 %v8282_v59, %v4275_v0 }
 0x66d   : > { %4626 = vst [vmem:[%s8296_s23 + $0x130] sm:$0xff] %v4562_v2  ;;  %v4500_v6 = vadd.f32 %v8282_v59, %v4270_v62  ;;  %v6070_v57 = vpop.f32.mrb[234].mxu0 }
 0x66e   : > { %v4565_v54 = vmax.f32 %v4501_v12, 0.0  ;;  %v4285_v33 = vadd.f32 %v6070_v57, %v8210_v38  ;;  %v4279_v40 = vpop.f32.mrb[235].mxu0 }
 0x66f   : > { %v4564_v53 = vmax.f32 %v4500_v6, 0.0  ;;  %v4280_v22 = vadd.f32 %v4279_v40, %v8208_v48 }
 0x670   : > { %4629 = vst [vmem:[%s8296_s23 + $0x148] sm:$0xff] %v4565_v54  ;;  %v4503_v47 = vadd.f32 %v8282_v59, %v4285_v33  ;;  %v8605_v54 = vld [vmem:[#allocation13_spill] sm:$0xff] }
 0x671   : > { %4628 = vst [vmem:[%s8296_s23 + $0x140] sm:$0xff] %v4564_v53  ;;  %v4502_v39 = vadd.f32 %v8282_v59, %v4280_v22  ;;  %v6073_v50 = vpop.f32.mrb[236].mxu0  ;;  %v8606_v22 = vld [vmem:[#allocation10_spill] sm:$0xff] }
 0x672   : > { %v4567_v41 = vmax.f32 %v4503_v47, 0.0  ;;  %v4295_v56 = vadd.f32 %v6073_v50, %v8214_v9  ;;  %v4289_v52 = vpop.f32.mrb[237].mxu0 }
 0x673   : > { %v4566_v61 = vmax.f32 %v4502_v39, 0.0  ;;  %v4290_v38 = vadd.f32 %v4289_v52, %v8212_v45  ;;  %v8607_v52 = vld [vmem:[#allocation15_spill] sm:$0xff] }
 0x674   : > { %4631 = vst [vmem:[%s8296_s23 + $0x158] sm:$0xff] %v4567_v41  ;;  %v4505_v48 = vadd.f32 %v8282_v59, %v4295_v56 }
 0x675   : > { %4630 = vst [vmem:[%s8296_s23 + $0x150] sm:$0xff] %v4566_v61  ;;  %v4504_v25 = vadd.f32 %v8282_v59, %v4290_v38  ;;  %v6076_v7 = vpop.f32.mrb[238].mxu0 }
 0x676   : > { %v4569_v24 = vmax.f32 %v4505_v48, 0.0  ;;  %v4305_v35 = vadd.f32 %v6076_v7, %v8218_v19  ;;  %v4299_v36 = vpop.f32.mrb[239].mxu0 }
 0x677   : > { %v4568_v34 = vmax.f32 %v4504_v25, 0.0  ;;  %v4300_v9 = vadd.f32 %v4299_v36, %v8216_v4  ;;  %v8608_v25 = vld [vmem:[#allocation12_spill] sm:$0xff] }
 0x678   : > { %4633 = vst [vmem:[%s8296_s23 + $0x168] sm:$0xff] %v4569_v24  ;;  %v4507_v31 = vadd.f32 %v8282_v59, %v4305_v35 }
 0x679   : > { %4632 = vst [vmem:[%s8296_s23 + $0x160] sm:$0xff] %v4568_v34  ;;  %v4506_v45 = vadd.f32 %v8282_v59, %v4300_v9  ;;  %v8609_v9 = vld [vmem:[#allocation17_spill] sm:$0xff] }
 0x67a   : > { %v4571_v16 = vmax.f32 %v4507_v31, 0.0 }
 0x67b   : > { %v4570_v13 = vmax.f32 %v4506_v45, 0.0 }
 0x67c   : > { %4635 = vst [vmem:[%s8296_s23 + $0x178] sm:$0xff] %v4571_v16 }
 0x67d   : > { %4634 = vst [vmem:[%s8296_s23 + $0x170] sm:$0xff] %v4570_v13  ;;  %v8610_v13 = vld [vmem:[#allocation14_spill] sm:$0xff] }
 0x699   : > { %v6111_v26 = vpop.f32.mrb[240].mxu0 }
 0x69a   : > { %v4380_v42 = vadd.f32 %v6111_v26, %v8224_v21  ;;  %v4374_v19 = vpop.f32.mrb[241].mxu0 }
 0x69b   : > { %v4375_v27 = vadd.f32 %v4374_v19, %v8220_v29 }
 0x69c   : > { %v4509_v4 = vadd.f32 %v8282_v59, %v4380_v42 }
 0x69d   : > { %v4508_v15 = vadd.f32 %v8282_v59, %v4375_v27  ;;  %v6114_v28 = vpop.f32.mrb[242].mxu0 }
 0x69e   : > { %v4573_v20 = vmax.f32 %v4509_v4, 0.0  ;;  %v4390_v5 = vadd.f32 %v6114_v28, %v8599_v44  ;;  %v4384_v46 = vpop.f32.mrb[243].mxu0 }
 0x69f   : > { %v4572_v23 = vmax.f32 %v4508_v15, 0.0  ;;  %v4385_v37 = vadd.f32 %v4384_v46, %v8600_v55  ;;  %v8611_v15 = vld [vmem:[#allocation19_spill] sm:$0xff] }
 0x6a0   : > { %4637 = vst [vmem:[%s8296_s23 + $0x188] sm:$0xff] %v4573_v20  ;;  %v4511_v21 = vadd.f32 %v8282_v59, %v4390_v5  ;;  %v8612_v5 = vld [vmem:[#allocation16_spill] sm:$0xff] }
 0x6a1   : > { %4636 = vst [vmem:[%s8296_s23 + $0x180] sm:$0xff] %v4572_v23  ;;  %v4510_v29 = vadd.f32 %v8282_v59, %v4385_v37  ;;  %v6117_v18 = vpop.f32.mrb[244].mxu0 }
 0x6a2   : > { %v4575_v63 = vmax.f32 %v4511_v21, 0.0  ;;  %v4400_v14 = vadd.f32 %v6117_v18, %v8601_v10  ;;  %v4394_v58 = vpop.f32.mrb[245].mxu0 }
 0x6a3   : > { %v4574_v1 = vmax.f32 %v4510_v29, 0.0  ;;  %v4395_v17 = vadd.f32 %v4394_v58, %v8602_v32 }
 0x6a4   : > { %4639 = vst [vmem:[%s8296_s23 + $0x198] sm:$0xff] %v4575_v63  ;;  %v4513_v11 = vadd.f32 %v8282_v59, %v4400_v14 }
 0x6a5   : > { %4638 = vst [vmem:[%s8296_s23 + $0x190] sm:$0xff] %v4574_v1  ;;  %v4512_v60 = vadd.f32 %v8282_v59, %v4395_v17  ;;  %v6120_v8 = vpop.f32.mrb[246].mxu0 }
 0x6a6   : > { %v4577_v51 = vmax.f32 %v4513_v11, 0.0  ;;  %v4410_v3 = vadd.f32 %v6120_v8, %v8603_v43  ;;  %v4404_v30 = vpop.f32.mrb[247].mxu0 }
 0x6a7   : > { %v4576_v0 = vmax.f32 %v4512_v60, 0.0  ;;  %v4405_v2 = vadd.f32 %v4404_v30, %v8604_v49 }
 0x6a8   : > { %4641 = vst [vmem:[%s8296_s23 + $0x1a8] sm:$0xff] %v4577_v51  ;;  %v4515_v62 = vadd.f32 %v8282_v59, %v4410_v3 }
 0x6a9   : > { %4640 = vst [vmem:[%s8296_s23 + $0x1a0] sm:$0xff] %v4576_v0  ;;  %v4514_v12 = vadd.f32 %v8282_v59, %v4405_v2  ;;  %v6123_v6 = vpop.f32.mrb[248].mxu0 }
 0x6aa   : > { %v4579_v57 = vmax.f32 %v4515_v62, 0.0  ;;  %v4420_v33 = vadd.f32 %v6123_v6, %v8605_v54  ;;  %v4414_v40 = vpop.f32.mrb[249].mxu0 }
 0x6ab   : > { %v4578_v53 = vmax.f32 %v4514_v12, 0.0  ;;  %v4415_v47 = vadd.f32 %v4414_v40, %v8606_v22 }
 0x6ac   : > { %4643 = vst [vmem:[%s8296_s23 + $0x1b8] sm:$0xff] %v4579_v57  ;;  %v4517_v39 = vadd.f32 %v8282_v59, %v4420_v33 }
 0x6ad   : > { %4642 = vst [vmem:[%s8296_s23 + $0x1b0] sm:$0xff] %v4578_v53  ;;  %v4516_v50 = vadd.f32 %v8282_v59, %v4415_v47  ;;  %v6126_v41 = vpop.f32.mrb[250].mxu0 }
 0x6ae   : > { %v4581_v56 = vmax.f32 %v4517_v39, 0.0  ;;  %v4430_v61 = vadd.f32 %v6126_v41, %v8607_v52  ;;  %v4424_v38 = vpop.f32.mrb[251].mxu0 }
 0x6af   : > { %v4580_v48 = vmax.f32 %v4516_v50, 0.0  ;;  %v4425_v7 = vadd.f32 %v4424_v38, %v8608_v25 }
 0x6b0   : > { %4645 = vst [vmem:[%s8296_s23 + $0x1c8] sm:$0xff] %v4581_v56  ;;  %v4519_v24 = vadd.f32 %v8282_v59, %v4430_v61 }
 0x6b1   : > { %4644 = vst [vmem:[%s8296_s23 + $0x1c0] sm:$0xff] %v4580_v48  ;;  %v4518_v35 = vadd.f32 %v8282_v59, %v4425_v7  ;;  %v6129_v36 = vpop.f32.mrb[252].mxu0 }
 0x6b2   : > { %v4583_v34 = vmax.f32 %v4519_v24, 0.0  ;;  %v4440_v31 = vadd.f32 %v6129_v36, %v8609_v9  ;;  %v4434_v45 = vpop.f32.mrb[253].mxu0 }
 0x6b3   : > { %v4582_v16 = vmax.f32 %v4518_v35, 0.0  ;;  %v4435_v26 = vadd.f32 %v4434_v45, %v8610_v13 }
 0x6b4   : > { %4647 = vst [vmem:[%s8296_s23 + $0x1d8] sm:$0xff] %v4583_v34  ;;  %v4521_v42 = vadd.f32 %v8282_v59, %v4440_v31 }
 0x6b5   : > { %4646 = vst [vmem:[%s8296_s23 + $0x1d0] sm:$0xff] %v4582_v16  ;;  %v4520_v19 = vadd.f32 %v8282_v59, %v4435_v26  ;;  %v6132_v27 = vpop.f32.mrb[254].mxu0 }
 0x6b6   : > { %v4585_v4 = vmax.f32 %v4521_v42, 0.0  ;;  %v4450_v28 = vadd.f32 %v6132_v27, %v8611_v15  ;;  %v4444_v20 = vpop.f32.mrb[255].mxu0 }
 0x6b7   : > { %v4584_v44 = vmax.f32 %v4520_v19, 0.0  ;;  %v4445_v46 = vadd.f32 %v4444_v20, %v8612_v5 }
 0x6b8   : > { %4649 = vst [vmem:[%s8296_s23 + $0x1e8] sm:$0xff] %v4585_v4  ;;  %v4523_v23 = vadd.f32 %v8282_v59, %v4450_v28 }
 0x6b9   : > { %4648 = vst [vmem:[%s8296_s23 + $0x1e0] sm:$0xff] %v4584_v44  ;;  %v4522_v55 = vadd.f32 %v8282_v59, %v4445_v46 }
 0x6ba   : > { %v4587_v37 = vmax.f32 %v4523_v23, 0.0 }
 0x6bb   : > { %v4586_v21 = vmax.f32 %v4522_v55, 0.0 }
 0x6bc   : > { %4651 = vst [vmem:[%s8296_s23 + $0x1f8] sm:$0xff] %v4587_v37 }
 0x6bd   : > { %4650 = vst [vmem:[%s8296_s23 + $0x1f0] sm:$0xff] %v4586_v21 }
 0x6be   : > { %6764 = shalt.err (!%p6761_p3)
}
 0x6bf   : > { %s6765_s22 = scalar_lea.hbm %s8488_s18, 8192  ;;  %s6769_s23 = scalar_lea.hbm %s8545_s8, 16384 }
 0x6c0   : > { %p6766_p4 = scmp.ne.s32.totalorder %s8488_s18, %s6765_s22  ;;  %p6770_p9 = scmp.lt.u32.totalorder %s8488_s18, %s8545_s8 }
 0x6c1   : > { %p6771_p10 = scmp.lt.u32.totalorder %s6769_s23, %s6765_s22  ;;  %p6773_p12 = scmp.lt.u32.totalorder %s6765_s22, %s8488_s18 }
 0x6c2   : > { %p6767_p7 = pnand %p6766_p4, %p6903_p5 }
 0x6c3   : > { %p6772_p11 = por %p6771_p10, %p6770_p9 }
 0x6c4   : > { %p6768_p8 = pneg %p6767_p7 }
 0x6c5   : > { %p6774_p13 = por %p6773_p12, %p6772_p11 }
 0x6c7   : > { %p6775_p0 = pnand %p6774_p13, %p6768_p8 }
 0x6c9   : > { %6778 = shalt.err (!%p6775_p0)
}
 0x6ca   : > { %s6818_s17 = smov 128   ;;  %s6819_s19 = smov 8  }
 0x6cb   : > { %6581 = dma.vmem_to_hbm [thread:$0]  (%p6903_p5), %s8490_s10, 8192, %s8488_s18, %s8496_s9, %s6818_s17, %s6818_s17, %s6819_s19  }
 0x6cc PF: > { %p6587_p1 = scmp.ge.s32.totalorder %s6813_s30, 2  ;;  %s4682_s20 = sand.u32 1, %s6801_s27  }
 0x6cd   : > { %s4683_s21 = scalar_lea.sflag [#allocation3], %s4682_s20 }
 0x6ce   : > { %p6584_p2 = pnand %p6587_p1, %p6907_p6 }
 0x6d0   : > { %6796 = dma.done.wait (!%p6584_p2), %s4683_s21, 8192  }
 0x6d1   : > { %6798 = vsyncadd (!%p6584_p2), %s4683_s21, 4294959104  ;;  %p18_p3 = scmp.ge.s32.totalorder %s6890_s11, 4   ;;  %s8613_s27 = smov %s6805_s28 }
 0x6d2   : > { %s8614_s28 = smov %s6809_s29  ;;  %s8615_s29 = smov %s6901_s14 }
 0x6d3   : > { %s8616_s30 = smov %s6890_s11  ;;  %20 = sbr.rel (!%p18_p3) target bundleno = 3 (0x3), region = 90 }
 0x6da   :  { %4688 = vsyncpa [#allocation3], 1 }
 0x6db   :  { %4690 = vsyncpa [#allocation3 + $0x1], 1 }

</bundles_post_ra>
